<compile_context>
chip_gen: v6e
topology: v6e:2x2x1
jax: 0.10.0
libtpu: 0.0.40
codegen_flags: <defaults>
</compile_context>

<pallas_src>
import functools

import jax
import jax.numpy as jnp
from jax import lax
from jax.experimental import pallas as pl
from jax.experimental.pallas import tpu as pltpu

BN_EPS = 1e-5
LANE = 128
SUBLANE = 8
VMEM_LIMIT_BYTES = 48 * 1024 * 1024   # fits v7x's 64 MiB physical VMEM with headroom


def _round_up(x, m):
    return (x + m - 1) // m * m


# ------- Pass 1: direct 3x3 conv (9 shifted MXU matmuls) + BN partial sums -------
def _conv_stats_kernel(xm_ref, xh_ref, w_ref, y_ref, stats_ref, win_ref, acc_ref,
                       *, th, W, H):
    """Grid = (N, n_h); both axes "parallel" (every output block is disjoint).

    xm_ref:    (th, W+2, Cin)   padded-input rows [i*th, i*th+th)
    xh_ref:    (8,  W+2, Cin)   padded-input rows [i*th+th, i*th+th+8) (halo)
    w_ref:     (9, Cin, Cp)     conv weights, tap-major, VMEM-resident
    y_ref:     (th*W, Cp)       conv-output tile (inter dtype, usually bf16)
    stats_ref: (8, Cp) f32      row 0 = sum(y), row 1 = sum(y*y)  (valid rows only)
    win_ref:   (th+2, W+2, Cin) VMEM scratch halo window
    acc_ref:   (th*W, Cp) f32   VMEM accumulator
    """
    i = pl.program_id(1)
    cin = win_ref.shape[-1]
    tm = th * W

    # Assemble the halo window: th main rows + 2 halo rows.
    win_ref[0:th, :, :] = xm_ref[...]
    win_ref[th:th + 2, :, :] = xh_ref[0:2, :, :]

    # 3x3 conv as 9 shift-accumulated matmuls against the resident weights.
    for t in range(9):
        dh, dw = divmod(t, 3)
        tap = win_ref[dh:dh + th, dw:dw + W, :].reshape(tm, cin)
        contrib = jnp.dot(tap, w_ref[t], preferred_element_type=jnp.float32)
        if t == 0:
            acc_ref[...] = contrib
        else:
            acc_ref[...] += contrib

    acc = acc_ref[...]
    y_ref[...] = acc.astype(y_ref.dtype)

    # Streaming-BatchNorm partial sums over rows that map to real image rows
    # (the last H tile may extend past H; those rows are excluded).
    n_valid = jnp.minimum(H - i * th, th) * W
    rid = lax.broadcasted_iota(jnp.int32, (tm, 1), 0)
    ym = jnp.where(rid < n_valid, acc, 0.0)
    stats_ref[0:1, :] = jnp.sum(ym, axis=0, keepdims=True)
    stats_ref[1:2, :] = jnp.sum(ym * ym, axis=0, keepdims=True)


# ------------- Pass 2: apply folded BatchNorm (one FMA per element) -------------
def _bn_apply_kernel(y_ref, ss_ref, o_ref):
    """o = y * scale + shift.  (LeakyReLU with slope float(True)=1.0 is the identity.)"""
    y = y_ref[...].astype(jnp.float32)
    o_ref[...] = (y * ss_ref[0:1, :] + ss_ref[1:2, :]).astype(o_ref.dtype)


def vgg_layer_forward(x_nchw, conv_w, conv_b, gamma, beta, *,
                      compute_dtype=jnp.bfloat16, inter_dtype=jnp.bfloat16,
                      out_dtype=jnp.float32, target_rows=1024, pass2_max_rows=2048):
    """x_nchw: (N, Cin, H, W); conv_w: (Cout, Cin, 3, 3); conv_b/gamma/beta: (Cout,)."""
    del conv_b   # cancels exactly under training-mode BatchNorm (see header note)
    N, Cin, H, W = x_nchw.shape
    Cout = conv_w.shape[0]
    Cp = _round_up(Cout, LANE)            # lane-dense output channels
    Wp2 = W + 2

    # Image-row tile: multiple of 8 so the 8-row halo block is block-aligned and
    # ~target_rows matmul rows per grid step.  N * n_h tiles should stay >= 2 so
    # the two v7x TensorCores both get work (both grid axes are "parallel").
    th = max(SUBLANE, (target_rows // max(W, 1)) // SUBLANE * SUBLANE)
    th = min(th, _round_up(H, SUBLANE))
    n_h = (H + th - 1) // th
    HP = n_h * th                          # padded output rows
    H_in = (n_h + 1) * th                  # padded input rows (halo block always in range)
    tm = th * W                            # matmul rows per grid step
    M2 = N * n_h * tm                      # total conv-output rows (flattened, padded)

    # ---- wrapper glue: NCHW -> NHWC, zero-pad spatially, reshape weights ----
    x = jnp.transpose(x_nchw, (0, 2, 3, 1)).astype(compute_dtype)        # (N,H,W,Cin)
    xp = jnp.pad(x, ((0, 0), (1, H_in - H - 1), (1, 1), (0, 0)))         # (N,H_in,W+2,Cin)
    # (Cout,Cin,3,3) -> (3,3,Cin,Cout) -> (9,Cin,Cout) -> pad Cout -> compute dtype
    w9 = jnp.transpose(conv_w, (2, 3, 1, 0)).reshape(9, Cin, Cout)
    w9 = jnp.pad(w9, ((0, 0), (0, 0), (0, Cp - Cout))).astype(compute_dtype)

    hb = th // SUBLANE                     # halo block stride (in 8-row blocks)

    # ---- pass 1: direct conv + per-tile BN partial sums ----
    kern1 = functools.partial(_conv_stats_kernel, th=th, W=W, H=H)
    conv_flat, stats_part = pl.pallas_call(
        kern1,
        grid=(N, n_h),
        in_specs=[
            pl.BlockSpec((None, th, Wp2, Cin), lambda n, i: (n, i, 0, 0)),
            pl.BlockSpec((None, SUBLANE, Wp2, Cin),
                         lambda n, i: (n, i * hb + hb, 0, 0)),          # 2-row halo
            pl.BlockSpec((9, Cin, Cp), lambda n, i: (0, 0, 0)),          # resident weights
        ],
        out_specs=(
            pl.BlockSpec((tm, Cp), lambda n, i: (n * n_h + i, 0)),
            pl.BlockSpec((SUBLANE, Cp), lambda n, i: (n * n_h + i, 0)),
        ),
        out_shape=(
            jax.ShapeDtypeStruct((M2, Cp), inter_dtype),
            jax.ShapeDtypeStruct((N * n_h * SUBLANE, Cp), jnp.float32),
        ),
        scratch_shapes=[
            pltpu.VMEM((th + 2, Wp2, Cin), compute_dtype),
            pltpu.VMEM((tm, Cp), jnp.float32),
        ],
        compiler_params=pltpu.CompilerParams(
            dimension_semantics=("parallel", "parallel"),
            vmem_limit_bytes=VMEM_LIMIT_BYTES),
    )(xp, xp, w9)

    # ---- fold the per-tile partial sums into per-channel BN scale/shift ----
    stats = stats_part.reshape(N * n_h, SUBLANE, Cp)
    count = float(N * H * W)
    mean = jnp.sum(stats[:, 0, :], axis=0) / count
    var = jnp.maximum(jnp.sum(stats[:, 1, :], axis=0) / count - mean * mean, 0.0)
    # TODO(synk): E[y^2]-E[y]^2 in f32 can lose precision for very large N*H*W;
    # switch to a shifted two-pass reduction if tolerances ever tighten.
    gamma_p = jnp.pad(gamma.astype(jnp.float32), (0, Cp - Cout))
    beta_p = jnp.pad(beta.astype(jnp.float32), (0, Cp - Cout))
    scale = gamma_p * lax.rsqrt(var + BN_EPS)
    shift = beta_p - mean * scale
    ss = jnp.zeros((SUBLANE, Cp), jnp.float32).at[0, :].set(scale).at[1, :].set(shift)

    # ---- pass 2: y * scale + shift over large lane-dense row tiles ----
    tiles = N * n_h
    k = 1
    for cand in range(min(tiles, max(1, pass2_max_rows // tm)), 0, -1):
        if tiles % cand == 0:
            k = cand
            break
    tm2 = k * tm
    out_flat = pl.pallas_call(
        _bn_apply_kernel,
        grid=(M2 // tm2,),
        in_specs=[
            pl.BlockSpec((tm2, Cp), lambda j: (j, 0)),
            pl.BlockSpec((SUBLANE, Cp), lambda j: (0, 0)),
        ],
        out_specs=pl.BlockSpec((tm2, Cp), lambda j: (j, 0)),
        out_shape=jax.ShapeDtypeStruct((M2, Cp), out_dtype),
        compiler_params=pltpu.CompilerParams(
            dimension_semantics=("parallel",),
            vmem_limit_bytes=VMEM_LIMIT_BYTES),
    )(conv_flat, ss)

    # ---- final layout: drop padding and return NCHW (one fused XLA pass) ----
    # TODO(synk): a pass-2 variant that writes NCHW directly (in-kernel transpose)
    # would remove this last HBM round trip; kept in XLA for simplicity.
    out = out_flat.reshape(N, HP, W, Cp)[:, :H, :, :Cout]
    return jnp.transpose(out, (0, 3, 1, 2))


def _reference(x_nchw, conv_w, conv_b, gamma, beta):
    """Pure-JAX f32 reference with exact PyTorch semantics (bias, BN, LeakyReLU(True))."""
    y = lax.conv_general_dilated(
        x_nchw.astype(jnp.float32), conv_w.astype(jnp.float32),
        window_strides=(1, 1), padding=((1, 1), (1, 1)),
        dimension_numbers=("NCHW", "OIHW", "NCHW"))
    y = y + conv_b.reshape(1, -1, 1, 1)
    mean = jnp.mean(y, axis=(0, 2, 3), keepdims=True)
    var = jnp.mean((y - mean) ** 2, axis=(0, 2, 3), keepdims=True)
    y = (y - mean) * lax.rsqrt(var + BN_EPS)
    y = y * gamma.reshape(1, -1, 1, 1) + beta.reshape(1, -1, 1, 1)
    return jnp.where(y >= 0, y, 1.0 * y)   # negative_slope = float(True) = 1.0


if __name__ == "__main__":
    N, Cin, H, W = 2, 4, 16, 16
    Cout = 8

    key = jax.random.PRNGKey(0)
    kx, kw, kb = jax.random.split(key, 3)

    x = jax.random.normal(kx, (N, Cin, H, W), dtype=jnp.float32)
    fan_in = Cin * 3 * 3
    bound = float(fan_in) ** -0.5
    conv_w = jax.random.uniform(kw, (Cout, Cin, 3, 3), minval=-bound, maxval=bound,
                                dtype=jnp.float32)
    conv_b = jax.random.uniform(kb, (Cout,), minval=-bound, maxval=bound,
                                dtype=jnp.float32)
    gamma = jnp.linspace(0.5, 1.5, Cout, dtype=jnp.float32)
    beta = jnp.linspace(-0.3, 0.3, Cout, dtype=jnp.float32)

    ref = _reference(x, conv_w, conv_b, gamma, beta)

    fwd = jax.jit(vgg_layer_forward)
    out = jax.block_until_ready(fwd(x, conv_w, conv_b, gamma, beta))

    assert out.shape == (N, Cout, H, W), out.shape
    # BN-normalized outputs are O(1); bf16 MXU operands + bf16 intermediate give
    # ~1e-2 absolute noise, so 5e-2 is a meaningful-but-safe tolerance.
    assert jnp.allclose(out, ref, atol=5e-2, rtol=5e-2), (
        float(jnp.max(jnp.abs(out - ref))))
    print("KERNEL_OK")
</pallas_src>

<mosaic_0001>
module attributes {stable_mosaic.version = 11 : i64} {
  func.func @_conv_stats_kernel(%arg0: i32, %arg1: i32, %arg2: memref<1x16x18x4xbf16, #tpu.memory_space<vmem>>, %arg3: memref<1x8x18x4xbf16, #tpu.memory_space<vmem>>, %arg4: memref<9x4x128xbf16, #tpu.memory_space<vmem>>, %arg5: memref<256x128xbf16, #tpu.memory_space<vmem>>, %arg6: memref<8x128xf32, #tpu.memory_space<vmem>>, %arg7: memref<18x18x4xbf16, #tpu.memory_space<vmem>>, %arg8: memref<256x128xf32, #tpu.memory_space<vmem>>) attributes {dimension_semantics = [#tpu.dimension_semantics<parallel>, #tpu.dimension_semantics<parallel>], iteration_bounds = array<i64: 2, 1>, scalar_prefetch = 0 : i64, scratch_operands = 2 : i64, tpu.core_type = #tpu.core_type<tc>, window_params = [{transform_indices = @transform_0, window_bounds = array<i64: 1, 16, 18, 4>}, {transform_indices = @transform_1, window_bounds = array<i64: 1, 8, 18, 4>}, {pipeline_mode = #tpu.pipeline_mode<synchronous>, transform_indices = @transform_2, window_bounds = array<i64: 9, 4, 128>}, {transform_indices = @transform_3, window_bounds = array<i64: 256, 128>}, {transform_indices = @transform_4, window_bounds = array<i64: 8, 128>}]} {
    %c0 = arith.constant 0 : index
    %c0_0 = arith.constant 0 : index
    %c0_1 = arith.constant 0 : index
    %c0_2 = arith.constant 0 : index
    %0 = vector.load %arg2[%c0, %c0_0, %c0_1, %c0_2] : memref<1x16x18x4xbf16, #tpu.memory_space<vmem>>, vector<1x16x18x4xbf16>
    %1 = vector.shape_cast %0 : vector<1x16x18x4xbf16> to vector<16x18x4xbf16>
    %c0_3 = arith.constant 0 : index
    %c0_4 = arith.constant 0 : index
    %c0_5 = arith.constant 0 : index
    %2 = vector.load %arg7[%c0_3, %c0_4, %c0_5] : memref<18x18x4xbf16, #tpu.memory_space<vmem>>, vector<16x18x4xbf16>
    tpu.vector_store %arg7[%c0_3, %c0_4, %c0_5], %1 {strides = array<i32>} : memref<18x18x4xbf16, #tpu.memory_space<vmem>>, vector<16x18x4xbf16>,
    %c0_6 = arith.constant 0 : index
    %c0_7 = arith.constant 0 : index
    %c0_8 = arith.constant 0 : index
    %c0_9 = arith.constant 0 : index
    %3 = vector.load %arg3[%c0_6, %c0_7, %c0_8, %c0_9] : memref<1x8x18x4xbf16, #tpu.memory_space<vmem>>, vector<1x2x18x4xbf16>
    %4 = vector.shape_cast %3 : vector<1x2x18x4xbf16> to vector<2x18x4xbf16>
    %c16 = arith.constant 16 : index
    %c0_10 = arith.constant 0 : index
    %c0_11 = arith.constant 0 : index
    %5 = vector.load %arg7[%c16, %c0_10, %c0_11] : memref<18x18x4xbf16, #tpu.memory_space<vmem>>, vector<2x18x4xbf16>
    tpu.vector_store %arg7[%c16, %c0_10, %c0_11], %4 {strides = array<i32>} : memref<18x18x4xbf16, #tpu.memory_space<vmem>>, vector<2x18x4xbf16>,
    %c0_12 = arith.constant 0 : index
    %c0_13 = arith.constant 0 : index
    %c0_14 = arith.constant 0 : index
    %6 = vector.load %arg7[%c0_12, %c0_13, %c0_14] : memref<18x18x4xbf16, #tpu.memory_space<vmem>>, vector<16x16x4xbf16>
    %7 = vector.shape_cast %6 : vector<16x16x4xbf16> to vector<256x4xbf16>
    %c0_15 = arith.constant 0 : index
    %c0_16 = arith.constant 0 : index
    %c0_17 = arith.constant 0 : index
    %8 = vector.load %arg4[%c0_15, %c0_16, %c0_17] : memref<9x4x128xbf16, #tpu.memory_space<vmem>>, vector<1x4x128xbf16>
    %9 = vector.shape_cast %8 : vector<1x4x128xbf16> to vector<4x128xbf16>
    %cst = arith.constant dense<0.000000e+00> : vector<256x128xf32>
    %10 = tpu.matmul %7, %9, %cst {dimension_numbers = #tpu.dot_dimension_numbers<[1], [0], [0], [1], [0, 0, 1, 1], [], []>} : vector<256x4xbf16>, vector<4x128xbf16>, vector<256x128xf32> -> vector<256x128xf32>
    %c0_18 = arith.constant 0 : index
    %c0_19 = arith.constant 0 : index
    %11 = vector.load %arg8[%c0_18, %c0_19] : memref<256x128xf32, #tpu.memory_space<vmem>>, vector<256x128xf32>
    tpu.vector_store %arg8[%c0_18, %c0_19], %10 {strides = array<i32>} : memref<256x128xf32, #tpu.memory_space<vmem>>, vector<256x128xf32>,
    %c0_20 = arith.constant 0 : index
    %c1 = arith.constant 1 : index
    %c0_21 = arith.constant 0 : index
    %12 = vector.load %arg7[%c0_20, %c1, %c0_21] : memref<18x18x4xbf16, #tpu.memory_space<vmem>>, vector<16x16x4xbf16>
    %13 = vector.shape_cast %12 : vector<16x16x4xbf16> to vector<256x4xbf16>
    %c1_22 = arith.constant 1 : index
    %c0_23 = arith.constant 0 : index
    %c0_24 = arith.constant 0 : index
    %14 = vector.load %arg4[%c1_22, %c0_23, %c0_24] : memref<9x4x128xbf16, #tpu.memory_space<vmem>>, vector<1x4x128xbf16>
    %15 = vector.shape_cast %14 : vector<1x4x128xbf16> to vector<4x128xbf16>
    %cst_25 = arith.constant dense<0.000000e+00> : vector<256x128xf32>
    %16 = tpu.matmul %13, %15, %cst_25 {dimension_numbers = #tpu.dot_dimension_numbers<[1], [0], [0], [1], [0, 0, 1, 1], [], []>} : vector<256x4xbf16>, vector<4x128xbf16>, vector<256x128xf32> -> vector<256x128xf32>
    %c0_26 = arith.constant 0 : index
    %c0_27 = arith.constant 0 : index
    %17 = vector.load %arg8[%c0_26, %c0_27] : memref<256x128xf32, #tpu.memory_space<vmem>>, vector<256x128xf32>
    %18 = arith.addf %17, %16 : vector<256x128xf32>
    %c0_28 = arith.constant 0 : index
    %c0_29 = arith.constant 0 : index
    %19 = vector.load %arg8[%c0_28, %c0_29] : memref<256x128xf32, #tpu.memory_space<vmem>>, vector<256x128xf32>
    tpu.vector_store %arg8[%c0_28, %c0_29], %18 {strides = array<i32>} : memref<256x128xf32, #tpu.memory_space<vmem>>, vector<256x128xf32>,
    %c0_30 = arith.constant 0 : index
    %c2 = arith.constant 2 : index
    %c0_31 = arith.constant 0 : index
    %20 = vector.load %arg7[%c0_30, %c2, %c0_31] : memref<18x18x4xbf16, #tpu.memory_space<vmem>>, vector<16x16x4xbf16>
    %21 = vector.shape_cast %20 : vector<16x16x4xbf16> to vector<256x4xbf16>
    %c2_32 = arith.constant 2 : index
    %c0_33 = arith.constant 0 : index
    %c0_34 = arith.constant 0 : index
    %22 = vector.load %arg4[%c2_32, %c0_33, %c0_34] : memref<9x4x128xbf16, #tpu.memory_space<vmem>>, vector<1x4x128xbf16>
    %23 = vector.shape_cast %22 : vector<1x4x128xbf16> to vector<4x128xbf16>
    %cst_35 = arith.constant dense<0.000000e+00> : vector<256x128xf32>
    %24 = tpu.matmul %21, %23, %cst_35 {dimension_numbers = #tpu.dot_dimension_numbers<[1], [0], [0], [1], [0, 0, 1, 1], [], []>} : vector<256x4xbf16>, vector<4x128xbf16>, vector<256x128xf32> -> vector<256x128xf32>
    %c0_36 = arith.constant 0 : index
    %c0_37 = arith.constant 0 : index
    %25 = vector.load %arg8[%c0_36, %c0_37] : memref<256x128xf32, #tpu.memory_space<vmem>>, vector<256x128xf32>
    %26 = arith.addf %25, %24 : vector<256x128xf32>
    %c0_38 = arith.constant 0 : index
    %c0_39 = arith.constant 0 : index
    %27 = vector.load %arg8[%c0_38, %c0_39] : memref<256x128xf32, #tpu.memory_space<vmem>>, vector<256x128xf32>
    tpu.vector_store %arg8[%c0_38, %c0_39], %26 {strides = array<i32>} : memref<256x128xf32, #tpu.memory_space<vmem>>, vector<256x128xf32>,
    %c1_40 = arith.constant 1 : index
    %c0_41 = arith.constant 0 : index
    %c0_42 = arith.constant 0 : index
    %28 = vector.load %arg7[%c1_40, %c0_41, %c0_42] : memref<18x18x4xbf16, #tpu.memory_space<vmem>>, vector<16x16x4xbf16>
    %29 = vector.shape_cast %28 : vector<16x16x4xbf16> to vector<256x4xbf16>
    %c3 = arith.constant 3 : index
    %c0_43 = arith.constant 0 : index
    %c0_44 = arith.constant 0 : index
    %30 = vector.load %arg4[%c3, %c0_43, %c0_44] : memref<9x4x128xbf16, #tpu.memory_space<vmem>>, vector<1x4x128xbf16>
    %31 = vector.shape_cast %30 : vector<1x4x128xbf16> to vector<4x128xbf16>
    %cst_45 = arith.constant dense<0.000000e+00> : vector<256x128xf32>
    %32 = tpu.matmul %29, %31, %cst_45 {dimension_numbers = #tpu.dot_dimension_numbers<[1], [0], [0], [1], [0, 0, 1, 1], [], []>} : vector<256x4xbf16>, vector<4x128xbf16>, vector<256x128xf32> -> vector<256x128xf32>
    %c0_46 = arith.constant 0 : index
    %c0_47 = arith.constant 0 : index
    %33 = vector.load %arg8[%c0_46, %c0_47] : memref<256x128xf32, #tpu.memory_space<vmem>>, vector<256x128xf32>
    %34 = arith.addf %33, %32 : vector<256x128xf32>
    %c0_48 = arith.constant 0 : index
    %c0_49 = arith.constant 0 : index
    %35 = vector.load %arg8[%c0_48, %c0_49] : memref<256x128xf32, #tpu.memory_space<vmem>>, vector<256x128xf32>
    tpu.vector_store %arg8[%c0_48, %c0_49], %34 {strides = array<i32>} : memref<256x128xf32, #tpu.memory_space<vmem>>, vector<256x128xf32>,
    %c1_50 = arith.constant 1 : index
    %c1_51 = arith.constant 1 : index
    %c0_52 = arith.constant 0 : index
    %36 = vector.load %arg7[%c1_50, %c1_51, %c0_52] : memref<18x18x4xbf16, #tpu.memory_space<vmem>>, vector<16x16x4xbf16>
    %37 = vector.shape_cast %36 : vector<16x16x4xbf16> to vector<256x4xbf16>
    %c4 = arith.constant 4 : index
    %c0_53 = arith.constant 0 : index
    %c0_54 = arith.constant 0 : index
    %38 = vector.load %arg4[%c4, %c0_53, %c0_54] : memref<9x4x128xbf16, #tpu.memory_space<vmem>>, vector<1x4x128xbf16>
    %39 = vector.shape_cast %38 : vector<1x4x128xbf16> to vector<4x128xbf16>
    %cst_55 = arith.constant dense<0.000000e+00> : vector<256x128xf32>
    %40 = tpu.matmul %37, %39, %cst_55 {dimension_numbers = #tpu.dot_dimension_numbers<[1], [0], [0], [1], [0, 0, 1, 1], [], []>} : vector<256x4xbf16>, vector<4x128xbf16>, vector<256x128xf32> -> vector<256x128xf32>
    %c0_56 = arith.constant 0 : index
    %c0_57 = arith.constant 0 : index
    %41 = vector.load %arg8[%c0_56, %c0_57] : memref<256x128xf32, #tpu.memory_space<vmem>>, vector<256x128xf32>
    %42 = arith.addf %41, %40 : vector<256x128xf32>
    %c0_58 = arith.constant 0 : index
    %c0_59 = arith.constant 0 : index
    %43 = vector.load %arg8[%c0_58, %c0_59] : memref<256x128xf32, #tpu.memory_space<vmem>>, vector<256x128xf32>
    tpu.vector_store %arg8[%c0_58, %c0_59], %42 {strides = array<i32>} : memref<256x128xf32, #tpu.memory_space<vmem>>, vector<256x128xf32>,
    %c1_60 = arith.constant 1 : index
    %c2_61 = arith.constant 2 : index
    %c0_62 = arith.constant 0 : index
    %44 = vector.load %arg7[%c1_60, %c2_61, %c0_62] : memref<18x18x4xbf16, #tpu.memory_space<vmem>>, vector<16x16x4xbf16>
    %45 = vector.shape_cast %44 : vector<16x16x4xbf16> to vector<256x4xbf16>
    %c5 = arith.constant 5 : index
    %c0_63 = arith.constant 0 : index
    %c0_64 = arith.constant 0 : index
    %46 = vector.load %arg4[%c5, %c0_63, %c0_64] : memref<9x4x128xbf16, #tpu.memory_space<vmem>>, vector<1x4x128xbf16>
    %47 = vector.shape_cast %46 : vector<1x4x128xbf16> to vector<4x128xbf16>
    %cst_65 = arith.constant dense<0.000000e+00> : vector<256x128xf32>
    %48 = tpu.matmul %45, %47, %cst_65 {dimension_numbers = #tpu.dot_dimension_numbers<[1], [0], [0], [1], [0, 0, 1, 1], [], []>} : vector<256x4xbf16>, vector<4x128xbf16>, vector<256x128xf32> -> vector<256x128xf32>
    %c0_66 = arith.constant 0 : index
    %c0_67 = arith.constant 0 : index
    %49 = vector.load %arg8[%c0_66, %c0_67] : memref<256x128xf32, #tpu.memory_space<vmem>>, vector<256x128xf32>
    %50 = arith.addf %49, %48 : vector<256x128xf32>
    %c0_68 = arith.constant 0 : index
    %c0_69 = arith.constant 0 : index
    %51 = vector.load %arg8[%c0_68, %c0_69] : memref<256x128xf32, #tpu.memory_space<vmem>>, vector<256x128xf32>
    tpu.vector_store %arg8[%c0_68, %c0_69], %50 {strides = array<i32>} : memref<256x128xf32, #tpu.memory_space<vmem>>, vector<256x128xf32>,
    %c2_70 = arith.constant 2 : index
    %c0_71 = arith.constant 0 : index
    %c0_72 = arith.constant 0 : index
    %52 = vector.load %arg7[%c2_70, %c0_71, %c0_72] : memref<18x18x4xbf16, #tpu.memory_space<vmem>>, vector<16x16x4xbf16>
    %53 = vector.shape_cast %52 : vector<16x16x4xbf16> to vector<256x4xbf16>
    %c6 = arith.constant 6 : index
    %c0_73 = arith.constant 0 : index
    %c0_74 = arith.constant 0 : index
    %54 = vector.load %arg4[%c6, %c0_73, %c0_74] : memref<9x4x128xbf16, #tpu.memory_space<vmem>>, vector<1x4x128xbf16>
    %55 = vector.shape_cast %54 : vector<1x4x128xbf16> to vector<4x128xbf16>
    %cst_75 = arith.constant dense<0.000000e+00> : vector<256x128xf32>
    %56 = tpu.matmul %53, %55, %cst_75 {dimension_numbers = #tpu.dot_dimension_numbers<[1], [0], [0], [1], [0, 0, 1, 1], [], []>} : vector<256x4xbf16>, vector<4x128xbf16>, vector<256x128xf32> -> vector<256x128xf32>
    %c0_76 = arith.constant 0 : index
    %c0_77 = arith.constant 0 : index
    %57 = vector.load %arg8[%c0_76, %c0_77] : memref<256x128xf32, #tpu.memory_space<vmem>>, vector<256x128xf32>
    %58 = arith.addf %57, %56 : vector<256x128xf32>
    %c0_78 = arith.constant 0 : index
    %c0_79 = arith.constant 0 : index
    %59 = vector.load %arg8[%c0_78, %c0_79] : memref<256x128xf32, #tpu.memory_space<vmem>>, vector<256x128xf32>
    tpu.vector_store %arg8[%c0_78, %c0_79], %58 {strides = array<i32>} : memref<256x128xf32, #tpu.memory_space<vmem>>, vector<256x128xf32>,
    %c2_80 = arith.constant 2 : index
    %c1_81 = arith.constant 1 : index
    %c0_82 = arith.constant 0 : index
    %60 = vector.load %arg7[%c2_80, %c1_81, %c0_82] : memref<18x18x4xbf16, #tpu.memory_space<vmem>>, vector<16x16x4xbf16>
    %61 = vector.shape_cast %60 : vector<16x16x4xbf16> to vector<256x4xbf16>
    %c7 = arith.constant 7 : index
    %c0_83 = arith.constant 0 : index
    %c0_84 = arith.constant 0 : index
    %62 = vector.load %arg4[%c7, %c0_83, %c0_84] : memref<9x4x128xbf16, #tpu.memory_space<vmem>>, vector<1x4x128xbf16>
    %63 = vector.shape_cast %62 : vector<1x4x128xbf16> to vector<4x128xbf16>
    %cst_85 = arith.constant dense<0.000000e+00> : vector<256x128xf32>
    %64 = tpu.matmul %61, %63, %cst_85 {dimension_numbers = #tpu.dot_dimension_numbers<[1], [0], [0], [1], [0, 0, 1, 1], [], []>} : vector<256x4xbf16>, vector<4x128xbf16>, vector<256x128xf32> -> vector<256x128xf32>
    %c0_86 = arith.constant 0 : index
    %c0_87 = arith.constant 0 : index
    %65 = vector.load %arg8[%c0_86, %c0_87] : memref<256x128xf32, #tpu.memory_space<vmem>>, vector<256x128xf32>
    %66 = arith.addf %65, %64 : vector<256x128xf32>
    %c0_88 = arith.constant 0 : index
    %c0_89 = arith.constant 0 : index
    %67 = vector.load %arg8[%c0_88, %c0_89] : memref<256x128xf32, #tpu.memory_space<vmem>>, vector<256x128xf32>
    tpu.vector_store %arg8[%c0_88, %c0_89], %66 {strides = array<i32>} : memref<256x128xf32, #tpu.memory_space<vmem>>, vector<256x128xf32>,
    %c2_90 = arith.constant 2 : index
    %c2_91 = arith.constant 2 : index
    %c0_92 = arith.constant 0 : index
    %68 = vector.load %arg7[%c2_90, %c2_91, %c0_92] : memref<18x18x4xbf16, #tpu.memory_space<vmem>>, vector<16x16x4xbf16>
    %69 = vector.shape_cast %68 : vector<16x16x4xbf16> to vector<256x4xbf16>
    %c8 = arith.constant 8 : index
    %c0_93 = arith.constant 0 : index
    %c0_94 = arith.constant 0 : index
    %70 = vector.load %arg4[%c8, %c0_93, %c0_94] : memref<9x4x128xbf16, #tpu.memory_space<vmem>>, vector<1x4x128xbf16>
    %71 = vector.shape_cast %70 : vector<1x4x128xbf16> to vector<4x128xbf16>
    %cst_95 = arith.constant dense<0.000000e+00> : vector<256x128xf32>
    %72 = tpu.matmul %69, %71, %cst_95 {dimension_numbers = #tpu.dot_dimension_numbers<[1], [0], [0], [1], [0, 0, 1, 1], [], []>} : vector<256x4xbf16>, vector<4x128xbf16>, vector<256x128xf32> -> vector<256x128xf32>
    %c0_96 = arith.constant 0 : index
    %c0_97 = arith.constant 0 : index
    %73 = vector.load %arg8[%c0_96, %c0_97] : memref<256x128xf32, #tpu.memory_space<vmem>>, vector<256x128xf32>
    %74 = arith.addf %73, %72 : vector<256x128xf32>
    %c0_98 = arith.constant 0 : index
    %c0_99 = arith.constant 0 : index
    %75 = vector.load %arg8[%c0_98, %c0_99] : memref<256x128xf32, #tpu.memory_space<vmem>>, vector<256x128xf32>
    tpu.vector_store %arg8[%c0_98, %c0_99], %74 {strides = array<i32>} : memref<256x128xf32, #tpu.memory_space<vmem>>, vector<256x128xf32>,
    %c0_100 = arith.constant 0 : index
    %c0_101 = arith.constant 0 : index
    %76 = vector.load %arg8[%c0_100, %c0_101] : memref<256x128xf32, #tpu.memory_space<vmem>>, vector<256x128xf32>
    %77 = arith.truncf %76 : vector<256x128xf32> to vector<256x128xbf16>
    %c0_102 = arith.constant 0 : index
    %c0_103 = arith.constant 0 : index
    %78 = vector.load %arg5[%c0_102, %c0_103] : memref<256x128xbf16, #tpu.memory_space<vmem>>, vector<256x128xbf16>
    tpu.vector_store %arg5[%c0_102, %c0_103], %77 {strides = array<i32>} : memref<256x128xbf16, #tpu.memory_space<vmem>>, vector<256x128xbf16>,
    %c16_i32 = arith.constant 16 : i32
    %79 = arith.muli %arg1, %c16_i32 : i32
    %c16_i32_104 = arith.constant 16 : i32
    %80 = arith.subi %c16_i32_104, %79 : i32
    %c16_i32_105 = arith.constant 16 : i32
    %81 = arith.minsi %80, %c16_i32_105 : i32
    %c16_i32_106 = arith.constant 16 : i32
    %82 = arith.muli %81, %c16_i32_106 : i32
    %83 = tpu.iota {dimensions = array<i32: 0>} : vector<256x1xi32>
    %84 = vector.broadcast %82 : i32 to vector<256x1xi32>
    %85 = arith.cmpi slt, %83, %84 : vector<256x1xi32>
    %cst_107 = arith.constant 0.000000e+00 : f32
    %86 = vector.shape_cast %85 : vector<256x1xi1> to vector<256x1xi1>
    %87 = vector.broadcast %86 : vector<256x1xi1> to vector<256x128xi1>
    %88 = vector.broadcast %cst_107 : f32 to vector<256x128xf32>
    %89 = arith.select %87, %76, %88 : vector<256x128xi1>, vector<256x128xf32>
    %cst_108 = arith.constant dense<0.000000e+00> : vector<128xf32>
    %90 = vector.multi_reduction <add>, %89, %cst_108 [0] : vector<256x128xf32> to vector<128xf32>
    %91 = vector.shape_cast %90 : vector<128xf32> to vector<1x128xf32>
    %c0_109 = arith.constant 0 : index
    %c0_110 = arith.constant 0 : index
    %92 = vector.load %arg6[%c0_109, %c0_110] : memref<8x128xf32, #tpu.memory_space<vmem>>, vector<1x128xf32>
    tpu.vector_store %arg6[%c0_109, %c0_110], %91 {strides = array<i32>} : memref<8x128xf32, #tpu.memory_space<vmem>>, vector<1x128xf32>,
    %93 = arith.mulf %89, %89 : vector<256x128xf32>
    %cst_111 = arith.constant dense<0.000000e+00> : vector<128xf32>
    %94 = vector.multi_reduction <add>, %93, %cst_111 [0] : vector<256x128xf32> to vector<128xf32>
    %95 = vector.shape_cast %94 : vector<128xf32> to vector<1x128xf32>
    %c1_112 = arith.constant 1 : index
    %c0_113 = arith.constant 0 : index
    %96 = vector.load %arg6[%c1_112, %c0_113] : memref<8x128xf32, #tpu.memory_space<vmem>>, vector<1x128xf32>
    tpu.vector_store %arg6[%c1_112, %c0_113], %95 {strides = array<i32>} : memref<8x128xf32, #tpu.memory_space<vmem>>, vector<1x128xf32>,
    return
  }
  func.func @transform_0(%arg0: i32, %arg1: i32) -> (i32, i32, i32, i32) {
    %c0_i32 = arith.constant 0 : i32
    %c0_i32_0 = arith.constant 0 : i32
    %c0_i32_1 = arith.constant 0 : i32
    return %arg0, %arg1, %c0_i32, %c0_i32_0 : i32, i32, i32, i32
  }
  func.func @transform_1(%arg0: i32, %arg1: i32) -> (i32, i32, i32, i32) {
    %c2_i32 = arith.constant 2 : i32
    %0 = arith.muli %arg1, %c2_i32 : i32
    %c2_i32_0 = arith.constant 2 : i32
    %1 = arith.addi %0, %c2_i32_0 : i32
    %c0_i32 = arith.constant 0 : i32
    %c0_i32_1 = arith.constant 0 : i32
    %c0_i32_2 = arith.constant 0 : i32
    return %arg0, %1, %c0_i32, %c0_i32_1 : i32, i32, i32, i32
  }
  func.func @transform_2(%arg0: i32, %arg1: i32) -> (i32, i32, i32) {
    %c0_i32 = arith.constant 0 : i32
    %c0_i32_0 = arith.constant 0 : i32
    %c0_i32_1 = arith.constant 0 : i32
    %c0_i32_2 = arith.constant 0 : i32
    return %c0_i32, %c0_i32_0, %c0_i32_1 : i32, i32, i32
  }
  func.func @transform_3(%arg0: i32, %arg1: i32) -> (i32, i32) {
    %c1_i32 = arith.constant 1 : i32
    %0 = arith.muli %arg0, %c1_i32 : i32
    %1 = arith.addi %0, %arg1 : i32
    %c0_i32 = arith.constant 0 : i32
    %c0_i32_0 = arith.constant 0 : i32
    return %1, %c0_i32 : i32, i32
  }
  func.func @transform_4(%arg0: i32, %arg1: i32) -> (i32, i32) {
    %c1_i32 = arith.constant 1 : i32
    %0 = arith.muli %arg0, %c1_i32 : i32
    %1 = arith.addi %0, %arg1 : i32
    %c0_i32 = arith.constant 0 : i32
    %c0_i32_0 = arith.constant 0 : i32
    return %1, %c0_i32 : i32, i32
  }
}

module attributes {stable_mosaic.version = 11 : i64} {
  func.func @_bn_apply_kernel(%arg0: i32, %arg1: memref<512x128xbf16, #tpu.memory_space<vmem>>, %arg2: memref<8x128xf32, #tpu.memory_space<vmem>>, %arg3: memref<512x128xf32, #tpu.memory_space<vmem>>) attributes {dimension_semantics = [#tpu.dimension_semantics<parallel>], iteration_bounds = array<i64: 1>, scalar_prefetch = 0 : i64, scratch_operands = 0 : i64, tpu.core_type = #tpu.core_type<tc>, window_params = [{transform_indices = @transform_0, window_bounds = array<i64: 512, 128>}, {pipeline_mode = #tpu.pipeline_mode<synchronous>, transform_indices = @transform_1, window_bounds = array<i64: 8, 128>}, {transform_indices = @transform_2, window_bounds = array<i64: 512, 128>}]} {
    %c0 = arith.constant 0 : index
    %c0_0 = arith.constant 0 : index
    %0 = vector.load %arg1[%c0, %c0_0] : memref<512x128xbf16, #tpu.memory_space<vmem>>, vector<512x128xbf16>
    %1 = arith.extf %0 : vector<512x128xbf16> to vector<512x128xf32>
    %c0_1 = arith.constant 0 : index
    %c0_2 = arith.constant 0 : index
    %2 = vector.load %arg2[%c0_1, %c0_2] : memref<8x128xf32, #tpu.memory_space<vmem>>, vector<1x128xf32>
    %3 = vector.broadcast %2 : vector<1x128xf32> to vector<512x128xf32>
    %4 = arith.mulf %1, %3 : vector<512x128xf32>
    %c1 = arith.constant 1 : index
    %c0_3 = arith.constant 0 : index
    %5 = vector.load %arg2[%c1, %c0_3] : memref<8x128xf32, #tpu.memory_space<vmem>>, vector<1x128xf32>
    %6 = vector.broadcast %5 : vector<1x128xf32> to vector<512x128xf32>
    %7 = arith.addf %4, %6 : vector<512x128xf32>
    %c0_4 = arith.constant 0 : index
    %c0_5 = arith.constant 0 : index
    %8 = vector.load %arg3[%c0_4, %c0_5] : memref<512x128xf32, #tpu.memory_space<vmem>>, vector<512x128xf32>
    tpu.vector_store %arg3[%c0_4, %c0_5], %7 {strides = array<i32>} : memref<512x128xf32, #tpu.memory_space<vmem>>, vector<512x128xf32>,
    return
  }
  func.func @transform_0(%arg0: i32) -> (i32, i32) {
    %c0_i32 = arith.constant 0 : i32
    %c0_i32_0 = arith.constant 0 : i32
    return %arg0, %c0_i32 : i32, i32
  }
  func.func @transform_1(%arg0: i32) -> (i32, i32) {
    %c0_i32 = arith.constant 0 : i32
    %c0_i32_0 = arith.constant 0 : i32
    %c0_i32_1 = arith.constant 0 : i32
    return %c0_i32, %c0_i32_0 : i32, i32
  }
  func.func @transform_2(%arg0: i32) -> (i32, i32) {
    %c0_i32 = arith.constant 0 : i32
    %c0_i32_0 = arith.constant 0 : i32
    return %arg0, %c0_i32 : i32, i32
  }
}

</mosaic_0001>

<bundles_post_ra>
// kernel: vgg_layer_forward.3
= control target key start
LH: loop header
LB: loop body
LE: loop exit
PB: predicated region body
PF: predicated region fallthrough
CT: control target
= control target key end

     0   :  { %s947_s0 = inlined_call_operand.vmem [shape: bf16[512,128], index: 0, kind: input, shape index: {}]   ;;  %s948_s1 = inlined_call_operand.vmem [shape: f32[8,128], index: 1, kind: input, shape index: {}]   ;;  %s949_s2 = inlined_call_operand.vmem [shape: f32[512,128], index: 2, kind: output, shape index: {}]  }
   0x1   :  { %v348_v0 = vld [vmem:[%s947_s0] sm:$0xff]   ;;  %v475_v4 = vld [vmem:[%s947_s0 + $0x8] sm:$0xff]   ;;  %v476_v5 = vld [vmem:[%s947_s0 + $0x10] sm:$0xff]  }
   0x2   :  { %v527_v1 = vld [vmem:[%s948_s1] ss:$0 sm:$0xff]  ;;  %v349_v2 = vunpack.c.l.bf16 %v348_v0  ;;  %v350_v3 = vunpack.c.h.bf16 %v348_v0  ;;  %v477_v6 = vld [vmem:[%s947_s0 + $0x18] sm:$0xff]   ;;  %v541_v7 = vld [vmem:[%s948_s1 + $0x1] ss:$0 sm:$0xff]  ;;  %v353_v8 = vunpack.c.l.bf16 %v475_v4  ;;  %v354_v9 = vunpack.c.h.bf16 %v475_v4 }
   0x3   :  { %v357_v10 = vunpack.c.l.bf16 %v476_v5  ;;  %v358_v11 = vunpack.c.h.bf16 %v476_v5  ;;  %v361_v14 = vunpack.c.l.bf16 %v477_v6  ;;  %v362_v15 = vunpack.c.h.bf16 %v477_v6  ;;  %v478_v20 = vld [vmem:[%s947_s0 + $0x20] sm:$0xff]   ;;  %v479_v25 = vld [vmem:[%s947_s0 + $0x28] sm:$0xff]   ;;  %v480_v26 = vld [vmem:[%s947_s0 + $0x30] sm:$0xff]  }
   0x4   :  { %v144_v12 = vmul.f32 %v349_v2, %v527_v1  ;;  %v145_v13 = vmul.f32 %v350_v3, %v527_v1  ;;  %v146_v16 = vmul.f32 %v353_v8, %v527_v1  ;;  %v147_v17 = vmul.f32 %v354_v9, %v527_v1  ;;  %v481_v31 = vld [vmem:[%s947_s0 + $0x38] sm:$0xff]   ;;  %v482_v48 = vld [vmem:[%s947_s0 + $0x40] sm:$0xff]   ;;  %v483_v53 = vld [vmem:[%s947_s0 + $0x48] sm:$0xff]  }
   0x5   :  { %v148_v18 = vmul.f32 %v357_v10, %v527_v1  ;;  %v149_v19 = vmul.f32 %v358_v11, %v527_v1  ;;  %v150_v23 = vmul.f32 %v361_v14, %v527_v1  ;;  %v151_v24 = vmul.f32 %v362_v15, %v527_v1  ;;  %v484_v54 = vld [vmem:[%s947_s0 + $0x50] sm:$0xff]   ;;  %v485_v59 = vld [vmem:[%s947_s0 + $0x58] sm:$0xff]   ;;  %v486_v14 = vld [vmem:[%s947_s0 + $0x60] sm:$0xff]  }
   0x6   :  { %v213_v21 = vadd.f32 %v541_v7, %v144_v12  ;;  %v214_v22 = vadd.f32 %v541_v7, %v145_v13  ;;  %v215_v27 = vadd.f32 %v541_v7, %v146_v16  ;;  %v216_v28 = vadd.f32 %v541_v7, %v147_v17 }
   0x7   :  { %v217_v29 = vadd.f32 %v541_v7, %v148_v18  ;;  %v218_v30 = vadd.f32 %v541_v7, %v149_v19  ;;  %v219_v32 = vadd.f32 %v541_v7, %v150_v23  ;;  %v220_v33 = vadd.f32 %v541_v7, %v151_v24  ;;  %v487_v19 = vld [vmem:[%s947_s0 + $0x68] sm:$0xff]  }
   0x8   :  { %277 = vst [vmem:[%s949_s2] sm:$0xff] %v213_v21  ;;  %278 = vst [vmem:[%s949_s2 + $0x8] sm:$0xff] %v214_v22  ;;  %v365_v34 = vunpack.c.l.bf16 %v478_v20  ;;  %v366_v35 = vunpack.c.h.bf16 %v478_v20  ;;  %v369_v36 = vunpack.c.l.bf16 %v479_v25  ;;  %v370_v37 = vunpack.c.h.bf16 %v479_v25  ;;  %v488_v20 = vld [vmem:[%s947_s0 + $0x70] sm:$0xff]   ;;  %v489_v25 = vld [vmem:[%s947_s0 + $0x78] sm:$0xff]  }
   0x9   :  { %279 = vst [vmem:[%s949_s2 + $0x10] sm:$0xff] %v215_v27  ;;  %280 = vst [vmem:[%s949_s2 + $0x18] sm:$0xff] %v216_v28  ;;  %v373_v38 = vunpack.c.l.bf16 %v480_v26  ;;  %v374_v39 = vunpack.c.h.bf16 %v480_v26  ;;  %v377_v42 = vunpack.c.l.bf16 %v481_v31  ;;  %v378_v43 = vunpack.c.h.bf16 %v481_v31 }
   0xa   :  { %281 = vst [vmem:[%s949_s2 + $0x20] sm:$0xff] %v217_v29  ;;  %282 = vst [vmem:[%s949_s2 + $0x28] sm:$0xff] %v218_v30  ;;  %v152_v40 = vmul.f32 %v365_v34, %v527_v1  ;;  %v153_v41 = vmul.f32 %v366_v35, %v527_v1  ;;  %v154_v44 = vmul.f32 %v369_v36, %v527_v1  ;;  %v381_v62 = vunpack.c.l.bf16 %v482_v48 }
   0xb   :  { %283 = vst [vmem:[%s949_s2 + $0x30] sm:$0xff] %v219_v32  ;;  %284 = vst [vmem:[%s949_s2 + $0x38] sm:$0xff] %v220_v33  ;;  %v155_v45 = vmul.f32 %v370_v37, %v527_v1  ;;  %v156_v46 = vmul.f32 %v373_v38, %v527_v1  ;;  %v157_v47 = vmul.f32 %v374_v39, %v527_v1  ;;  %v382_v63 = vunpack.c.h.bf16 %v482_v48  ;;  %v492_v48 = vld [vmem:[%s947_s0 + $0x90] sm:$0xff]  }
   0xc   :  { %v221_v49 = vadd.f32 %v541_v7, %v152_v40  ;;  %v222_v50 = vadd.f32 %v541_v7, %v153_v41  ;;  %v158_v51 = vmul.f32 %v377_v42, %v527_v1  ;;  %v159_v52 = vmul.f32 %v378_v43, %v527_v1  ;;  %v490_v42 = vld [vmem:[%s947_s0 + $0x80] sm:$0xff]  }
   0xd   :  { %v223_v55 = vadd.f32 %v541_v7, %v154_v44  ;;  %v224_v56 = vadd.f32 %v541_v7, %v155_v45  ;;  %v225_v57 = vadd.f32 %v541_v7, %v156_v46  ;;  %v226_v58 = vadd.f32 %v541_v7, %v157_v47  ;;  %v491_v47 = vld [vmem:[%s947_s0 + $0x88] sm:$0xff]  }
   0xe   :  { %285 = vst [vmem:[%s949_s2 + $0x40] sm:$0xff] %v221_v49  ;;  %286 = vst [vmem:[%s949_s2 + $0x48] sm:$0xff] %v222_v50  ;;  %v227_v60 = vadd.f32 %v541_v7, %v158_v51  ;;  %v228_v61 = vadd.f32 %v541_v7, %v159_v52  ;;  %v385_v0 = vunpack.c.l.bf16 %v483_v53  ;;  %v386_v2 = vunpack.c.h.bf16 %v483_v53  ;;  %v493_v53 = vld [vmem:[%s947_s0 + $0x98] sm:$0xff]  }
   0xf   :  { %287 = vst [vmem:[%s949_s2 + $0x50] sm:$0xff] %v223_v55  ;;  %288 = vst [vmem:[%s949_s2 + $0x58] sm:$0xff] %v224_v56  ;;  %v389_v3 = vunpack.c.l.bf16 %v484_v54  ;;  %v390_v4 = vunpack.c.h.bf16 %v484_v54  ;;  %v160_v5 = vmul.f32 %v381_v62, %v527_v1  ;;  %v161_v6 = vmul.f32 %v382_v63, %v527_v1 }
  0x10   :  { %289 = vst [vmem:[%s949_s2 + $0x60] sm:$0xff] %v225_v57  ;;  %290 = vst [vmem:[%s949_s2 + $0x68] sm:$0xff] %v226_v58  ;;  %v393_v8 = vunpack.c.l.bf16 %v485_v59  ;;  %v394_v9 = vunpack.c.h.bf16 %v485_v59  ;;  %v162_v10 = vmul.f32 %v385_v0, %v527_v1  ;;  %v163_v11 = vmul.f32 %v386_v2, %v527_v1 }
  0x11   :  { %291 = vst [vmem:[%s949_s2 + $0x70] sm:$0xff] %v227_v60  ;;  %292 = vst [vmem:[%s949_s2 + $0x78] sm:$0xff] %v228_v61  ;;  %v164_v12 = vmul.f32 %v389_v3, %v527_v1  ;;  %v165_v13 = vmul.f32 %v390_v4, %v527_v1  ;;  %v229_v15 = vadd.f32 %v541_v7, %v160_v5  ;;  %v397_v28 = vunpack.c.l.bf16 %v486_v14 }
  0x12   :  { %v230_v16 = vadd.f32 %v541_v7, %v161_v6  ;;  %v166_v17 = vmul.f32 %v393_v8, %v527_v1  ;;  %v167_v18 = vmul.f32 %v394_v9, %v527_v1  ;;  %v231_v21 = vadd.f32 %v541_v7, %v162_v10  ;;  %v494_v8 = vld [vmem:[%s947_s0 + $0xa0] sm:$0xff]  }
  0x13   :  { %v232_v22 = vadd.f32 %v541_v7, %v163_v11  ;;  %v233_v23 = vadd.f32 %v541_v7, %v164_v12  ;;  %v234_v24 = vadd.f32 %v541_v7, %v165_v13  ;;  %293 = vst [vmem:[%s949_s2 + $0x80] sm:$0xff] %v229_v15  ;;  %v398_v29 = vunpack.c.h.bf16 %v486_v14  ;;  %v495_v13 = vld [vmem:[%s947_s0 + $0xa8] sm:$0xff]   ;;  %v496_v14 = vld [vmem:[%s947_s0 + $0xb0] sm:$0xff]  }
  0x14   :  { %294 = vst [vmem:[%s949_s2 + $0x88] sm:$0xff] %v230_v16  ;;  %v235_v26 = vadd.f32 %v541_v7, %v166_v17  ;;  %v236_v27 = vadd.f32 %v541_v7, %v167_v18  ;;  %295 = vst [vmem:[%s949_s2 + $0x90] sm:$0xff] %v231_v21  ;;  %v401_v30 = vunpack.c.l.bf16 %v487_v19  ;;  %v402_v31 = vunpack.c.h.bf16 %v487_v19  ;;  %v497_v19 = vld [vmem:[%s947_s0 + $0xb8] sm:$0xff]  }
  0x15   :  { %296 = vst [vmem:[%s949_s2 + $0x98] sm:$0xff] %v232_v22  ;;  %297 = vst [vmem:[%s949_s2 + $0xa0] sm:$0xff] %v233_v23  ;;  %v405_v32 = vunpack.c.l.bf16 %v488_v20  ;;  %v406_v33 = vunpack.c.h.bf16 %v488_v20  ;;  %v168_v34 = vmul.f32 %v397_v28, %v527_v1  ;;  %v169_v35 = vmul.f32 %v398_v29, %v527_v1 }
  0x16   :  { %298 = vst [vmem:[%s949_s2 + $0xa8] sm:$0xff] %v234_v24  ;;  %299 = vst [vmem:[%s949_s2 + $0xb0] sm:$0xff] %v235_v26  ;;  %v409_v36 = vunpack.c.l.bf16 %v489_v25  ;;  %v410_v37 = vunpack.c.h.bf16 %v489_v25  ;;  %v170_v38 = vmul.f32 %v401_v30, %v527_v1  ;;  %v171_v39 = vmul.f32 %v402_v31, %v527_v1 }
  0x17   :  { %300 = vst [vmem:[%s949_s2 + $0xb8] sm:$0xff] %v236_v27  ;;  %v172_v40 = vmul.f32 %v405_v32, %v527_v1  ;;  %v173_v41 = vmul.f32 %v406_v33, %v527_v1  ;;  %v237_v43 = vadd.f32 %v541_v7, %v168_v34  ;;  %v238_v44 = vadd.f32 %v541_v7, %v169_v35 }
  0x18   :  { %v174_v45 = vmul.f32 %v409_v36, %v527_v1  ;;  %v175_v46 = vmul.f32 %v410_v37, %v527_v1  ;;  %v239_v49 = vadd.f32 %v541_v7, %v170_v38  ;;  %v240_v50 = vadd.f32 %v541_v7, %v171_v39  ;;  %v498_v36 = vld [vmem:[%s947_s0 + $0xc0] sm:$0xff]  }
  0x19   :  { %v241_v51 = vadd.f32 %v541_v7, %v172_v40  ;;  %v242_v52 = vadd.f32 %v541_v7, %v173_v41  ;;  %301 = vst [vmem:[%s949_s2 + $0xc0] sm:$0xff] %v237_v43  ;;  %302 = vst [vmem:[%s949_s2 + $0xc8] sm:$0xff] %v238_v44  ;;  %v413_v56 = vunpack.c.l.bf16 %v490_v42  ;;  %v414_v57 = vunpack.c.h.bf16 %v490_v42  ;;  %v499_v41 = vld [vmem:[%s947_s0 + $0xc8] sm:$0xff]   ;;  %v500_v42 = vld [vmem:[%s947_s0 + $0xd0] sm:$0xff]  }
  0x1a   :  { %v243_v54 = vadd.f32 %v541_v7, %v174_v45  ;;  %v244_v55 = vadd.f32 %v541_v7, %v175_v46  ;;  %303 = vst [vmem:[%s949_s2 + $0xd0] sm:$0xff] %v239_v49  ;;  %304 = vst [vmem:[%s949_s2 + $0xd8] sm:$0xff] %v240_v50  ;;  %v417_v58 = vunpack.c.l.bf16 %v491_v47  ;;  %v418_v59 = vunpack.c.h.bf16 %v491_v47  ;;  %v501_v47 = vld [vmem:[%s947_s0 + $0xd8] sm:$0xff]  }
  0x1b   :  { %305 = vst [vmem:[%s949_s2 + $0xe0] sm:$0xff] %v241_v51  ;;  %306 = vst [vmem:[%s949_s2 + $0xe8] sm:$0xff] %v242_v52  ;;  %v421_v60 = vunpack.c.l.bf16 %v492_v48  ;;  %v422_v61 = vunpack.c.h.bf16 %v492_v48  ;;  %v176_v62 = vmul.f32 %v413_v56, %v527_v1  ;;  %v177_v63 = vmul.f32 %v414_v57, %v527_v1 }
  0x1c   :  { %307 = vst [vmem:[%s949_s2 + $0xf0] sm:$0xff] %v243_v54  ;;  %308 = vst [vmem:[%s949_s2 + $0xf8] sm:$0xff] %v244_v55  ;;  %v425_v0 = vunpack.c.l.bf16 %v493_v53  ;;  %v426_v2 = vunpack.c.h.bf16 %v493_v53  ;;  %v178_v3 = vmul.f32 %v417_v58, %v527_v1  ;;  %v179_v4 = vmul.f32 %v418_v59, %v527_v1 }
  0x1d   :  { %v180_v5 = vmul.f32 %v421_v60, %v527_v1  ;;  %v181_v6 = vmul.f32 %v422_v61, %v527_v1  ;;  %v245_v9 = vadd.f32 %v541_v7, %v176_v62  ;;  %v246_v10 = vadd.f32 %v541_v7, %v177_v63 }
  0x1e   :  { %v182_v11 = vmul.f32 %v425_v0, %v527_v1  ;;  %v183_v12 = vmul.f32 %v426_v2, %v527_v1  ;;  %v247_v15 = vadd.f32 %v541_v7, %v178_v3  ;;  %v248_v16 = vadd.f32 %v541_v7, %v179_v4  ;;  %v502_v0 = vld [vmem:[%s947_s0 + $0xe0] sm:$0xff]  }
  0x1f   :  { %v249_v17 = vadd.f32 %v541_v7, %v180_v5  ;;  %v250_v18 = vadd.f32 %v541_v7, %v181_v6  ;;  %309 = vst [vmem:[%s949_s2 + $0x100] sm:$0xff] %v245_v9  ;;  %310 = vst [vmem:[%s949_s2 + $0x108] sm:$0xff] %v246_v10  ;;  %v429_v22 = vunpack.c.l.bf16 %v494_v8  ;;  %v430_v23 = vunpack.c.h.bf16 %v494_v8  ;;  %v503_v6 = vld [vmem:[%s947_s0 + $0xe8] sm:$0xff]   ;;  %v504_v8 = vld [vmem:[%s947_s0 + $0xf0] sm:$0xff]  }
  0x20   :  { %v251_v20 = vadd.f32 %v541_v7, %v182_v11  ;;  %v252_v21 = vadd.f32 %v541_v7, %v183_v12  ;;  %311 = vst [vmem:[%s949_s2 + $0x110] sm:$0xff] %v247_v15  ;;  %312 = vst [vmem:[%s949_s2 + $0x118] sm:$0xff] %v248_v16  ;;  %v433_v24 = vunpack.c.l.bf16 %v495_v13  ;;  %v434_v25 = vunpack.c.h.bf16 %v495_v13  ;;  %v505_v13 = vld [vmem:[%s947_s0 + $0xf8] sm:$0xff]  }
  0x21   :  { %313 = vst [vmem:[%s949_s2 + $0x120] sm:$0xff] %v249_v17  ;;  %314 = vst [vmem:[%s949_s2 + $0x128] sm:$0xff] %v250_v18  ;;  %v437_v26 = vunpack.c.l.bf16 %v496_v14  ;;  %v438_v27 = vunpack.c.h.bf16 %v496_v14  ;;  %v184_v28 = vmul.f32 %v429_v22, %v527_v1  ;;  %v185_v29 = vmul.f32 %v430_v23, %v527_v1 }
  0x22   :  { %315 = vst [vmem:[%s949_s2 + $0x130] sm:$0xff] %v251_v20  ;;  %316 = vst [vmem:[%s949_s2 + $0x138] sm:$0xff] %v252_v21  ;;  %v441_v30 = vunpack.c.l.bf16 %v497_v19  ;;  %v442_v31 = vunpack.c.h.bf16 %v497_v19  ;;  %v186_v32 = vmul.f32 %v433_v24, %v527_v1  ;;  %v187_v33 = vmul.f32 %v434_v25, %v527_v1 }
  0x23   :  { %v188_v34 = vmul.f32 %v437_v26, %v527_v1  ;;  %v189_v35 = vmul.f32 %v438_v27, %v527_v1  ;;  %v253_v37 = vadd.f32 %v541_v7, %v184_v28  ;;  %v254_v38 = vadd.f32 %v541_v7, %v185_v29 }
  0x24   :  { %v190_v39 = vmul.f32 %v441_v30, %v527_v1  ;;  %v191_v40 = vmul.f32 %v442_v31, %v527_v1  ;;  %v255_v43 = vadd.f32 %v541_v7, %v186_v32  ;;  %v256_v44 = vadd.f32 %v541_v7, %v187_v33 }
  0x25   :  { %v257_v45 = vadd.f32 %v541_v7, %v188_v34  ;;  %v258_v46 = vadd.f32 %v541_v7, %v189_v35  ;;  %317 = vst [vmem:[%s949_s2 + $0x140] sm:$0xff] %v253_v37  ;;  %318 = vst [vmem:[%s949_s2 + $0x148] sm:$0xff] %v254_v38  ;;  %v445_v50 = vunpack.c.l.bf16 %v498_v36  ;;  %v446_v51 = vunpack.c.h.bf16 %v498_v36 }
  0x26   :  { %v259_v48 = vadd.f32 %v541_v7, %v190_v39  ;;  %v260_v49 = vadd.f32 %v541_v7, %v191_v40  ;;  %319 = vst [vmem:[%s949_s2 + $0x150] sm:$0xff] %v255_v43  ;;  %320 = vst [vmem:[%s949_s2 + $0x158] sm:$0xff] %v256_v44  ;;  %v449_v52 = vunpack.c.l.bf16 %v499_v41  ;;  %v450_v53 = vunpack.c.h.bf16 %v499_v41 }
  0x27   :  { %321 = vst [vmem:[%s949_s2 + $0x160] sm:$0xff] %v257_v45  ;;  %322 = vst [vmem:[%s949_s2 + $0x168] sm:$0xff] %v258_v46  ;;  %v453_v54 = vunpack.c.l.bf16 %v500_v42  ;;  %v454_v55 = vunpack.c.h.bf16 %v500_v42  ;;  %v192_v56 = vmul.f32 %v445_v50, %v527_v1  ;;  %v193_v57 = vmul.f32 %v446_v51, %v527_v1 }
  0x28   :  { %323 = vst [vmem:[%s949_s2 + $0x170] sm:$0xff] %v259_v48  ;;  %324 = vst [vmem:[%s949_s2 + $0x178] sm:$0xff] %v260_v49  ;;  %v457_v58 = vunpack.c.l.bf16 %v501_v47  ;;  %v458_v59 = vunpack.c.h.bf16 %v501_v47  ;;  %v194_v60 = vmul.f32 %v449_v52, %v527_v1  ;;  %v195_v61 = vmul.f32 %v450_v53, %v527_v1 }
  0x29   :  { %v196_v62 = vmul.f32 %v453_v54, %v527_v1  ;;  %v197_v63 = vmul.f32 %v454_v55, %v527_v1  ;;  %v261_v2 = vadd.f32 %v541_v7, %v192_v56  ;;  %v262_v3 = vadd.f32 %v541_v7, %v193_v57 }
  0x2a   :  { %v198_v4 = vmul.f32 %v457_v58, %v527_v1  ;;  %v199_v5 = vmul.f32 %v458_v59, %v527_v1  ;;  %v263_v9 = vadd.f32 %v541_v7, %v194_v60  ;;  %v264_v10 = vadd.f32 %v541_v7, %v195_v61 }
  0x2b   :  { %v265_v11 = vadd.f32 %v541_v7, %v196_v62  ;;  %v266_v12 = vadd.f32 %v541_v7, %v197_v63  ;;  %325 = vst [vmem:[%s949_s2 + $0x180] sm:$0xff] %v261_v2  ;;  %326 = vst [vmem:[%s949_s2 + $0x188] sm:$0xff] %v262_v3  ;;  %v461_v16 = vunpack.c.l.bf16 %v502_v0  ;;  %v462_v17 = vunpack.c.h.bf16 %v502_v0 }
  0x2c   :  { %v267_v14 = vadd.f32 %v541_v7, %v198_v4  ;;  %v268_v15 = vadd.f32 %v541_v7, %v199_v5  ;;  %327 = vst [vmem:[%s949_s2 + $0x190] sm:$0xff] %v263_v9  ;;  %328 = vst [vmem:[%s949_s2 + $0x198] sm:$0xff] %v264_v10  ;;  %v465_v18 = vunpack.c.l.bf16 %v503_v6  ;;  %v466_v19 = vunpack.c.h.bf16 %v503_v6 }
  0x2d   :  { %329 = vst [vmem:[%s949_s2 + $0x1a0] sm:$0xff] %v265_v11  ;;  %330 = vst [vmem:[%s949_s2 + $0x1a8] sm:$0xff] %v266_v12  ;;  %v469_v20 = vunpack.c.l.bf16 %v504_v8  ;;  %v470_v21 = vunpack.c.h.bf16 %v504_v8  ;;  %v200_v22 = vmul.f32 %v461_v16, %v527_v1  ;;  %v201_v23 = vmul.f32 %v462_v17, %v527_v1 }
  0x2e   :  { %331 = vst [vmem:[%s949_s2 + $0x1b0] sm:$0xff] %v267_v14  ;;  %332 = vst [vmem:[%s949_s2 + $0x1b8] sm:$0xff] %v268_v15  ;;  %v473_v24 = vunpack.c.l.bf16 %v505_v13  ;;  %v474_v25 = vunpack.c.h.bf16 %v505_v13  ;;  %v202_v26 = vmul.f32 %v465_v18, %v527_v1  ;;  %v203_v27 = vmul.f32 %v466_v19, %v527_v1 }
  0x2f   :  { %v204_v28 = vmul.f32 %v469_v20, %v527_v1  ;;  %v205_v29 = vmul.f32 %v470_v21, %v527_v1  ;;  %v269_v30 = vadd.f32 %v541_v7, %v200_v22  ;;  %v270_v31 = vadd.f32 %v541_v7, %v201_v23 }
  0x30   :  { %v206_v32 = vmul.f32 %v473_v24, %v527_v1  ;;  %v207_v33 = vmul.f32 %v474_v25, %v527_v1  ;;  %v271_v34 = vadd.f32 %v541_v7, %v202_v26  ;;  %v272_v35 = vadd.f32 %v541_v7, %v203_v27 }
  0x31   :  { %v273_v36 = vadd.f32 %v541_v7, %v204_v28  ;;  %v274_v37 = vadd.f32 %v541_v7, %v205_v29  ;;  %333 = vst [vmem:[%s949_s2 + $0x1c0] sm:$0xff] %v269_v30  ;;  %334 = vst [vmem:[%s949_s2 + $0x1c8] sm:$0xff] %v270_v31 }
  0x32   :  { %v275_v38 = vadd.f32 %v541_v7, %v206_v32  ;;  %v276_v1 = vadd.f32 %v541_v7, %v207_v33  ;;  %335 = vst [vmem:[%s949_s2 + $0x1d0] sm:$0xff] %v271_v34  ;;  %336 = vst [vmem:[%s949_s2 + $0x1d8] sm:$0xff] %v272_v35 }
  0x33   :  { %337 = vst [vmem:[%s949_s2 + $0x1e0] sm:$0xff] %v273_v36  ;;  %338 = vst [vmem:[%s949_s2 + $0x1e8] sm:$0xff] %v274_v37 }
  0x34   :  { %339 = vst [vmem:[%s949_s2 + $0x1f0] sm:$0xff] %v275_v38  ;;  %340 = vst [vmem:[%s949_s2 + $0x1f8] sm:$0xff] %v276_v1 }

// kernel: vgg_layer_forward.2
= control target key start
LH: loop header
LB: loop body
LE: loop exit
PB: predicated region body
PF: predicated region fallthrough
CT: control target
= control target key end

     0   :  { %s7406_s15 = smov 0   ;;  %s7408_s16 = smov 0   ;;  %s8850_s0 = inlined_call_operand.vmem [shape: bf16[2,32,18,4], index: 0, kind: input, shape index: {}, may-alias: {0,1}]   ;;  %s8851_s1 = inlined_call_operand.vmem [shape: bf16[2,32,18,4], index: 1, kind: input, shape index: {}, may-alias: {0,1}]   ;;  %s8852_s2 = inlined_call_operand.vmem [shape: bf16[9,4,128], index: 2, kind: input, shape index: {}]   ;;  %s8853_s3 = inlined_call_operand.vmem [shape: bf16[512,128], index: 3, kind: output, shape index: {0}]   ;;  %s8854_s4 = inlined_call_operand.vmem [shape: f32[16,128], index: 4, kind: output, shape index: {1}]  }
   0x1   :  { %s7410_s17 = smov 0  }
   0x2 LB: > { %s27_s18 = sadd.s32 1, %s7375_s16  ;;  %p6298_p0 = scmp.ge.s32.totalorder %s7379_s17, 1  ;;  %s7379_s17 = sphi %s7410_s17, %s15_s17   ;;  %s7375_s16 = sphi %s7408_s16, %s8911_s16   ;;  %s7371_s15 = sphi %s7406_s15, %s8910_s15  }
   0x3   : > { %p29_p1 = scmp.ge.s32.totalorder %s27_s18, 2  ;;  %p215_p2 = scmp.lt.s32.totalorder %s7379_s17, 3 }
   0x5   : > { %s8913_s18 = smov (%p29_p1, %s27_s18), 0  ;;  %p216_p3 = pnand %p6298_p0, %p215_p2 }
   0x7   : > { %219 = sbr.rel (%p216_p3) target bundleno = 588 (0x24c), region = 32 }
   0xc   : > { %v448_v0 = vld [vmem:[%s8852_s2] sm:$0x3]  ;;  %vm578_vm0 = vcmask 1041408   ;;  %p265_p4 = scmp.lt.s32.totalorder %s7371_s15, 1  ;;  %v7436_v2 = vld [vmem:[%s8852_s2 + $0x2] sm:$0x3] }
   0xd   : > { %7273 = vmatprep.subr.msk.bf16.mxu1 %vm578_vm0, %v448_v0  ;;  %7272 = vmatprep.subr.msk.bf16.mxu0 %vm578_vm0, %v448_v0  ;;  %v580_v1 = vsel %vm578_vm0, %v448_v0, 0  ;;  %v6385_v3 = vld [vmem:[%s8852_s2 + $0x4] sm:$0x3]  ;;  %vm353_vm1 = vcmask 27648   ;;  %vm529_vm2 = vcmask 31744   ;;  %v1309_v34 = vsel %vm578_vm0, %v7436_v2, 0 }
   0xe   : > { %7271 = vmatpush3.bf16.msra.mxu1 %v580_v1  ;;  %6965 = vmatpush3.bf16.msra.mxu0 %v580_v1  ;;  %s7442_s25 = scalar_select %p265_p4, %s7371_s15, 1  ;;  %v1878_v31 = vsel %vm578_vm0, %v6385_v3, 0  ;;  %v6418_v32 = vld [vmem:[%s8852_s2 + $0x6] sm:$0x3]  ;;  %v7514_v35 = vld [vmem:[%s8852_s2 + $0x8] sm:$0x3] }
   0xf   : > { %7274 = vmatprep.subr.msk.bf16.mxu1 %vm578_vm0, %v7436_v2  ;;  %7275 = vmatprep.subr.msk.bf16.mxu0 %vm578_vm0, %v6385_v3  ;;  %vm823_vm3 = vsmask.f32 3328  ;;  %vm824_vm4 = vsmask.f32 7440  ;;  %vm356_vm5 = vcmask 24576   ;;  %vm1664_vm6 = vcmask 1042432  }
  0x10   : > { %s7282_s26 = smul.u32 384, %s7442_s25  ;;  %vm1665_vm7 = vcmask 1046532   ;;  %v7524_v42 = vsel %vm578_vm0, %v6418_v32, 0  ;;  %vm7551_vm8 = vmor %vm823_vm3, %vm824_vm4  ;;  %s6301_s24 = sshll.u32 %s7371_s15, 5 }
  0x11   : > { %vm7558_vm9 = vmor %vm1664_vm6, %vm1665_vm7  ;;  %p292_p5 = scmp.lt.s32.totalorder %s6301_s24, 63 }
  0x12   : > { %s7453_s29 = scalar_lea.vmem %s8850_s0, %s7282_s26  ;;  %s6683_s12 = sadd.s32 192, %s7282_s26 }
  0x13   : > { %v305_v4 = vld [vmem:[%s7453_s29] sm:$0xf]  ;;  %v306_v5 = vld [vmem:[%s7453_s29 + $0x4] sm:$0xf]  ;;  %v308_v8 = vld [vmem:[%s7453_s29 + $0xc] sm:$0xf]  ;;  %s7831_s19 = scalar_lea.vmem %s8851_s1, %s6683_s12 }
  0x14   : > { %v329_v6 = vld [vmem:[%s7453_s29 + $0x60] sm:$0xf]  ;;  %354 = vst.msk [vmem:[#allocation2] sm:$0xf] %vm353_vm1, %v305_v4  ;;  %355 = vst.msk [vmem:[#allocation2 + $0x4] sm:$0xf] %vm353_vm1, %v306_v5 }
  0x15   : > { %v330_v7 = vld [vmem:[%s7453_s29 + $0x64] sm:$0xf]  ;;  %379 = vst.msk [vmem:[#allocation2 + $0x60] sm:$0xf] %vm353_vm1, %v329_v6  ;;  %v309_v9 = vld [vmem:[%s7453_s29 + $0x10] sm:$0xf] }
  0x16   : > { %380 = vst.msk [vmem:[#allocation2 + $0x64] sm:$0xf] %vm353_vm1, %v330_v7  ;;  %358 = vst.msk [vmem:[#allocation2 + $0xc] sm:$0xf] %vm353_vm1, %v308_v8  ;;  %v332_v10 = vld [vmem:[%s7453_s29 + $0x6c] sm:$0xf] }
  0x17   : > { %359 = vst.msk [vmem:[#allocation2 + $0x10] sm:$0xf] %vm353_vm1, %v309_v9  ;;  %v333_v11 = vld [vmem:[%s7453_s29 + $0x70] sm:$0xf]  ;;  %v311_v12 = vld [vmem:[%s7453_s29 + $0x18] sm:$0xf] }
  0x18   : > { %382 = vst.msk [vmem:[#allocation2 + $0x6c] sm:$0xf] %vm353_vm1, %v332_v10  ;;  %383 = vst.msk [vmem:[#allocation2 + $0x70] sm:$0xf] %vm353_vm1, %v333_v11  ;;  %v312_v13 = vld [vmem:[%s7453_s29 + $0x1c] sm:$0xf] }
  0x19   : > { %361 = vst.msk [vmem:[#allocation2 + $0x18] sm:$0xf] %vm353_vm1, %v311_v12  ;;  %v335_v14 = vld [vmem:[%s7453_s29 + $0x78] sm:$0xf]  ;;  %v336_v15 = vld [vmem:[%s7453_s29 + $0x7c] sm:$0xf] }
  0x1a   : > { %362 = vst.msk [vmem:[#allocation2 + $0x1c] sm:$0xf] %vm353_vm1, %v312_v13  ;;  %385 = vst.msk [vmem:[#allocation2 + $0x78] sm:$0xf] %vm353_vm1, %v335_v14  ;;  %v314_v16 = vld [vmem:[%s7453_s29 + $0x24] sm:$0xf] }
  0x1b   : > { %386 = vst.msk [vmem:[#allocation2 + $0x7c] sm:$0xf] %vm353_vm1, %v336_v15  ;;  %v315_v17 = vld [vmem:[%s7453_s29 + $0x28] sm:$0xf]  ;;  %v338_v18 = vld [vmem:[%s7453_s29 + $0x84] sm:$0xf] }
  0x1c   : > { %364 = vst.msk [vmem:[#allocation2 + $0x24] sm:$0xf] %vm353_vm1, %v314_v16  ;;  %365 = vst.msk [vmem:[#allocation2 + $0x28] sm:$0xf] %vm353_vm1, %v315_v17  ;;  %v339_v19 = vld [vmem:[%s7453_s29 + $0x88] sm:$0xf] }
  0x1d   : > { %388 = vst.msk [vmem:[#allocation2 + $0x84] sm:$0xf] %vm353_vm1, %v338_v18  ;;  %v317_v20 = vld [vmem:[%s7453_s29 + $0x30] sm:$0xf]  ;;  %v318_v21 = vld [vmem:[%s7453_s29 + $0x34] sm:$0xf] }
  0x1e   : > { %389 = vst.msk [vmem:[#allocation2 + $0x88] sm:$0xf] %vm353_vm1, %v339_v19  ;;  %367 = vst.msk [vmem:[#allocation2 + $0x30] sm:$0xf] %vm353_vm1, %v317_v20  ;;  %v341_v22 = vld [vmem:[%s7453_s29 + $0x90] sm:$0xf] }
  0x1f   : > { %368 = vst.msk [vmem:[#allocation2 + $0x34] sm:$0xf] %vm353_vm1, %v318_v21  ;;  %v342_v23 = vld [vmem:[%s7453_s29 + $0x94] sm:$0xf]  ;;  %v320_v24 = vld [vmem:[%s7453_s29 + $0x3c] sm:$0xf] }
  0x20   : > { %391 = vst.msk [vmem:[#allocation2 + $0x90] sm:$0xf] %vm353_vm1, %v341_v22  ;;  %392 = vst.msk [vmem:[#allocation2 + $0x94] sm:$0xf] %vm353_vm1, %v342_v23  ;;  %v321_v25 = vld [vmem:[%s7453_s29 + $0x40] sm:$0xf] }
  0x21   : > { %370 = vst.msk [vmem:[#allocation2 + $0x3c] sm:$0xf] %vm353_vm1, %v320_v24  ;;  %v344_v26 = vld [vmem:[%s7453_s29 + $0x9c] sm:$0xf]  ;;  %v345_v27 = vld [vmem:[%s7453_s29 + $0xa0] sm:$0xf] }
  0x22   : > { %v7309_v28 = vld [vmem:[#allocation2] sm:$0xff]   ;;  %371 = vst.msk [vmem:[#allocation2 + $0x40] sm:$0xf] %vm353_vm1, %v321_v25  ;;  %394 = vst.msk [vmem:[#allocation2 + $0x9c] sm:$0xf] %vm353_vm1, %v344_v26  ;;  %v7311_v30 = vld [vmem:[#allocation2 + $0xc] sm:$0xff]  }
  0x23   : > { %395 = vst.msk [vmem:[#allocation2 + $0xa0] sm:$0xf] %vm353_vm1, %v345_v27  ;;  %v7310_v29 = vld [vmem:[#allocation2 + $0x60] sm:$0xff]   ;;  %6966 = vmatprep.mubr.msk.bf16.mxu0 %vm529_vm2, %v7309_v28  ;;  %v7312_v33 = vld [vmem:[#allocation2 + $0x6c] sm:$0xff]   ;;  %v7313_v36 = vld [vmem:[#allocation2 + $0x18] sm:$0xff]   ;;  %s8915_s24 = smov (!%p292_p5, %s6301_s24), 63 }
  0x24   : > { %6982 = vmatprep.mubr.msk.bf16.mxu1 %vm529_vm2, %v7310_v29  ;;  %6967 = vmatmul.mubr.msk.bf16.vlgmr.msra.gmra.mxu0 %vm529_vm2, %v7311_v30  ;;  %v7314_v37 = vld [vmem:[#allocation2 + $0x78] sm:$0xff]   ;;  %v7315_v38 = vld [vmem:[#allocation2 + $0x24] sm:$0xff]   ;;  %v324_v44 = vld [vmem:[%s7453_s29 + $0x4c] sm:$0xf]  ;;  %s6302_s15 = sshll.u32 %s8915_s24, 2 }
  0x25   : > { %6983 = vmatmul.mubr.msk.bf16.vlgmr.msra.gmra.mxu1 %vm529_vm2, %v7312_v33  ;;  %7033 = vmatpush3.bf16.msra.mxu0 %v1878_v31  ;;  %v7316_v39 = vld [vmem:[#allocation2 + $0x84] sm:$0xff]   ;;  %374 = vst.msk [vmem:[#allocation2 + $0x4c] sm:$0xf] %vm353_vm1, %v324_v44  ;;  %v348_v46 = vld [vmem:[%s7453_s29 + $0xac] sm:$0xf]  ;;  %s8777_s28 = scalar_lea.vmem %s8853_s3, %s6302_s15 }
  0x26   : > { %6999 = vmatpush3.bf16.msra.mxu1 %v1309_v34  ;;  %6970 = vmatprep.mubr.msk.bf16.mxu0 %vm529_vm2, %v7313_v36  ;;  %v7317_v40 = vld [vmem:[#allocation2 + $0x30] sm:$0xff]   ;;  %v323_v43 = vld [vmem:[%s7453_s29 + $0x48] sm:$0xf]  ;;  %v327_v48 = vld [vmem:[%s7453_s29 + $0x58] sm:$0xf] }
  0x27   : > { %6986 = vmatprep.mubr.msk.bf16.mxu1 %vm529_vm2, %v7314_v37  ;;  %7276 = vmatprep.subr.msk.bf16.mxu1 %vm578_vm0, %v6418_v32  ;;  %v7318_v41 = vld [vmem:[#allocation2 + $0x90] sm:$0xff]   ;;  %v347_v45 = vld [vmem:[%s7453_s29 + $0xa8] sm:$0xf]  ;;  %373 = vst.msk [vmem:[#allocation2 + $0x48] sm:$0xf] %vm353_vm1, %v323_v43 }
  0x28   : > { %7277 = vmatprep.subr.msk.bf16.mxu0 %vm578_vm0, %v7514_v35  ;;  %397 = vst.msk [vmem:[#allocation2 + $0xa8] sm:$0xf] %vm353_vm1, %v347_v45  ;;  %v326_v47 = vld [vmem:[%s7453_s29 + $0x54] sm:$0xf]  ;;  %398 = vst.msk [vmem:[#allocation2 + $0xac] sm:$0xf] %vm353_vm1, %v348_v46 }
  0x29   : > { %v7319_v49 = vld [vmem:[#allocation2 + $0x3c] sm:$0xff]   ;;  %376 = vst.msk [vmem:[#allocation2 + $0x54] sm:$0xf] %vm353_vm1, %v326_v47  ;;  %377 = vst.msk [vmem:[#allocation2 + $0x58] sm:$0xf] %vm353_vm1, %v327_v48 }
  0x2a   : > { %v350_v50 = vld [vmem:[%s7453_s29 + $0xb4] sm:$0xf]  ;;  %v351_v51 = vld [vmem:[%s7453_s29 + $0xb8] sm:$0xf]  ;;  %v307_v52 = vld [vmem:[%s7453_s29 + $0x8] sm:$0x1] }
  0x2b   : > { %400 = vst.msk [vmem:[#allocation2 + $0xb4] sm:$0xf] %vm353_vm1, %v350_v50  ;;  %401 = vst.msk [vmem:[#allocation2 + $0xb8] sm:$0xf] %vm353_vm1, %v351_v51  ;;  %v775_v53 = vld [vmem:[#allocation2] sm:$0xf] }
  0x2c   : > { %6971 = vmatmul.mubr.msk.bf16.gmra.mxu0 %vm529_vm2, %v7315_v38  ;;  %357 = vst.msk [vmem:[#allocation2 + $0x8] sm:$0x1] %vm356_vm5, %v307_v52  ;;  %v776_v54 = vld [vmem:[#allocation2 + $0x4] sm:$0xf]  ;;  %v1568_v55 = vld [vmem:[#allocation2] sm:$0xe] }
  0x2d   : > { %6987 = vmatmul.mubr.msk.bf16.gmra.mxu1 %vm529_vm2, %v7316_v39  ;;  %6974 = vmatprep.mubr.msk.bf16.mxu0 %vm529_vm2, %v7317_v40  ;;  %v827_v56 = vshrl.u32 %v775_v53, 16  ;;  %v830_v57 = vshll.u32 %v775_v53, 16  ;;  %v836_v58 = vshll.u32 %v776_v54, 16  ;;  %v840_v59 = vshrl.u32 %v776_v54, 16  ;;  %v1569_v60 = vld [vmem:[#allocation2 + $0x4] sm:$0xf] }
  0x2e   : > { %6990 = vmatprep.mubr.msk.bf16.mxu1 %vm529_vm2, %v7318_v41  ;;  %v7320_v61 = vld [vmem:[#allocation2 + $0x9c] sm:$0xff]   ;;  %v1669_v62 = vrot.slane %v1569_v60, 5  ;;  %v310_v63 = vld [vmem:[%s7453_s29 + $0x14] sm:$0x1]  ;;  %v778_v0 = vld [vmem:[#allocation2 + $0xc] sm:$0xf] }
  0x2f   : > { %v829_v2 = vrot.slane %v827_v56, 4  ;;  %v832_v3 = vrot.slane %v830_v57, 5  ;;  %v838_v4 = vrot.slane %v836_v58, 5  ;;  %v842_v5 = vrot.slane %v840_v59, 4  ;;  %360 = vst.msk [vmem:[#allocation2 + $0x14] sm:$0x1] %vm356_vm5, %v310_v63 }
  0x30   : > { %v779_v6 = vld [vmem:[#allocation2 + $0x10] sm:$0xf]  ;;  %v6369_v8 = vrot.slane %v1568_v55, 9  ;;  %v1671_v9 = vrot.slane %v1669_v62, 4  ;;  %v851_v10 = vshrl.u32 %v778_v0, 16  ;;  %v854_v11 = vshll.u32 %v778_v0, 16 }
  0x31   : > { %v7321_v12 = vld [vmem:[#allocation2 + $0x48] sm:$0xff]   ;;  %v833_v13 = vor.u32 %v832_v3, %v829_v2  ;;  %v843_v14 = vor.u32 %v842_v5, %v838_v4  ;;  %v860_v15 = vshll.u32 %v779_v6, 16  ;;  %v7323_v19 = vld [vmem:[#allocation2 + $0x54] sm:$0xff]   ;;  %v864_v31 = vshrl.u32 %v779_v6, 16  ;;  %v1572_v37 = vld [vmem:[#allocation2 + $0x10] sm:$0xf] }
  0x32   : > { %v1571_v16 = vld [vmem:[#allocation2 + $0xc] sm:$0xe]  ;;  %v853_v18 = vrot.slane %v851_v10, 4  ;;  %v7324_v21 = vld [vmem:[#allocation2 + $0xb4] sm:$0xff]   ;;  %v1670_v25 = vsel %vm7558_vm9, %v6369_v8, %v1669_v62  ;;  %v856_v26 = vrot.slane %v854_v11, 5  ;;  %v7572_v39 = vsel %vm578_vm0, %v7514_v35, 0 }
  0x33   : > { %v7322_v17 = vld [vmem:[#allocation2 + $0xa8] sm:$0xff]   ;;  %v834_v20 = vrot.slane %v833_v13, 4  ;;  %v844_v22 = vrot.slane %v843_v14, 4  ;;  %v862_v27 = vrot.slane %v860_v15, 5  ;;  %v6370_v32 = vrot.slane %v1571_v16, 9 }
  0x34   : > { %6975 = vmatmul.mubr.msk.bf16.gmra.mxu0 %vm529_vm2, %v7319_v49  ;;  %v777_v23 = vld [vmem:[#allocation2 + $0x8] sm:$0x1]  ;;  %v857_v34 = vor.u32 %v856_v26, %v853_v18  ;;  %v866_v43 = vrot.slane %v864_v31, 4  ;;  %v1676_v44 = vrot.slane %v1572_v37, 5  ;;  %v313_v45 = vld [vmem:[%s7453_s29 + $0x20] sm:$0x1] }
  0x35   : > { %6991 = vmatmul.mubr.msk.bf16.gmra.mxu1 %vm529_vm2, %v7320_v61  ;;  %6978 = vmatprep.mubr.msk.bf16.mxu0 %vm529_vm2, %v7321_v12  ;;  %v1570_v24 = vld [vmem:[#allocation2 + $0x8] sm:$0x1]  ;;  %v846_v28 = vshll.u32 %v777_v23, 16  ;;  %v839_v33 = vsel %vm7551_vm8, %v834_v20, %v838_v4  ;;  %363 = vst.msk [vmem:[#allocation2 + $0x20] sm:$0x1] %vm356_vm5, %v313_v45 }
  0x36   : > { %6994 = vmatprep.mubr.msk.bf16.mxu1 %vm529_vm2, %v7322_v17  ;;  %v1672_v29 = vrot.slane %v1570_v24, 5  ;;  %v780_v30 = vld [vmem:[#allocation2 + $0x14] sm:$0x1]  ;;  %v858_v47 = vrot.slane %v857_v34, 4  ;;  %v781_v50 = vld [vmem:[#allocation2 + $0x18] sm:$0xf]  ;;  %v867_v51 = vor.u32 %v866_v43, %v862_v27  ;;  %v1677_v52 = vsel %vm7558_vm9, %v6370_v32, %v1676_v44 }
  0x37   : > { %v870_v36 = vshll.u32 %v780_v30, 16  ;;  %v1573_v38 = vld [vmem:[#allocation2 + $0x14] sm:$0x1]  ;;  %v848_v40 = vrot.slane %v846_v28, 5  ;;  %v1678_v53 = vrot.slane %v1676_v44, 4  ;;  %v875_v58 = vshrl.u32 %v781_v50, 16 }
  0x38   : > { %v1673_v41 = vsel %vm7558_vm9, %v1671_v9, %v1672_v29  ;;  %v1679_v49 = vrot.slane %v1573_v38, 5  ;;  %v782_v54 = vld [vmem:[#allocation2 + $0x1c] sm:$0xf]  ;;  %v1574_v55 = vld [vmem:[#allocation2 + $0x18] sm:$0xe]  ;;  %v863_v57 = vsel %vm7551_vm8, %v858_v47, %v862_v27  ;;  %v878_v59 = vshll.u32 %v781_v50, 16 }
  0x39   : > { %v6386_v46 = vcombine.low %v1670_v25, %v1673_v41  ;;  %v872_v48 = vrot.slane %v870_v36, 5  ;;  %v849_v35 = vsel %vm7551_vm8, %v844_v22, %v848_v40  ;;  %v1575_v60 = vld [vmem:[#allocation2 + $0x1c] sm:$0xf]  ;;  %v316_v61 = vld [vmem:[%s7453_s29 + $0x2c] sm:$0x1]  ;;  %v868_v62 = vrot.slane %v867_v51, 4 }
  0x3a   : > { %v6337_v56 = vcombine.low %v839_v33, %v849_v35  ;;  %v1680_v63 = vsel %vm7558_vm9, %v1678_v53, %v1679_v49  ;;  %v884_v0 = vshll.u32 %v782_v54, 16  ;;  %v888_v2 = vshrl.u32 %v782_v54, 16  ;;  %366 = vst.msk [vmem:[#allocation2 + $0x2c] sm:$0x1] %vm356_vm5, %v316_v61  ;;  %v784_v3 = vld [vmem:[#allocation2 + $0x24] sm:$0xf] }
  0x3b   : > { %v6387_v4 = vcombine.low %v1677_v52, %v1680_v63  ;;  %v877_v5 = vrot.slane %v875_v58, 4  ;;  %v880_v6 = vrot.slane %v878_v59, 5  ;;  %v6371_v8 = vrot.slane %v1574_v55, 9  ;;  %v785_v9 = vld [vmem:[#allocation2 + $0x28] sm:$0xf] }
  0x3c   : > { %6979 = vmatmul.mubr.msk.bf16.gmra.mxu0 %vm529_vm2, %v7323_v19  ;;  %v873_v10 = vsel %vm7551_vm8, %v868_v62, %v872_v48  ;;  %v886_v11 = vrot.slane %v884_v0, 5  ;;  %v890_v12 = vrot.slane %v888_v2, 4  ;;  %v1683_v13 = vrot.slane %v1575_v60, 5  ;;  %v1577_v18 = vld [vmem:[#allocation2 + $0x24] sm:$0xe] }
  0x3d   : > { %6995 = vmatmul.mubr.msk.bf16.gmra.mxu1 %vm529_vm2, %v7324_v21  ;;  %7034 = vmatprep.mubr.msk.bf16.mxu0 %vm529_vm2, %v6386_v46  ;;  %v6338_v14 = vcombine.low %v863_v57, %v873_v10  ;;  %v881_v15 = vor.u32 %v880_v6, %v877_v5  ;;  %v899_v16 = vshrl.u32 %v784_v3, 16  ;;  %v902_v17 = vshll.u32 %v784_v3, 16  ;;  %v319_v19 = vld [vmem:[%s7453_s29 + $0x38] sm:$0x1]  ;;  %v783_v20 = vld [vmem:[#allocation2 + $0x20] sm:$0x1] }
  0x3e   : > { %7000 = vmatprep.mubr.msk.bf16.mxu1 %vm529_vm2, %v6337_v56  ;;  %v891_v21 = vor.u32 %v890_v12, %v886_v11  ;;  %v1576_v22 = vld [vmem:[#allocation2 + $0x20] sm:$0x1]  ;;  %v1684_v23 = vsel %vm7558_vm9, %v6371_v8, %v1683_v13  ;;  %v1685_v24 = vrot.slane %v1683_v13, 4  ;;  %v908_v25 = vshll.u32 %v785_v9, 16  ;;  %369 = vst.msk [vmem:[#allocation2 + $0x38] sm:$0x1] %vm356_vm5, %v319_v19 }
  0x3f   : > { %v882_v26 = vrot.slane %v881_v15, 4  ;;  %v894_v27 = vshll.u32 %v783_v20, 16  ;;  %v1686_v28 = vrot.slane %v1576_v22, 5  ;;  %v901_v29 = vrot.slane %v899_v16, 4  ;;  %v1578_v30 = vld [vmem:[#allocation2 + $0x28] sm:$0xf] }
  0x40   : > { %v892_v31 = vrot.slane %v891_v21, 4  ;;  %v904_v32 = vrot.slane %v902_v17, 5  ;;  %v910_v33 = vrot.slane %v908_v25, 5  ;;  %v912_v34 = vshrl.u32 %v785_v9, 16  ;;  %v787_v36 = vld [vmem:[#allocation2 + $0x30] sm:$0xf] }
  0x41   : > { %v887_v37 = vsel %vm7551_vm8, %v882_v26, %v886_v11  ;;  %v896_v38 = vrot.slane %v894_v27, 5  ;;  %v1687_v40 = vsel %vm7558_vm9, %v1685_v24, %v1686_v28  ;;  %v786_v41 = vld [vmem:[#allocation2 + $0x2c] sm:$0x1]  ;;  %v6372_v44 = vrot.slane %v1577_v18, 9  ;;  %v788_v48 = vld [vmem:[#allocation2 + $0x34] sm:$0xf] }
  0x42   : > { %v1579_v43 = vld [vmem:[#allocation2 + $0x2c] sm:$0x1]  ;;  %v6388_v45 = vcombine.low %v1684_v23, %v1687_v40  ;;  %v914_v46 = vrot.slane %v912_v34, 4  ;;  %v918_v47 = vshll.u32 %v786_v41, 16  ;;  %v923_v35 = vshrl.u32 %v787_v36, 16 }
  0x43   : > { %v897_v49 = vsel %vm7551_vm8, %v892_v31, %v896_v38  ;;  %v1693_v50 = vrot.slane %v1579_v43, 5  ;;  %v322_v51 = vld [vmem:[%s7453_s29 + $0x44] sm:$0x1]  ;;  %v1580_v56 = vld [vmem:[#allocation2 + $0x30] sm:$0xe]  ;;  %v926_v62 = vshll.u32 %v787_v36, 16 }
  0x44   : > { %7035 = vmatmul.mubr.msk.bf16.vlgmr.msra.gmra.mxu0 %vm529_vm2, %v6387_v4  ;;  %v6339_v52 = vcombine.low %v887_v37, %v897_v49  ;;  %v915_v54 = vor.u32 %v914_v46, %v910_v33  ;;  %v920_v55 = vrot.slane %v918_v47, 5  ;;  %v1581_v57 = vld [vmem:[#allocation2 + $0x34] sm:$0xf]  ;;  %372 = vst.msk [vmem:[#allocation2 + $0x44] sm:$0x1] %vm356_vm5, %v322_v51  ;;  %v925_v61 = vrot.slane %v923_v35, 4 }
  0x45   : > { %7001 = vmatmul.mubr.msk.bf16.vlgmr.msra.gmra.mxu1 %vm529_vm2, %v6338_v14  ;;  %7101 = vmatpush3.bf16.msra.mxu0 %v7572_v39  ;;  %v905_v39 = vor.u32 %v904_v32, %v901_v29  ;;  %v789_v60 = vld [vmem:[#allocation2 + $0x38] sm:$0x1]  ;;  %v932_v2 = vshll.u32 %v788_v48, 16  ;;  %v936_v3 = vshrl.u32 %v788_v48, 16  ;;  %v790_v4 = vld [vmem:[#allocation2 + $0x3c] sm:$0xf] }
  0x46   : > { %7067 = vmatpush3.bf16.msra.mxu1 %v7524_v42  ;;  %v1690_v42 = vrot.slane %v1578_v30, 5  ;;  %7038 = vmatprep.mubr.msk.bf16.mxu0 %vm529_vm2, %v6388_v45  ;;  %v916_v0 = vrot.slane %v915_v54, 4  ;;  %v928_v6 = vrot.slane %v926_v62, 5  ;;  %v942_v8 = vshll.u32 %v789_v60, 16  ;;  %v1582_v9 = vld [vmem:[#allocation2 + $0x38] sm:$0x1] }
  0x47   : > { %v906_v53 = vrot.slane %v905_v39, 4  ;;  %7004 = vmatprep.mubr.msk.bf16.mxu1 %vm529_vm2, %v6339_v52  ;;  %v6373_v10 = vrot.slane %v1580_v56, 9  ;;  %v934_v13 = vrot.slane %v932_v2, 5  ;;  %v938_v14 = vrot.slane %v936_v3, 4  ;;  %v791_v15 = vld [vmem:[#allocation2 + $0x40] sm:$0xf] }
  0x48   : > { %v1691_v58 = vsel %vm7558_vm9, %v6372_v44, %v1690_v42  ;;  %v1692_v59 = vrot.slane %v1690_v42, 4  ;;  %v921_v11 = vsel %vm7551_vm8, %v916_v0, %v920_v55  ;;  %v325_v16 = vld [vmem:[%s7453_s29 + $0x50] sm:$0x1]  ;;  %v929_v18 = vor.u32 %v928_v6, %v925_v61  ;;  %v1583_v25 = vld [vmem:[#allocation2 + $0x3c] sm:$0xe] }
  0x49   : > { %v911_v63 = vsel %vm7551_vm8, %v906_v53, %v910_v33  ;;  %v944_v19 = vrot.slane %v942_v8, 5  ;;  %v1697_v20 = vrot.slane %v1581_v57, 5  ;;  %375 = vst.msk [vmem:[#allocation2 + $0x50] sm:$0x1] %vm356_vm5, %v325_v16  ;;  %v939_v21 = vor.u32 %v938_v14, %v934_v13  ;;  %v1584_v26 = vld [vmem:[#allocation2 + $0x40] sm:$0xf] }
  0x4a   : > { %v1694_v5 = vsel %vm7558_vm9, %v1692_v59, %v1693_v50  ;;  %v6340_v17 = vcombine.low %v911_v63, %v921_v11  ;;  %v1700_v22 = vrot.slane %v1582_v9, 5  ;;  %v947_v23 = vshrl.u32 %v790_v4, 16  ;;  %v793_v37 = vld [vmem:[#allocation2 + $0x48] sm:$0xf]  ;;  %v328_v45 = vld [vmem:[%s7453_s29 + $0x5c] sm:$0x1] }
  0x4b   : > { %v6389_v12 = vcombine.low %v1691_v58, %v1694_v5  ;;  %v950_v24 = vshll.u32 %v790_v4, 16  ;;  %v930_v27 = vrot.slane %v929_v18, 4  ;;  %v1698_v28 = vsel %vm7558_vm9, %v6373_v10, %v1697_v20  ;;  %v792_v30 = vld [vmem:[#allocation2 + $0x44] sm:$0x1]  ;;  %v794_v49 = vld [vmem:[#allocation2 + $0x4c] sm:$0xf] }
  0x4c   : > { %v1699_v29 = vrot.slane %v1697_v20, 4  ;;  %v956_v31 = vshll.u32 %v791_v15, 16  ;;  %v940_v32 = vrot.slane %v939_v21, 4  ;;  %v949_v33 = vrot.slane %v947_v23, 4  ;;  %v1585_v44 = vld [vmem:[#allocation2 + $0x44] sm:$0x1] }
  0x4d   : > { %7039 = vmatmul.mubr.msk.bf16.gmra.mxu0 %vm529_vm2, %v6389_v12  ;;  %7005 = vmatmul.mubr.msk.bf16.gmra.mxu1 %vm529_vm2, %v6340_v17  ;;  %v952_v34 = vrot.slane %v950_v24, 5  ;;  %v960_v36 = vshrl.u32 %v791_v15, 16  ;;  %v935_v38 = vsel %vm7551_vm8, %v930_v27, %v934_v13  ;;  %v966_v43 = vshll.u32 %v792_v30, 16  ;;  %378 = vst.msk [vmem:[#allocation2 + $0x5c] sm:$0x1] %vm356_vm5, %v328_v45 }
  0x4e   : > { %v1701_v40 = vsel %vm7558_vm9, %v1699_v29, %v1700_v22  ;;  %v958_v41 = vrot.slane %v956_v31, 5  ;;  %v945_v39 = vsel %vm7551_vm8, %v940_v32, %v944_v19  ;;  %v6374_v35 = vrot.slane %v1583_v25, 9  ;;  %v1586_v52 = vld [vmem:[#allocation2 + $0x48] sm:$0xe]  ;;  %v1587_v58 = vld [vmem:[#allocation2 + $0x4c] sm:$0xf] }
  0x4f   : > { %v6390_v46 = vcombine.low %v1698_v28, %v1701_v40  ;;  %v953_v47 = vor.u32 %v952_v34, %v949_v33  ;;  %v962_v48 = vrot.slane %v960_v36, 4  ;;  %v6341_v42 = vcombine.low %v935_v38, %v945_v39  ;;  %v796_v63 = vld [vmem:[#allocation2 + $0x54] sm:$0xf]  ;;  %v331_v11 = vld [vmem:[%s7453_s29 + $0x68] sm:$0x1] }
  0x50   : > { %v968_v50 = vrot.slane %v966_v43, 5  ;;  %v1704_v51 = vrot.slane %v1584_v26, 5  ;;  %v1707_v55 = vrot.slane %v1585_v44, 5  ;;  %v795_v56 = vld [vmem:[#allocation2 + $0x50] sm:$0x1]  ;;  %v971_v57 = vshrl.u32 %v793_v37, 16 }
  0x51   : > { %7042 = vmatprep.mubr.msk.bf16.mxu0 %vm529_vm2, %v6390_v46  ;;  %v954_v53 = vrot.slane %v953_v47, 4  ;;  %v963_v54 = vor.u32 %v962_v48, %v958_v41  ;;  %7008 = vmatprep.mubr.msk.bf16.mxu1 %vm529_vm2, %v6341_v42  ;;  %v974_v61 = vshll.u32 %v793_v37, 16  ;;  %v980_v62 = vshll.u32 %v794_v49, 16  ;;  %v1588_v5 = vld [vmem:[#allocation2 + $0x50] sm:$0x1] }
  0x52   : > { %v1705_v59 = vsel %vm7558_vm9, %v6374_v35, %v1704_v51  ;;  %v1706_v60 = vrot.slane %v1704_v51, 4  ;;  %v973_v3 = vrot.slane %v971_v57, 4  ;;  %v984_v4 = vshrl.u32 %v794_v49, 16  ;;  %v797_v16 = vld [vmem:[#allocation2 + $0x58] sm:$0xf] }
  0x53   : > { %v959_v0 = vsel %vm7551_vm8, %v954_v53, %v958_v41  ;;  %v964_v2 = vrot.slane %v963_v54, 4  ;;  %v976_v8 = vrot.slane %v974_v61, 5  ;;  %v982_v9 = vrot.slane %v980_v62, 5  ;;  %381 = vst.msk [vmem:[#allocation2 + $0x68] sm:$0x1] %vm356_vm5, %v331_v11 }
  0x54   : > { %v1708_v6 = vsel %vm7558_vm9, %v1706_v60, %v1707_v55  ;;  %v990_v10 = vshll.u32 %v795_v56, 16  ;;  %v986_v14 = vrot.slane %v984_v4, 4  ;;  %v6375_v15 = vrot.slane %v1586_v52, 9  ;;  %v798_v23 = vld [vmem:[#allocation2 + $0x5c] sm:$0x1] }
  0x55   : > { %v969_v12 = vsel %vm7551_vm8, %v964_v2, %v968_v50  ;;  %v6391_v13 = vcombine.low %v1705_v59, %v1708_v6  ;;  %v977_v18 = vor.u32 %v976_v8, %v973_v3  ;;  %v1711_v20 = vrot.slane %v1587_v58, 5  ;;  %v1589_v26 = vld [vmem:[#allocation2 + $0x54] sm:$0xe]  ;;  %v1590_v31 = vld [vmem:[#allocation2 + $0x58] sm:$0xf] }
  0x56   : > { %v6342_v17 = vcombine.low %v959_v0, %v969_v12  ;;  %v992_v19 = vrot.slane %v990_v10, 5  ;;  %v987_v21 = vor.u32 %v986_v14, %v982_v9  ;;  %v1714_v22 = vrot.slane %v1588_v5, 5  ;;  %v334_v37 = vld [vmem:[%s7453_s29 + $0x74] sm:$0x1]  ;;  %v1591_v44 = vld [vmem:[#allocation2 + $0x5c] sm:$0x1] }
  0x57   : > { %7043 = vmatmul.mubr.msk.bf16.gmra.mxu0 %vm529_vm2, %v6391_v13  ;;  %v995_v24 = vshrl.u32 %v796_v63, 16  ;;  %v998_v25 = vshll.u32 %v796_v63, 16  ;;  %v978_v27 = vrot.slane %v977_v18, 4  ;;  %v1712_v28 = vsel %vm7558_vm9, %v6375_v15, %v1711_v20  ;;  %v799_v45 = vld [vmem:[#allocation2 + $0x60] sm:$0xf] }
  0x58   : > { %7009 = vmatmul.mubr.msk.bf16.gmra.mxu1 %vm529_vm2, %v6342_v17  ;;  %v1713_v29 = vrot.slane %v1711_v20, 4  ;;  %v1004_v30 = vshll.u32 %v797_v16, 16  ;;  %v988_v32 = vrot.slane %v987_v21, 4  ;;  %v1008_v36 = vshrl.u32 %v797_v16, 16  ;;  %384 = vst.msk [vmem:[#allocation2 + $0x74] sm:$0x1] %vm356_vm5, %v334_v37 }
  0x59   : > { %v997_v33 = vrot.slane %v995_v24, 4  ;;  %v1000_v34 = vrot.slane %v998_v25, 5  ;;  %v983_v38 = vsel %vm7551_vm8, %v978_v27, %v982_v9  ;;  %v1014_v43 = vshll.u32 %v798_v23, 16  ;;  %v800_v49 = vld [vmem:[#allocation2 + $0x64] sm:$0xf] }
  0x5a   : > { %v1715_v40 = vsel %vm7558_vm9, %v1713_v29, %v1714_v22  ;;  %v1006_v41 = vrot.slane %v1004_v30, 5  ;;  %v993_v39 = vsel %vm7551_vm8, %v988_v32, %v992_v19  ;;  %v1010_v48 = vrot.slane %v1008_v36, 4  ;;  %v1592_v52 = vld [vmem:[#allocation2 + $0x60] sm:$0xe]  ;;  %v801_v56 = vld [vmem:[#allocation2 + $0x68] sm:$0x1] }
  0x5b   : > { %v6392_v46 = vcombine.low %v1712_v28, %v1715_v40  ;;  %v1001_v47 = vor.u32 %v1000_v34, %v997_v33  ;;  %v6343_v42 = vcombine.low %v983_v38, %v993_v39  ;;  %v1016_v50 = vrot.slane %v1014_v43, 5  ;;  %v1593_v58 = vld [vmem:[#allocation2 + $0x64] sm:$0xf]  ;;  %v337_v63 = vld [vmem:[%s7453_s29 + $0x80] sm:$0x1] }
  0x5c   : > { %v6376_v35 = vrot.slane %v1589_v26, 9  ;;  %v1718_v51 = vrot.slane %v1590_v31, 5  ;;  %v1011_v54 = vor.u32 %v1010_v48, %v1006_v41  ;;  %v1721_v55 = vrot.slane %v1591_v44, 5  ;;  %v802_v5 = vld [vmem:[#allocation2 + $0x6c] sm:$0xf] }
  0x5d   : > { %7046 = vmatprep.mubr.msk.bf16.mxu0 %vm529_vm2, %v6392_v46  ;;  %v1002_v53 = vrot.slane %v1001_v47, 4  ;;  %v1019_v57 = vshrl.u32 %v799_v45, 16  ;;  %7012 = vmatprep.mubr.msk.bf16.mxu1 %vm529_vm2, %v6343_v42  ;;  %v1022_v61 = vshll.u32 %v799_v45, 16  ;;  %v1028_v62 = vshll.u32 %v800_v49, 16  ;;  %387 = vst.msk [vmem:[#allocation2 + $0x80] sm:$0x1] %vm356_vm5, %v337_v63 }
  0x5e   : > { %v1719_v59 = vsel %vm7558_vm9, %v6376_v35, %v1718_v51  ;;  %v1720_v60 = vrot.slane %v1718_v51, 4  ;;  %v1012_v2 = vrot.slane %v1011_v54, 4  ;;  %v1032_v4 = vshrl.u32 %v800_v49, 16  ;;  %v1594_v11 = vld [vmem:[#allocation2 + $0x68] sm:$0x1] }
  0x5f   : > { %v1007_v0 = vsel %vm7551_vm8, %v1002_v53, %v1006_v41  ;;  %v1021_v3 = vrot.slane %v1019_v57, 4  ;;  %v1024_v8 = vrot.slane %v1022_v61, 5  ;;  %v1030_v9 = vrot.slane %v1028_v62, 5  ;;  %v803_v16 = vld [vmem:[#allocation2 + $0x70] sm:$0xf] }
  0x60   : > { %v1722_v6 = vsel %vm7558_vm9, %v1720_v60, %v1721_v55  ;;  %v1038_v10 = vshll.u32 %v801_v56, 16  ;;  %v1017_v12 = vsel %vm7551_vm8, %v1012_v2, %v1016_v50  ;;  %v1034_v14 = vrot.slane %v1032_v4, 4  ;;  %v804_v21 = vld [vmem:[#allocation2 + $0x74] sm:$0x1]  ;;  %v340_v26 = vld [vmem:[%s7453_s29 + $0x8c] sm:$0x1] }
  0x61   : > { %v6393_v13 = vcombine.low %v1719_v59, %v1722_v6  ;;  %v6377_v15 = vrot.slane %v1592_v52, 9  ;;  %v6344_v17 = vcombine.low %v1007_v0, %v1017_v12  ;;  %v1025_v18 = vor.u32 %v1024_v8, %v1021_v3  ;;  %v1595_v31 = vld [vmem:[#allocation2 + $0x6c] sm:$0xe]  ;;  %390 = vst.msk [vmem:[#allocation2 + $0x8c] sm:$0x1] %vm356_vm5, %v340_v26 }
  0x62   : > { %v1040_v19 = vrot.slane %v1038_v10, 5  ;;  %v1725_v20 = vrot.slane %v1593_v58, 5  ;;  %v1035_v22 = vor.u32 %v1034_v14, %v1030_v9  ;;  %v1728_v23 = vrot.slane %v1594_v11, 5  ;;  %v1596_v37 = vld [vmem:[#allocation2 + $0x70] sm:$0xf] }
  0x63   : > { %7047 = vmatmul.mubr.msk.bf16.gmra.mxu0 %vm529_vm2, %v6393_v13  ;;  %v1043_v24 = vshrl.u32 %v802_v5, 16  ;;  %v1046_v25 = vshll.u32 %v802_v5, 16  ;;  %7013 = vmatmul.mubr.msk.bf16.gmra.mxu1 %vm529_vm2, %v6344_v17  ;;  %v1026_v27 = vrot.slane %v1025_v18, 4  ;;  %v1052_v30 = vshll.u32 %v803_v16, 16  ;;  %v1597_v44 = vld [vmem:[#allocation2 + $0x74] sm:$0x1] }
  0x64   : > { %v1726_v28 = vsel %vm7558_vm9, %v6377_v15, %v1725_v20  ;;  %v1727_v29 = vrot.slane %v1725_v20, 4  ;;  %v1036_v32 = vrot.slane %v1035_v22, 4  ;;  %v1056_v36 = vshrl.u32 %v803_v16, 16  ;;  %v805_v45 = vld [vmem:[#allocation2 + $0x78] sm:$0xf] }
  0x65   : > { %v1045_v33 = vrot.slane %v1043_v24, 4  ;;  %v1048_v34 = vrot.slane %v1046_v25, 5  ;;  %v1031_v38 = vsel %vm7551_vm8, %v1026_v27, %v1030_v9  ;;  %v1054_v41 = vrot.slane %v1052_v30, 5  ;;  %v806_v49 = vld [vmem:[#allocation2 + $0x7c] sm:$0xf] }
  0x66   : > { %v1729_v40 = vsel %vm7558_vm9, %v1727_v29, %v1728_v23  ;;  %v1062_v43 = vshll.u32 %v804_v21, 16  ;;  %v1041_v39 = vsel %vm7551_vm8, %v1036_v32, %v1040_v19  ;;  %v1058_v48 = vrot.slane %v1056_v36, 4  ;;  %v1598_v52 = vld [vmem:[#allocation2 + $0x78] sm:$0xe]  ;;  %v343_v53 = vld [vmem:[%s7453_s29 + $0x98] sm:$0x1] }
  0x67   : > { %v6394_v46 = vcombine.low %v1726_v28, %v1729_v40  ;;  %v1049_v47 = vor.u32 %v1048_v34, %v1045_v33  ;;  %v6345_v42 = vcombine.low %v1031_v38, %v1041_v39  ;;  %v6378_v35 = vrot.slane %v1595_v31, 9  ;;  %v807_v57 = vld [vmem:[#allocation2 + $0x80] sm:$0x1]  ;;  %393 = vst.msk [vmem:[#allocation2 + $0x98] sm:$0x1] %vm356_vm5, %v343_v53 }
  0x68   : > { %v1064_v50 = vrot.slane %v1062_v43, 5  ;;  %v1732_v51 = vrot.slane %v1596_v37, 5  ;;  %v1059_v55 = vor.u32 %v1058_v48, %v1054_v41  ;;  %v1735_v56 = vrot.slane %v1597_v44, 5  ;;  %v1599_v63 = vld [vmem:[#allocation2 + $0x7c] sm:$0xf] }
  0x69   : > { %7050 = vmatprep.mubr.msk.bf16.mxu0 %vm529_vm2, %v6394_v46  ;;  %v1050_v54 = vrot.slane %v1049_v47, 4  ;;  %v1067_v58 = vshrl.u32 %v805_v45, 16  ;;  %7016 = vmatprep.mubr.msk.bf16.mxu1 %vm529_vm2, %v6345_v42  ;;  %v1070_v61 = vshll.u32 %v805_v45, 16  ;;  %v1076_v62 = vshll.u32 %v806_v49, 16  ;;  %v808_v5 = vld [vmem:[#allocation2 + $0x84] sm:$0xf] }
  0x6a   : > { %v1733_v59 = vsel %vm7558_vm9, %v6378_v35, %v1732_v51  ;;  %v1734_v60 = vrot.slane %v1732_v51, 4  ;;  %v1060_v2 = vrot.slane %v1059_v55, 4  ;;  %v1080_v4 = vshrl.u32 %v806_v49, 16  ;;  %v1600_v11 = vld [vmem:[#allocation2 + $0x80] sm:$0x1] }
  0x6b   : > { %v1055_v0 = vsel %vm7551_vm8, %v1050_v54, %v1054_v41  ;;  %v1069_v3 = vrot.slane %v1067_v58, 4  ;;  %v1072_v8 = vrot.slane %v1070_v61, 5  ;;  %v1078_v9 = vrot.slane %v1076_v62, 5  ;;  %v809_v16 = vld [vmem:[#allocation2 + $0x88] sm:$0xf] }
  0x6c   : > { %v1736_v6 = vsel %vm7558_vm9, %v1734_v60, %v1735_v56  ;;  %v1086_v10 = vshll.u32 %v807_v57, 16  ;;  %v1065_v12 = vsel %vm7551_vm8, %v1060_v2, %v1064_v50  ;;  %v1082_v14 = vrot.slane %v1080_v4, 4  ;;  %v346_v21 = vld [vmem:[%s7453_s29 + $0xa4] sm:$0x1]  ;;  %v810_v24 = vld [vmem:[#allocation2 + $0x8c] sm:$0x1] }
  0x6d   : > { %v6395_v13 = vcombine.low %v1733_v59, %v1736_v6  ;;  %v6379_v15 = vrot.slane %v1598_v52, 9  ;;  %v6346_v17 = vcombine.low %v1055_v0, %v1065_v12  ;;  %v1073_v18 = vor.u32 %v1072_v8, %v1069_v3  ;;  %396 = vst.msk [vmem:[#allocation2 + $0xa4] sm:$0x1] %vm356_vm5, %v346_v21  ;;  %v1601_v31 = vld [vmem:[#allocation2 + $0x84] sm:$0xe] }
  0x6e   : > { %v1088_v19 = vrot.slane %v1086_v10, 5  ;;  %v1739_v20 = vrot.slane %v1599_v63, 5  ;;  %v1083_v22 = vor.u32 %v1082_v14, %v1078_v9  ;;  %v1742_v23 = vrot.slane %v1600_v11, 5  ;;  %v1602_v37 = vld [vmem:[#allocation2 + $0x88] sm:$0xf] }
  0x6f   : > { %7051 = vmatmul.mubr.msk.bf16.gmra.mxu0 %vm529_vm2, %v6395_v13  ;;  %v1091_v25 = vshrl.u32 %v808_v5, 16  ;;  %v1094_v26 = vshll.u32 %v808_v5, 16  ;;  %7017 = vmatmul.mubr.msk.bf16.gmra.mxu1 %vm529_vm2, %v6346_v17  ;;  %v1074_v27 = vrot.slane %v1073_v18, 4  ;;  %v1100_v30 = vshll.u32 %v809_v16, 16  ;;  %v1603_v44 = vld [vmem:[#allocation2 + $0x8c] sm:$0x1] }
  0x70   : > { %v1740_v28 = vsel %vm7558_vm9, %v6379_v15, %v1739_v20  ;;  %v1741_v29 = vrot.slane %v1739_v20, 4  ;;  %v1084_v32 = vrot.slane %v1083_v22, 4  ;;  %v1104_v36 = vshrl.u32 %v809_v16, 16  ;;  %v811_v45 = vld [vmem:[#allocation2 + $0x90] sm:$0xf] }
  0x71   : > { %v1093_v33 = vrot.slane %v1091_v25, 4  ;;  %v1096_v34 = vrot.slane %v1094_v26, 5  ;;  %v1079_v38 = vsel %vm7551_vm8, %v1074_v27, %v1078_v9  ;;  %v1102_v41 = vrot.slane %v1100_v30, 5  ;;  %v812_v49 = vld [vmem:[#allocation2 + $0x94] sm:$0xf] }
  0x72   : > { %v1743_v40 = vsel %vm7558_vm9, %v1741_v29, %v1742_v23  ;;  %v1110_v43 = vshll.u32 %v810_v24, 16  ;;  %v1089_v39 = vsel %vm7551_vm8, %v1084_v32, %v1088_v19  ;;  %v1106_v48 = vrot.slane %v1104_v36, 4  ;;  %v349_v42 = vld [vmem:[%s7453_s29 + $0xb0] sm:$0x1]  ;;  %v1604_v53 = vld [vmem:[#allocation2 + $0x90] sm:$0xe] }
  0x73   : > { %v6396_v46 = vcombine.low %v1740_v28, %v1743_v40  ;;  %v1097_v47 = vor.u32 %v1096_v34, %v1093_v33  ;;  %v6347_v50 = vcombine.low %v1079_v38, %v1089_v39  ;;  %v6380_v51 = vrot.slane %v1601_v31, 9  ;;  %399 = vst.msk [vmem:[#allocation2 + $0xb0] sm:$0x1] %vm356_vm5, %v349_v42  ;;  %v813_v57 = vld [vmem:[#allocation2 + $0x98] sm:$0x1] }
  0x74   : > { %v1112_v35 = vrot.slane %v1110_v43, 5  ;;  %v1746_v52 = vrot.slane %v1602_v37, 5  ;;  %v1107_v55 = vor.u32 %v1106_v48, %v1102_v41  ;;  %v1749_v56 = vrot.slane %v1603_v44, 5  ;;  %v1605_v63 = vld [vmem:[#allocation2 + $0x94] sm:$0xf] }
  0x75   : > { %7054 = vmatprep.mubr.msk.bf16.mxu0 %vm529_vm2, %v6396_v46  ;;  %v1098_v54 = vrot.slane %v1097_v47, 4  ;;  %v1115_v58 = vshrl.u32 %v811_v45, 16  ;;  %7020 = vmatprep.mubr.msk.bf16.mxu1 %vm529_vm2, %v6347_v50  ;;  %v1118_v61 = vshll.u32 %v811_v45, 16  ;;  %v1124_v62 = vshll.u32 %v812_v49, 16  ;;  %v814_v5 = vld [vmem:[#allocation2 + $0x9c] sm:$0xf] }
  0x76   : > { %v1747_v59 = vsel %vm7558_vm9, %v6380_v51, %v1746_v52  ;;  %v1748_v60 = vrot.slane %v1746_v52, 4  ;;  %v1108_v2 = vrot.slane %v1107_v55, 4  ;;  %v1128_v4 = vshrl.u32 %v812_v49, 16  ;;  %v1606_v11 = vld [vmem:[#allocation2 + $0x98] sm:$0x1] }
  0x77   : > { %v1103_v0 = vsel %vm7551_vm8, %v1098_v54, %v1102_v41  ;;  %v1117_v3 = vrot.slane %v1115_v58, 4  ;;  %v1120_v8 = vrot.slane %v1118_v61, 5  ;;  %v1126_v9 = vrot.slane %v1124_v62, 5  ;;  %v815_v16 = vld [vmem:[#allocation2 + $0xa0] sm:$0xf] }
  0x78   : > { %v1750_v6 = vsel %vm7558_vm9, %v1748_v60, %v1749_v56  ;;  %v1134_v10 = vshll.u32 %v813_v57, 16  ;;  %v1113_v12 = vsel %vm7551_vm8, %v1108_v2, %v1112_v35  ;;  %v1130_v14 = vrot.slane %v1128_v4, 4  ;;  %v352_v17 = vld [vmem:[%s7453_s29 + $0xbc] sm:$0x1]  ;;  %v816_v24 = vld [vmem:[#allocation2 + $0xa4] sm:$0x1] }
  0x79   : > { %v6397_v13 = vcombine.low %v1747_v59, %v1750_v6  ;;  %v6381_v15 = vrot.slane %v1604_v53, 9  ;;  %v6348_v18 = vcombine.low %v1103_v0, %v1113_v12  ;;  %v1121_v19 = vor.u32 %v1120_v8, %v1117_v3  ;;  %402 = vst.msk [vmem:[#allocation2 + $0xbc] sm:$0x1] %vm356_vm5, %v352_v17  ;;  %v1607_v27 = vld [vmem:[#allocation2 + $0x9c] sm:$0xe]  ;;  %s6303_s29 = sshll.u32 %s7442_s25, 3 }
  0x7a   : > { %v1136_v20 = vrot.slane %v1134_v10, 5  ;;  %v1753_v21 = vrot.slane %v1605_v63, 5  ;;  %v1131_v22 = vor.u32 %v1130_v14, %v1126_v9  ;;  %v1756_v23 = vrot.slane %v1606_v11, 5  ;;  %v1608_v28 = vld [vmem:[#allocation2 + $0xa0] sm:$0xf]  ;;  %s302_s6 = scalar_lea.vmem %s8854_s4, %s6303_s29 }
  0x7b   : > { %7055 = vmatmul.mubr.msk.bf16.gmra.mxu0 %vm529_vm2, %v6397_v13  ;;  %v1139_v25 = vshrl.u32 %v814_v5, 16  ;;  %v1142_v26 = vshll.u32 %v814_v5, 16  ;;  %7021 = vmatmul.mubr.msk.bf16.gmra.mxu1 %vm529_vm2, %v6348_v18  ;;  %v1122_v29 = vrot.slane %v1121_v19, 4  ;;  %v1148_v32 = vshll.u32 %v815_v16, 16  ;;  %v817_v33 = vld [vmem:[#allocation2 + $0xa8] sm:$0xf] }
  0x7c   : > { %v1754_v30 = vsel %vm7558_vm9, %v6381_v15, %v1753_v21  ;;  %v1755_v31 = vrot.slane %v1753_v21, 4  ;;  %v1132_v34 = vrot.slane %v1131_v22, 4  ;;  %v1152_v38 = vshrl.u32 %v815_v16, 16  ;;  %v1609_v40 = vld [vmem:[#allocation2 + $0xa4] sm:$0x1] }
  0x7d   : > { %v1141_v36 = vrot.slane %v1139_v25, 4  ;;  %v1144_v37 = vrot.slane %v1142_v26, 5  ;;  %v1127_v41 = vsel %vm7551_vm8, %v1122_v29, %v1126_v9  ;;  %v1150_v44 = vrot.slane %v1148_v32, 5  ;;  %v818_v49 = vld [vmem:[#allocation2 + $0xac] sm:$0xf] }
  0x7e   : > { %v1757_v43 = vsel %vm7558_vm9, %v1755_v31, %v1756_v23  ;;  %v1158_v45 = vshll.u32 %v816_v24, 16  ;;  %v1137_v39 = vsel %vm7551_vm8, %v1132_v34, %v1136_v20  ;;  %v1154_v48 = vrot.slane %v1152_v38, 4  ;;  %v1610_v52 = vld [vmem:[#allocation2 + $0xa8] sm:$0xe]  ;;  %v819_v56 = vld [vmem:[#allocation2 + $0xb0] sm:$0x1] }
  0x7f   : > { %v6398_v46 = vcombine.low %v1754_v30, %v1757_v43  ;;  %v1145_v47 = vor.u32 %v1144_v37, %v1141_v36  ;;  %v6349_v42 = vcombine.low %v1127_v41, %v1137_v39  ;;  %v6382_v35 = vrot.slane %v1607_v27, 9  ;;  %v1611_v58 = vld [vmem:[#allocation2 + $0xac] sm:$0xf]  ;;  %v1612_v63 = vld [vmem:[#allocation2 + $0xb0] sm:$0x1] }
  0x80   : > { %v1160_v50 = vrot.slane %v1158_v45, 5  ;;  %v1760_v51 = vrot.slane %v1608_v28, 5  ;;  %v1155_v54 = vor.u32 %v1154_v48, %v1150_v44  ;;  %v1763_v55 = vrot.slane %v1609_v40, 5  ;;  %v820_v0 = vld [vmem:[#allocation2 + $0xb4] sm:$0xf] }
  0x81   : > { %7058 = vmatprep.mubr.msk.bf16.mxu0 %vm529_vm2, %v6398_v46  ;;  %v1146_v53 = vrot.slane %v1145_v47, 4  ;;  %v1163_v57 = vshrl.u32 %v817_v33, 16  ;;  %7024 = vmatprep.mubr.msk.bf16.mxu1 %vm529_vm2, %v6349_v42  ;;  %v1166_v61 = vshll.u32 %v817_v33, 16  ;;  %v1172_v62 = vshll.u32 %v818_v49, 16  ;;  %v7739_v6 = vld [vmem:[%s8852_s2 + $0xa] sm:$0x3] }
  0x82   : > { %v1761_v59 = vsel %vm7558_vm9, %v6382_v35, %v1760_v51  ;;  %v1762_v60 = vrot.slane %v1760_v51, 4  ;;  %v1156_v3 = vrot.slane %v1155_v54, 4  ;;  %v1176_v5 = vshrl.u32 %v818_v49, 16  ;;  %7278 = vmatprep.subr.msk.bf16.mxu1 %vm578_vm0, %v7739_v6  ;;  %v821_v16 = vld [vmem:[#allocation2 + $0xb8] sm:$0xf] }
  0x83   : > { %v1151_v2 = vsel %vm7551_vm8, %v1146_v53, %v1150_v44  ;;  %v1165_v4 = vrot.slane %v1163_v57, 4  ;;  %v1168_v9 = vrot.slane %v1166_v61, 5  ;;  %v1174_v10 = vrot.slane %v1172_v62, 5  ;;  %v822_v21 = vld [vmem:[#allocation2 + $0xbc] sm:$0x1] }
  0x84   : > { %v1764_v8 = vsel %vm7558_vm9, %v1762_v60, %v1763_v55  ;;  %v1182_v11 = vshll.u32 %v819_v56, 16  ;;  %v1161_v12 = vsel %vm7551_vm8, %v1156_v3, %v1160_v50  ;;  %v1178_v14 = vrot.slane %v1176_v5, 4  ;;  %v1613_v26 = vld [vmem:[#allocation2 + $0xb4] sm:$0xe]  ;;  %v1614_v27 = vld [vmem:[#allocation2 + $0xb8] sm:$0xf] }
  0x85   : > { %v6399_v13 = vcombine.low %v1761_v59, %v1764_v8  ;;  %v6383_v15 = vrot.slane %v1610_v52, 9  ;;  %v6350_v17 = vcombine.low %v1151_v2, %v1161_v12  ;;  %v1169_v18 = vor.u32 %v1168_v9, %v1165_v4  ;;  %v7751_v28 = vld [vmem:[%s8852_s2 + $0xc] sm:$0x3]  ;;  %v1615_v44 = vld [vmem:[#allocation2 + $0xbc] sm:$0x1] }
  0x86   : > { %v1184_v19 = vrot.slane %v1182_v11, 5  ;;  %v1767_v20 = vrot.slane %v1611_v58, 5  ;;  %v1179_v22 = vor.u32 %v1178_v14, %v1174_v10  ;;  %v1770_v23 = vrot.slane %v1612_v63, 5  ;;  %7279 = vmatprep.subr.msk.bf16.mxu0 %vm578_vm0, %v7751_v28  ;;  %v2560_v45 = vld [vmem:[#allocation2 + $0xc] sm:$0xf] }
  0x87   : > { %7059 = vmatmul.mubr.msk.bf16.gmra.mxu0 %vm529_vm2, %v6399_v13  ;;  %v1187_v24 = vshrl.u32 %v820_v0, 16  ;;  %v1190_v25 = vshll.u32 %v820_v0, 16  ;;  %7025 = vmatmul.mubr.msk.bf16.gmra.mxu1 %vm529_vm2, %v6350_v17  ;;  %v1170_v29 = vrot.slane %v1169_v18, 4  ;;  %v1196_v32 = vshll.u32 %v821_v16, 16  ;;  %v2561_v49 = vld [vmem:[#allocation2 + $0x10] sm:$0xf] }
  0x88   : > { %v1768_v30 = vsel %vm7558_vm9, %v6383_v15, %v1767_v20  ;;  %v1769_v31 = vrot.slane %v1767_v20, 4  ;;  %v1180_v33 = vrot.slane %v1179_v22, 4  ;;  %v1200_v37 = vshrl.u32 %v821_v16, 16  ;;  %v2562_v55 = vld [vmem:[#allocation2 + $0x14] sm:$0x1]  ;;  %v7325_v5 = vld [vmem:[#allocation2 + $0xc] sm:$0xff]  }
  0x89   : > { %v1189_v34 = vrot.slane %v1187_v24, 4  ;;  %v1192_v36 = vrot.slane %v1190_v25, 5  ;;  %v1175_v38 = vsel %vm7551_vm8, %v1170_v29, %v1174_v10  ;;  %v1198_v41 = vrot.slane %v1196_v32, 5  ;;  %v2563_v61 = vld [vmem:[#allocation2 + $0x18] sm:$0xf] }
  0x8a   : > { %v1771_v40 = vsel %vm7558_vm9, %v1769_v31, %v1770_v23  ;;  %v1206_v43 = vshll.u32 %v822_v21, 16  ;;  %v1185_v39 = vsel %vm7551_vm8, %v1180_v33, %v1184_v19  ;;  %v1202_v48 = vrot.slane %v1200_v37, 4  ;;  %v2564_v3 = vld [vmem:[#allocation2 + $0x1c] sm:$0xf]  ;;  %v2565_v14 = vld [vmem:[#allocation2 + $0x20] sm:$0x1] }
  0x8b   : > { %v6400_v46 = vcombine.low %v1768_v30, %v1771_v40  ;;  %v1193_v47 = vor.u32 %v1192_v36, %v1189_v34  ;;  %v6351_v42 = vcombine.low %v1175_v38, %v1185_v39  ;;  %v6384_v35 = vrot.slane %v1613_v26, 9  ;;  %v2566_v20 = vld [vmem:[#allocation2 + $0x24] sm:$0xf]  ;;  %v2567_v21 = vld [vmem:[#allocation2 + $0x28] sm:$0xf]  ;;  %v7326_v37 = vld [vmem:[#allocation2 + $0x18] sm:$0xff]  }
  0x8c   : > { %v1208_v50 = vrot.slane %v1206_v43, 5  ;;  %v1774_v51 = vrot.slane %v1614_v27, 5  ;;  %v1203_v53 = vor.u32 %v1202_v48, %v1198_v41  ;;  %v1777_v54 = vrot.slane %v1615_v44, 5  ;;  %v2569_v44 = vld [vmem:[#allocation2 + $0x30] sm:$0xf] }
  0x8d   : > { %7062 = vmatprep.mubr.msk.bf16.mxu0 %vm529_vm2, %v6400_v46  ;;  %v1194_v52 = vrot.slane %v1193_v47, 4  ;;  %v2609_v56 = vshrl.u32 %v2560_v45, 16  ;;  %7028 = vmatprep.mubr.msk.bf16.mxu1 %vm529_vm2, %v6351_v42  ;;  %v2612_v59 = vshll.u32 %v2560_v45, 16  ;;  %v2618_v60 = vshll.u32 %v2561_v49, 16 }
  0x8e   : > { %v1775_v57 = vsel %vm7558_vm9, %v6384_v35, %v1774_v51  ;;  %v1776_v58 = vrot.slane %v1774_v51, 4  ;;  %v1204_v63 = vrot.slane %v1203_v53, 4  ;;  %v2622_v2 = vshrl.u32 %v2561_v49, 16  ;;  %v7327_v49 = vld [vmem:[#allocation2 + $0x24] sm:$0xff]  }
  0x8f   : > { %v1199_v62 = vsel %vm7551_vm8, %v1194_v52, %v1198_v41  ;;  %v2611_v0 = vrot.slane %v2609_v56, 4  ;;  %v2614_v8 = vrot.slane %v2612_v59, 5  ;;  %v2620_v9 = vrot.slane %v2618_v60, 5  ;;  %v2568_v41 = vld [vmem:[#allocation2 + $0x2c] sm:$0x1] }
  0x90   : > { %v1778_v4 = vsel %vm7558_vm9, %v1776_v58, %v1777_v54  ;;  %v2628_v10 = vshll.u32 %v2562_v55, 16  ;;  %v1209_v11 = vsel %vm7551_vm8, %v1204_v63, %v1208_v50  ;;  %v2624_v13 = vrot.slane %v2622_v2, 4  ;;  %v2570_v50 = vld [vmem:[#allocation2 + $0x34] sm:$0xf]  ;;  %v2571_v54 = vld [vmem:[#allocation2 + $0x38] sm:$0x1] }
  0x91   : > { %v6401_v12 = vcombine.low %v1775_v57, %v1778_v4  ;;  %v2633_v15 = vshrl.u32 %v2563_v61, 16  ;;  %v6352_v16 = vcombine.low %v1199_v62, %v1209_v11  ;;  %v2615_v17 = vor.u32 %v2614_v8, %v2611_v0  ;;  %v2572_v59 = vld [vmem:[#allocation2 + $0x3c] sm:$0xf] }
  0x92   : > { %v2630_v18 = vrot.slane %v2628_v10, 5  ;;  %v2636_v19 = vshll.u32 %v2563_v61, 16  ;;  %v2625_v22 = vor.u32 %v2624_v13, %v2620_v9  ;;  %v2642_v24 = vshll.u32 %v2564_v3, 16  ;;  %v2575_v13 = vld [vmem:[#allocation2 + $0x48] sm:$0xf] }
  0x93   : > { %7063 = vmatmul.mubr.msk.bf16.gmra.mxu0 %vm529_vm2, %v6401_v12  ;;  %v2635_v23 = vrot.slane %v2633_v15, 4  ;;  %v2646_v25 = vshrl.u32 %v2564_v3, 16  ;;  %7029 = vmatmul.mubr.msk.bf16.gmra.mxu1 %vm529_vm2, %v6352_v16  ;;  %v2616_v26 = vrot.slane %v2615_v17, 4  ;;  %v2652_v29 = vshll.u32 %v2565_v14, 16  ;;  %v2574_v12 = vld [vmem:[#allocation2 + $0x44] sm:$0x1] }
  0x94   : > { %v2638_v27 = vrot.slane %v2636_v19, 5  ;;  %v3657_v30 = vsel %vm578_vm0, %v7739_v6, 0  ;;  %7068 = vmatprep.mubr.msk.bf16.mxu1 %vm529_vm2, %v7325_v5  ;;  %v2626_v31 = vrot.slane %v2625_v22, 4  ;;  %v2644_v32 = vrot.slane %v2642_v24, 5  ;;  %v2573_v5 = vld [vmem:[#allocation2 + $0x40] sm:$0xf] }
  0x95   : > { %v2648_v33 = vrot.slane %v2646_v25, 4  ;;  %v4080_v34 = vsel %vm578_vm0, %v7751_v28, 0  ;;  %v2621_v36 = vsel %vm7551_vm8, %v2616_v26, %v2620_v9  ;;  %v2654_v40 = vrot.slane %v2652_v29, 5 }
  0x96   : > { %v2639_v38 = vor.u32 %v2638_v27, %v2635_v23  ;;  %v2657_v43 = vshrl.u32 %v2566_v20, 16  ;;  %v2631_v6 = vsel %vm7551_vm8, %v2626_v31, %v2630_v18  ;;  %v2660_v39 = vshll.u32 %v2566_v20, 16  ;;  %v7328_v23 = vld [vmem:[#allocation2 + $0x30] sm:$0xff]   ;;  %v2576_v27 = vld [vmem:[#allocation2 + $0x4c] sm:$0xf]  ;;  %v7329_v31 = vld [vmem:[#allocation2 + $0x3c] sm:$0xff]  }
  0x97   : > { %v2649_v45 = vor.u32 %v2648_v33, %v2644_v32  ;;  %v2666_v46 = vshll.u32 %v2567_v21, 16  ;;  %v6452_v47 = vcombine.low %v2621_v36, %v2631_v6  ;;  %v2670_v28 = vshrl.u32 %v2567_v21, 16 }
  0x98   : > { %v2640_v48 = vrot.slane %v2639_v38, 4  ;;  %v2659_v42 = vrot.slane %v2657_v43, 4  ;;  %v2662_v51 = vrot.slane %v2660_v39, 5  ;;  %v2676_v53 = vshll.u32 %v2568_v41, 16  ;;  %v2577_v43 = vld [vmem:[#allocation2 + $0x50] sm:$0x1] }
  0x99   : > { %v2650_v35 = vrot.slane %v2649_v45, 4  ;;  %v2668_v52 = vrot.slane %v2666_v46, 5  ;;  %7102 = vmatprep.mubr.msk.bf16.mxu0 %vm529_vm2, %v6452_v47  ;;  %v2672_v56 = vrot.slane %v2670_v28, 4  ;;  %v2681_v57 = vshrl.u32 %v2569_v44, 16 }
  0x9a   : > { %v2645_v55 = vsel %vm7551_vm8, %v2640_v48, %v2644_v32  ;;  %v2684_v58 = vshll.u32 %v2569_v44, 16  ;;  %v2663_v61 = vor.u32 %v2662_v51, %v2659_v42  ;;  %v2678_v62 = vrot.slane %v2676_v53, 5  ;;  %v2578_v48 = vld [vmem:[#allocation2 + $0x54] sm:$0xf] }
  0x9b   : > { %v2655_v60 = vsel %vm7551_vm8, %v2650_v35, %v2654_v40  ;;  %v2690_v63 = vshll.u32 %v2570_v50, 16  ;;  %7069 = vmatmul.mubr.msk.bf16.vlgmr.msra.gmra.mxu1 %vm529_vm2, %v7326_v37  ;;  %v2673_v2 = vor.u32 %v2672_v56, %v2668_v52  ;;  %v2683_v3 = vrot.slane %v2681_v57, 4  ;;  %v2579_v35 = vld [vmem:[#allocation2 + $0x58] sm:$0xf] }
  0x9c   : > { %v6453_v0 = vcombine.low %v2645_v55, %v2655_v60  ;;  %v2686_v4 = vrot.slane %v2684_v58, 5  ;;  %7135 = vmatpush3.bf16.msra.mxu1 %v3657_v30  ;;  %7072 = vmatprep.mubr.msk.bf16.mxu1 %vm529_vm2, %v7327_v49  ;;  %v2664_v8 = vrot.slane %v2663_v61, 4  ;;  %v2694_v10 = vshrl.u32 %v2570_v50, 16  ;;  %v2580_v55 = vld [vmem:[#allocation2 + $0x5c] sm:$0x1]  ;;  %v7330_v61 = vld [vmem:[#allocation2 + $0x48] sm:$0xff]  }
  0x9d   : > { %v2692_v9 = vrot.slane %v2690_v63, 5  ;;  %v2700_v11 = vshll.u32 %v2571_v54, 16  ;;  %v2674_v14 = vrot.slane %v2673_v2, 4  ;;  %v2705_v16 = vshrl.u32 %v2572_v59, 16  ;;  %v2581_v60 = vld [vmem:[#allocation2 + $0x60] sm:$0xf] }
  0x9e   : > { %7103 = vmatmul.mubr.msk.bf16.vlgmr.msra.gmra.mxu0 %vm529_vm2, %v6453_v0  ;;  %v2687_v15 = vor.u32 %v2686_v4, %v2683_v3  ;;  %v2708_v17 = vshll.u32 %v2572_v59, 16  ;;  %v2669_v18 = vsel %vm7551_vm8, %v2664_v8, %v2668_v52  ;;  %v2696_v19 = vrot.slane %v2694_v10, 4  ;;  %v2582_v3 = vld [vmem:[#allocation2 + $0x64] sm:$0xf]  ;;  %v7331_v8 = vld [vmem:[#allocation2 + $0x54] sm:$0xff]  }
  0x9f   : > { %7169 = vmatpush3.bf16.msra.mxu0 %v4080_v34  ;;  %v2702_v20 = vrot.slane %v2700_v11, 5  ;;  %v2714_v21 = vshll.u32 %v2573_v5, 16  ;;  %v2679_v22 = vsel %vm7551_vm8, %v2674_v14, %v2678_v62  ;;  %v2707_v25 = vrot.slane %v2705_v16, 4 }
  0xa0   : > { %v2688_v24 = vrot.slane %v2687_v15, 4  ;;  %v2710_v26 = vrot.slane %v2708_v17, 5  ;;  %v6454_v29 = vcombine.low %v2669_v18, %v2679_v22  ;;  %v2697_v30 = vor.u32 %v2696_v19, %v2692_v9  ;;  %v2583_v18 = vld [vmem:[#allocation2 + $0x68] sm:$0x1] }
  0xa1   : > { %v2716_v32 = vrot.slane %v2714_v21, 5  ;;  %v2718_v33 = vshrl.u32 %v2573_v5, 16  ;;  %v2724_v37 = vshll.u32 %v2574_v12, 16  ;;  %v2729_v38 = vshrl.u32 %v2575_v13, 16 }
  0xa2   : > { %v2693_v34 = vsel %vm7551_vm8, %v2688_v24, %v2692_v9  ;;  %v2711_v36 = vor.u32 %v2710_v26, %v2707_v25  ;;  %7106 = vmatprep.mubr.msk.bf16.mxu0 %vm529_vm2, %v6454_v29  ;;  %v2698_v40 = vrot.slane %v2697_v30, 4  ;;  %v2732_v44 = vshll.u32 %v2575_v13, 16  ;;  %v2585_v25 = vld [vmem:[#allocation2 + $0x70] sm:$0xf] }
  0xa3   : > { %v2720_v41 = vrot.slane %v2718_v33, 4  ;;  %v2738_v6 = vshll.u32 %v2576_v27, 16  ;;  %7073 = vmatmul.mubr.msk.bf16.gmra.mxu1 %vm529_vm2, %v7328_v23  ;;  %v2726_v39 = vrot.slane %v2724_v37, 5  ;;  %v2731_v46 = vrot.slane %v2729_v38, 4  ;;  %v7332_v38 = vld [vmem:[#allocation2 + $0x60] sm:$0xff]  }
  0xa4   : > { %v2712_v45 = vrot.slane %v2711_v36, 4  ;;  %v2742_v47 = vshrl.u32 %v2576_v27, 16  ;;  %v2703_v49 = vsel %vm7551_vm8, %v2698_v40, %v2702_v20  ;;  %7076 = vmatprep.mubr.msk.bf16.mxu1 %vm529_vm2, %v7329_v31  ;;  %v2734_v28 = vrot.slane %v2732_v44, 5  ;;  %v2584_v20 = vld [vmem:[#allocation2 + $0x6c] sm:$0xf] }
  0xa5   : > { %v2721_v42 = vor.u32 %v2720_v41, %v2716_v32  ;;  %v2740_v50 = vrot.slane %v2738_v6, 5  ;;  %v6455_v51 = vcombine.low %v2693_v34, %v2703_v49  ;;  %v2748_v54 = vshll.u32 %v2577_v43, 16  ;;  %v2586_v36 = vld [vmem:[#allocation2 + $0x74] sm:$0x1]  ;;  %v2587_v44 = vld [vmem:[#allocation2 + $0x78] sm:$0xf] }
  0xa6   : > { %v2717_v52 = vsel %vm7551_vm8, %v2712_v45, %v2716_v32  ;;  %v2744_v53 = vrot.slane %v2742_v47, 4  ;;  %v2735_v57 = vor.u32 %v2734_v28, %v2731_v46  ;;  %v2753_v58 = vshrl.u32 %v2578_v48, 16  ;;  %v2588_v47 = vld [vmem:[#allocation2 + $0x7c] sm:$0xf] }
  0xa7   : > { %v2722_v56 = vrot.slane %v2721_v42, 4  ;;  %v2756_v59 = vshll.u32 %v2578_v48, 16  ;;  %7107 = vmatmul.mubr.msk.bf16.gmra.mxu0 %vm529_vm2, %v6455_v51  ;;  %v2750_v63 = vrot.slane %v2748_v54, 5  ;;  %v2762_v0 = vshll.u32 %v2579_v35, 16  ;;  %v7333_v42 = vld [vmem:[#allocation2 + $0x6c] sm:$0xff]  }
  0xa8   : > { %v2745_v62 = vor.u32 %v2744_v53, %v2740_v50  ;;  %v2766_v2 = vshrl.u32 %v2579_v35, 16  ;;  %v2736_v5 = vrot.slane %v2735_v57, 4  ;;  %v2755_v9 = vrot.slane %v2753_v58, 4 }
  0xa9   : > { %v2727_v4 = vsel %vm7551_vm8, %v2722_v56, %v2726_v39  ;;  %v2758_v10 = vrot.slane %v2756_v59, 5  ;;  %v2764_v13 = vrot.slane %v2762_v0, 5  ;;  %v2772_v17 = vshll.u32 %v2580_v55, 16  ;;  %v2589_v56 = vld [vmem:[#allocation2 + $0x80] sm:$0x1] }
  0xaa   : > { %v6456_v11 = vcombine.low %v2717_v52, %v2727_v4  ;;  %v2746_v12 = vrot.slane %v2745_v62, 4  ;;  %v2768_v14 = vrot.slane %v2766_v2, 4  ;;  %v2741_v15 = vsel %vm7551_vm8, %v2736_v5, %v2740_v50 }
  0xab   : > { %v2759_v16 = vor.u32 %v2758_v10, %v2755_v9  ;;  %v2777_v19 = vshrl.u32 %v2581_v60, 16  ;;  %7077 = vmatmul.mubr.msk.bf16.gmra.mxu1 %vm529_vm2, %v7330_v61  ;;  %v2780_v23 = vshll.u32 %v2581_v60, 16  ;;  %v2786_v24 = vshll.u32 %v2582_v3, 16  ;;  %v7334_v9 = vld [vmem:[#allocation2 + $0x78] sm:$0xff]  }
  0xac   : > { %7110 = vmatprep.mubr.msk.bf16.mxu0 %vm529_vm2, %v6456_v11  ;;  %v2751_v21 = vsel %vm7551_vm8, %v2746_v12, %v2750_v63  ;;  %v2769_v22 = vor.u32 %v2768_v14, %v2764_v13  ;;  %7080 = vmatprep.mubr.msk.bf16.mxu1 %vm529_vm2, %v7331_v8  ;;  %v2774_v29 = vrot.slane %v2772_v17, 5  ;;  %v2790_v34 = vshrl.u32 %v2582_v3, 16  ;;  %v2590_v63 = vld [vmem:[#allocation2 + $0x84] sm:$0xf]  ;;  %v2591_v12 = vld [vmem:[#allocation2 + $0x88] sm:$0xf] }
  0xad   : > { %v6457_v26 = vcombine.low %v2741_v15, %v2751_v21  ;;  %v2760_v27 = vrot.slane %v2759_v16, 4  ;;  %v2779_v30 = vrot.slane %v2777_v19, 4  ;;  %v2782_v32 = vrot.slane %v2780_v23, 5  ;;  %v7335_v17 = vld [vmem:[#allocation2 + $0x84] sm:$0xff]   ;;  %v2593_v19 = vld [vmem:[#allocation2 + $0x90] sm:$0xf] }
  0xae   : > { %v2770_v31 = vrot.slane %v2769_v22, 4  ;;  %v2788_v33 = vrot.slane %v2786_v24, 5  ;;  %v2796_v40 = vshll.u32 %v2583_v18, 16  ;;  %v2801_v41 = vshrl.u32 %v2584_v20, 16  ;;  %v2592_v18 = vld [vmem:[#allocation2 + $0x8c] sm:$0x1] }
  0xaf   : > { %v2765_v37 = vsel %vm7551_vm8, %v2760_v27, %v2764_v13  ;;  %v2804_v43 = vshll.u32 %v2584_v20, 16  ;;  %7111 = vmatmul.mubr.msk.bf16.gmra.mxu0 %vm529_vm2, %v6457_v26  ;;  %v2783_v45 = vor.u32 %v2782_v32, %v2779_v30  ;;  %v2792_v39 = vrot.slane %v2790_v34, 4  ;;  %v403_v24 = vld [vmem:[%s7831_s19] sm:$0xf]  ;;  %v404_v30 = vld [vmem:[%s7831_s19 + $0x4] sm:$0xf] }
  0xb0   : > { %v2775_v6 = vsel %vm7551_vm8, %v2770_v31, %v2774_v29  ;;  %v2810_v46 = vshll.u32 %v2585_v25, 16  ;;  %v2798_v49 = vrot.slane %v2796_v40, 5  ;;  %v2803_v28 = vrot.slane %v2801_v41, 4  ;;  %410 = vst.msk [vmem:[#allocation2 + $0xc0] sm:$0xf] %vm353_vm1, %v403_v24 }
  0xb1   : > { %v6458_v48 = vcombine.low %v2765_v37, %v2775_v6  ;;  %v2806_v50 = vrot.slane %v2804_v43, 5  ;;  %v2784_v35 = vrot.slane %v2783_v45, 4  ;;  %v2793_v51 = vor.u32 %v2792_v39, %v2788_v33  ;;  %411 = vst.msk [vmem:[#allocation2 + $0xc4] sm:$0xf] %vm353_vm1, %v404_v30  ;;  %v405_v37 = vld [vmem:[%s7831_s19 + $0x8] sm:$0x1] }
  0xb2   : > { %v2812_v52 = vrot.slane %v2810_v46, 5  ;;  %v2814_v53 = vshrl.u32 %v2585_v25, 16  ;;  %v2820_v55 = vshll.u32 %v2586_v36, 16  ;;  %v2825_v57 = vshrl.u32 %v2587_v44, 16  ;;  %v2594_v36 = vld [vmem:[#allocation2 + $0x94] sm:$0xf] }
  0xb3   : > { %7114 = vmatprep.mubr.msk.bf16.mxu0 %vm529_vm2, %v6458_v48  ;;  %v2807_v54 = vor.u32 %v2806_v50, %v2803_v28  ;;  %v2828_v58 = vshll.u32 %v2587_v44, 16  ;;  %7081 = vmatmul.mubr.msk.bf16.gmra.mxu1 %vm529_vm2, %v7332_v38  ;;  %v2789_v59 = vsel %vm7551_vm8, %v2784_v35, %v2788_v33  ;;  %v2794_v60 = vrot.slane %v2793_v51, 4  ;;  %v2595_v44 = vld [vmem:[#allocation2 + $0x98] sm:$0x1]  ;;  %v2596_v6 = vld [vmem:[#allocation2 + $0x9c] sm:$0xf] }
  0xb4   : > { %v2816_v61 = vrot.slane %v2814_v53, 4  ;;  %v2834_v62 = vshll.u32 %v2588_v47, 16  ;;  %7084 = vmatprep.mubr.msk.bf16.mxu1 %vm529_vm2, %v7333_v42  ;;  %v2822_v2 = vrot.slane %v2820_v55, 5  ;;  %v2827_v3 = vrot.slane %v2825_v57, 4  ;;  %412 = vst.msk [vmem:[#allocation2 + $0xc8] sm:$0x1] %vm356_vm5, %v405_v37 }
  0xb5   : > { %v2808_v0 = vrot.slane %v2807_v54, 4  ;;  %v2830_v4 = vrot.slane %v2828_v58, 5  ;;  %v2799_v5 = vsel %vm7551_vm8, %v2794_v60, %v2798_v49  ;;  %v2838_v11 = vshrl.u32 %v2588_v47, 16  ;;  %v2597_v48 = vld [vmem:[#allocation2 + $0xa0] sm:$0xf]  ;;  %v7336_v57 = vld [vmem:[#allocation2 + $0x90] sm:$0xff]  }
  0xb6   : > { %v2817_v8 = vor.u32 %v2816_v61, %v2812_v52  ;;  %v2836_v10 = vrot.slane %v2834_v62, 5  ;;  %v6459_v13 = vcombine.low %v2789_v59, %v2799_v5  ;;  %v2844_v16 = vshll.u32 %v2589_v56, 16  ;;  %v7856_v54 = vld [vmem:[%s8852_s2 + $0xe] sm:$0x3]  ;;  %v2598_v60 = vld [vmem:[#allocation2 + $0xa4] sm:$0x1] }
  0xb7   : > { %v2813_v14 = vsel %vm7551_vm8, %v2808_v0, %v2812_v52  ;;  %v2831_v15 = vor.u32 %v2830_v4, %v2827_v3  ;;  %v2840_v21 = vrot.slane %v2838_v11, 4  ;;  %v2849_v22 = vshrl.u32 %v2590_v63, 16  ;;  %7280 = vmatprep.subr.msk.bf16.mxu1 %vm578_vm0, %v7856_v54  ;;  %v7337_v0 = vld [vmem:[#allocation2 + $0x9c] sm:$0xff]   ;;  %v2602_v24 = vld [vmem:[#allocation2 + $0xb4] sm:$0xf] }
  0xb8   : > { %v2818_v20 = vrot.slane %v2817_v8, 4  ;;  %v2852_v23 = vshll.u32 %v2590_v63, 16  ;;  %7115 = vmatmul.mubr.msk.bf16.gmra.mxu0 %vm529_vm2, %v6459_v13  ;;  %v2846_v26 = vrot.slane %v2844_v16, 5  ;;  %v2858_v27 = vshll.u32 %v2591_v12, 16  ;;  %v2603_v30 = vld [vmem:[#allocation2 + $0xb8] sm:$0xf] }
  0xb9   : > { %v2832_v25 = vrot.slane %v2831_v15, 4  ;;  %v2862_v29 = vshrl.u32 %v2591_v12, 16  ;;  %v2841_v32 = vor.u32 %v2840_v21, %v2836_v10  ;;  %v2851_v33 = vrot.slane %v2849_v22, 4 }
  0xba   : > { %v2823_v31 = vsel %vm7551_vm8, %v2818_v20, %v2822_v2  ;;  %v2854_v34 = vrot.slane %v2852_v23, 5  ;;  %v2860_v41 = vrot.slane %v2858_v27, 5  ;;  %v2868_v46 = vshll.u32 %v2592_v18, 16 }
  0xbb   : > { %v6460_v38 = vcombine.low %v2813_v14, %v2823_v31  ;;  %v2837_v40 = vsel %vm7551_vm8, %v2832_v25, %v2836_v10  ;;  %v2864_v43 = vrot.slane %v2862_v29, 4  ;;  %7085 = vmatmul.mubr.msk.bf16.gmra.mxu1 %vm529_vm2, %v7334_v9  ;;  %v2842_v45 = vrot.slane %v2841_v32, 4  ;;  %v2599_v9 = vld [vmem:[#allocation2 + $0xa8] sm:$0xf]  ;;  %v2600_v14 = vld [vmem:[#allocation2 + $0xac] sm:$0xf] }
  0xbc   : > { %v2855_v39 = vor.u32 %v2854_v34, %v2851_v33  ;;  %v2873_v47 = vshrl.u32 %v2593_v19, 16  ;;  %7088 = vmatprep.mubr.msk.bf16.mxu1 %vm529_vm2, %v7335_v17  ;;  %v2876_v42 = vshll.u32 %v2593_v19, 16  ;;  %v2882_v28 = vshll.u32 %v2594_v36, 16  ;;  %v2601_v19 = vld [vmem:[#allocation2 + $0xb0] sm:$0x1] }
  0xbd   : > { %7118 = vmatprep.mubr.msk.bf16.mxu0 %vm529_vm2, %v6460_v38  ;;  %v2865_v49 = vor.u32 %v2864_v43, %v2860_v41  ;;  %v2886_v50 = vshrl.u32 %v2594_v36, 16  ;;  %v2847_v35 = vsel %vm7551_vm8, %v2842_v45, %v2846_v26  ;;  %v2870_v52 = vrot.slane %v2868_v46, 5  ;;  %v7875_v43 = vld [vmem:[%s8852_s2 + $0x10] sm:$0x3] }
  0xbe   : > { %v2856_v51 = vrot.slane %v2855_v39, 4  ;;  %v2875_v53 = vrot.slane %v2873_v47, 4  ;;  %v6461_v55 = vcombine.low %v2837_v40, %v2847_v35  ;;  %v2878_v58 = vrot.slane %v2876_v42, 5  ;;  %v2605_v47 = vld [vmem:[#allocation2 + $0xc0] sm:$0xf]  ;;  %7281 = vmatprep.subr.msk.bf16.mxu0 %vm578_vm0, %v7875_v43  ;;  %v7339_v42 = vld [vmem:[#allocation2 + $0xb4] sm:$0xff]  }
  0xbf   : > { %v2866_v56 = vrot.slane %v2865_v49, 4  ;;  %v2884_v59 = vrot.slane %v2882_v28, 5  ;;  %v2888_v62 = vrot.slane %v2886_v50, 4  ;;  %v2892_v63 = vshll.u32 %v2595_v44, 16  ;;  %v7338_v44 = vld [vmem:[#allocation2 + $0xa8] sm:$0xff]  }
  0xc0   : > { %v2861_v61 = vsel %vm7551_vm8, %v2856_v51, %v2860_v41  ;;  %v2897_v2 = vshrl.u32 %v2596_v6, 16  ;;  %7119 = vmatmul.mubr.msk.bf16.gmra.mxu0 %vm529_vm2, %v6461_v55  ;;  %v2879_v4 = vor.u32 %v2878_v58, %v2875_v53  ;;  %v2900_v5 = vshll.u32 %v2596_v6, 16  ;;  %v2604_v41 = vld [vmem:[#allocation2 + $0xbc] sm:$0x1]  ;;  %v2606_v35 = vld [vmem:[#allocation2 + $0xc4] sm:$0xf] }
  0xc1   : > { %v2871_v3 = vsel %vm7551_vm8, %v2866_v56, %v2870_v52  ;;  %v2906_v8 = vshll.u32 %v2597_v48, 16  ;;  %v2889_v11 = vor.u32 %v2888_v62, %v2884_v59  ;;  %v2894_v12 = vrot.slane %v2892_v63, 5 }
  0xc2   : > { %v6462_v10 = vcombine.low %v2861_v61, %v2871_v3  ;;  %v2899_v13 = vrot.slane %v2897_v2, 4  ;;  %v2880_v15 = vrot.slane %v2879_v4, 4  ;;  %v2902_v16 = vrot.slane %v2900_v5, 5  ;;  %v2607_v3 = vld [vmem:[#allocation2 + $0xc8] sm:$0x1] }
  0xc3   : > { %v2908_v17 = vrot.slane %v2906_v8, 5  ;;  %v2910_v18 = vshrl.u32 %v2597_v48, 16  ;;  %7089 = vmatmul.mubr.msk.bf16.gmra.mxu1 %vm529_vm2, %v7336_v57  ;;  %v2890_v20 = vrot.slane %v2889_v11, 4  ;;  %v2916_v21 = vshll.u32 %v2598_v60, 16  ;;  %v3350_v8 = vld [vmem:[#allocation2 + $0xc] sm:$0xe] }
  0xc4   : > { %7122 = vmatprep.mubr.msk.bf16.mxu0 %vm529_vm2, %v6462_v10  ;;  %v2921_v22 = vshrl.u32 %v2599_v9, 16  ;;  %v2924_v23 = vshll.u32 %v2599_v9, 16  ;;  %v2885_v25 = vsel %vm7551_vm8, %v2880_v15, %v2884_v59  ;;  %7092 = vmatprep.mubr.msk.bf16.mxu1 %vm529_vm2, %v7337_v0  ;;  %v2903_v26 = vor.u32 %v2902_v16, %v2899_v13  ;;  %v3351_v9 = vld [vmem:[#allocation2 + $0x10] sm:$0xf]  ;;  %v3353_v15 = vld [vmem:[#allocation2 + $0x18] sm:$0xe] }
  0xc5   : > { %v2912_v27 = vrot.slane %v2910_v18, 4  ;;  %v2930_v29 = vshll.u32 %v2600_v14, 16  ;;  %v2895_v31 = vsel %vm7551_vm8, %v2890_v20, %v2894_v12  ;;  %v2918_v32 = vrot.slane %v2916_v21, 5  ;;  %v7340_v21 = vld [vmem:[#allocation2 + $0xc0] sm:$0xff]  }
  0xc6   : > { %v2923_v33 = vrot.slane %v2921_v22, 4  ;;  %v2926_v34 = vrot.slane %v2924_v23, 5  ;;  %v6463_v36 = vcombine.low %v2885_v25, %v2895_v31  ;;  %v2904_v37 = vrot.slane %v2903_v26, 4  ;;  %v3354_v25 = vld [vmem:[#allocation2 + $0x1c] sm:$0xf] }
  0xc7   : > { %v2913_v38 = vor.u32 %v2912_v27, %v2908_v17  ;;  %v2932_v40 = vrot.slane %v2930_v29, 5  ;;  %v2934_v45 = vshrl.u32 %v2600_v14, 16  ;;  %v2940_v39 = vshll.u32 %v2601_v19, 16  ;;  %v3352_v14 = vld [vmem:[#allocation2 + $0x14] sm:$0x1] }
  0xc8   : > { %v2927_v6 = vor.u32 %v2926_v34, %v2923_v33  ;;  %v2945_v46 = vshrl.u32 %v2602_v24, 16  ;;  %7123 = vmatmul.mubr.msk.bf16.gmra.mxu0 %vm529_vm2, %v6463_v36  ;;  %v2909_v48 = vsel %vm7551_vm8, %v2904_v37, %v2908_v17  ;;  %v2948_v28 = vshll.u32 %v2602_v24, 16  ;;  %v3355_v31 = vld [vmem:[#allocation2 + $0x20] sm:$0x1] }
  0xc9   : > { %v2914_v49 = vrot.slane %v2913_v38, 4  ;;  %v2954_v50 = vshll.u32 %v2603_v30, 16  ;;  %v2936_v52 = vrot.slane %v2934_v45, 4  ;;  %v2942_v53 = vrot.slane %v2940_v39, 5  ;;  %v3358_v45 = vld [vmem:[#allocation2 + $0x2c] sm:$0x1] }
  0xca   : > { %v2928_v51 = vrot.slane %v2927_v6, 4  ;;  %v2947_v55 = vrot.slane %v2945_v46, 4  ;;  %v2950_v57 = vrot.slane %v2948_v28, 5  ;;  %v2958_v59 = vshrl.u32 %v2603_v30, 16  ;;  %v3357_v6 = vld [vmem:[#allocation2 + $0x28] sm:$0xf] }
  0xcb   : > { %v2919_v56 = vsel %vm7551_vm8, %v2914_v49, %v2918_v32  ;;  %v2956_v58 = vrot.slane %v2954_v50, 5  ;;  %7093 = vmatmul.mubr.msk.bf16.gmra.mxu1 %vm529_vm2, %v7338_v44  ;;  %v2937_v62 = vor.u32 %v2936_v52, %v2932_v40  ;;  %v2964_v63 = vshll.u32 %v2604_v41, 16  ;;  %v3356_v32 = vld [vmem:[#allocation2 + $0x24] sm:$0xe]  ;;  %v3359_v49 = vld [vmem:[#allocation2 + $0x30] sm:$0xe] }
  0xcc   : > { %v6464_v60 = vcombine.low %v2909_v48, %v2919_v56  ;;  %v2933_v61 = vsel %vm7551_vm8, %v2928_v51, %v2932_v40  ;;  %7096 = vmatprep.mubr.msk.bf16.mxu1 %vm529_vm2, %v7339_v42  ;;  %v2951_v0 = vor.u32 %v2950_v57, %v2947_v55  ;;  %v2960_v2 = vrot.slane %v2958_v59, 4  ;;  %v3360_v42 = vld [vmem:[#allocation2 + $0x34] sm:$0xf]  ;;  %v3361_v51 = vld [vmem:[#allocation2 + $0x38] sm:$0x1] }
  0xcd   : > { %v2969_v4 = vshrl.u32 %v2605_v47, 16  ;;  %v2972_v5 = vshll.u32 %v2605_v47, 16  ;;  %v2938_v10 = vrot.slane %v2937_v62, 4  ;;  %v2966_v11 = vrot.slane %v2964_v63, 5  ;;  %v3363_v52 = vld [vmem:[#allocation2 + $0x40] sm:$0xf] }
  0xce   : > { %7126 = vmatprep.mubr.msk.bf16.mxu0 %vm529_vm2, %v6464_v60  ;;  %v2978_v12 = vshll.u32 %v2606_v35, 16  ;;  %v2982_v13 = vshrl.u32 %v2606_v35, 16  ;;  %v2952_v16 = vrot.slane %v2951_v0, 4  ;;  %v2961_v17 = vor.u32 %v2960_v2, %v2956_v58  ;;  %v7341_v59 = vld [vmem:[#allocation2 + $0x18] sm:$0xff]   ;;  %v3364_v63 = vld [vmem:[#allocation2 + $0x44] sm:$0x1] }
  0xcf   : > { %v2971_v18 = vrot.slane %v2969_v4, 4  ;;  %v2974_v19 = vrot.slane %v2972_v5, 5  ;;  %v2943_v20 = vsel %vm7551_vm8, %v2938_v10, %v2942_v53  ;;  %v2988_v24 = vshll.u32 %v2607_v3, 16  ;;  %v3362_v62 = vld [vmem:[#allocation2 + $0x3c] sm:$0xe] }
  0xd0   : > { %v2980_v22 = vrot.slane %v2978_v12, 5  ;;  %v2984_v23 = vrot.slane %v2982_v13, 4  ;;  %v6465_v26 = vcombine.low %v2933_v61, %v2943_v20  ;;  %v2957_v27 = vsel %vm7551_vm8, %v2952_v16, %v2956_v58  ;;  %v7910_v5 = vld [vmem:[#allocation2 + $0x4c] sm:$0xf]  ;;  %v7915_v12 = vld [vmem:[#allocation2 + $0x48] sm:$0xe] }
  0xd1   : > { %v2962_v29 = vrot.slane %v2961_v17, 4  ;;  %v2975_v30 = vor.u32 %v2974_v19, %v2971_v18  ;;  %v2990_v34 = vrot.slane %v2988_v24, 5  ;;  %v6484_v36 = vrot.slane %v3350_v8, 9  ;;  %v3367_v16 = vld [vmem:[#allocation2 + $0x50] sm:$0x1] }
  0xd2   : > { %v2985_v33 = vor.u32 %v2984_v23, %v2980_v22  ;;  %v3448_v37 = vrot.slane %v3351_v9, 5  ;;  %7127 = vmatmul.mubr.msk.bf16.gmra.mxu0 %vm529_vm2, %v6465_v26  ;;  %v3451_v41 = vrot.slane %v3352_v14, 5  ;;  %v6485_v44 = vrot.slane %v3353_v15, 9  ;;  %v7920_v20 = vld [vmem:[#allocation2 + $0x54] sm:$0xe] }
  0xd3   : > { %v2967_v38 = vsel %vm7551_vm8, %v2962_v29, %v2966_v11  ;;  %v2976_v40 = vrot.slane %v2975_v30, 4  ;;  %7097 = vmatmul.mubr.msk.bf16.gmra.mxu1 %vm529_vm2, %v7340_v21  ;;  %v3455_v50 = vrot.slane %v3354_v25, 5  ;;  %v3458_v35 = vrot.slane %v3355_v31, 5  ;;  %v7928_v23 = vld [vmem:[#allocation2 + $0x5c] sm:$0x1]  ;;  %v7342_v29 = vld [vmem:[#allocation2 + $0x24] sm:$0xff]  }
  0xd4   : > { %v6466_v39 = vcombine.low %v2957_v27, %v2967_v38  ;;  %v2986_v46 = vrot.slane %v2985_v33, 4  ;;  %v3449_v47 = vsel %vm7558_vm9, %v6484_v36, %v3448_v37  ;;  %v3450_v48 = vrot.slane %v3448_v37, 4  ;;  %v7930_v24 = vld [vmem:[#allocation2 + $0x64] sm:$0xf]  ;;  %v7944_v36 = vld [vmem:[#allocation2 + $0x70] sm:$0xf] }
  0xd5   : > { %v2981_v28 = vsel %vm7551_vm8, %v2976_v40, %v2980_v22  ;;  %v6486_v56 = vrot.slane %v3356_v32, 9  ;;  %v3456_v60 = vsel %vm7558_vm9, %v6485_v44, %v3455_v50  ;;  %v3457_v61 = vrot.slane %v3455_v50, 4  ;;  %v7926_v22 = vld [vmem:[#allocation2 + $0x58] sm:$0xf]  ;;  %v3373_v44 = vld [vmem:[#allocation2 + $0x68] sm:$0x1] }
  0xd6   : > { %7130 = vmatprep.mubr.msk.bf16.mxu0 %vm529_vm2, %v6466_v39  ;;  %v2991_v53 = vsel %vm7551_vm8, %v2986_v46, %v2990_v34  ;;  %v3452_v55 = vsel %vm7558_vm9, %v3450_v48, %v3451_v41  ;;  %v4870_v0 = vsel %vm578_vm0, %v7856_v54, 0  ;;  %v3462_v2 = vrot.slane %v3357_v6, 5  ;;  %v7942_v34 = vld [vmem:[#allocation2 + $0x60] sm:$0xe] }
  0xd7   : > { %v6467_v57 = vcombine.low %v2981_v28, %v2991_v53  ;;  %v6501_v58 = vcombine.low %v3449_v47, %v3452_v55  ;;  %v3465_v3 = vrot.slane %v3358_v45, 5  ;;  %v3469_v4 = vrot.slane %v3360_v42, 5  ;;  %v7952_v45 = vld [vmem:[#allocation2 + $0x6c] sm:$0xe]  ;;  %v7958_v42 = vld [vmem:[#allocation2 + $0x74] sm:$0x1] }
  0xd8   : > { %v3459_v8 = vsel %vm7558_vm9, %v3457_v61, %v3458_v35  ;;  %v6487_v9 = vrot.slane %v3359_v49, 9  ;;  %v3472_v10 = vrot.slane %v3361_v51, 5  ;;  %v3476_v11 = vrot.slane %v3363_v52, 5  ;;  %v7963_v52 = vld [vmem:[#allocation2 + $0x78] sm:$0xe] }
  0xd9   : > { %7136 = vmatprep.mubr.msk.bf16.mxu1 %vm529_vm2, %v6501_v58  ;;  %v6502_v13 = vcombine.low %v3456_v60, %v3459_v8  ;;  %v3463_v14 = vsel %vm7558_vm9, %v6486_v56, %v3462_v2  ;;  %v3464_v54 = vrot.slane %v3462_v2, 4  ;;  %v6488_v15 = vrot.slane %v3362_v62, 9  ;;  %v7965_v53 = vld [vmem:[#allocation2 + $0x7c] sm:$0xf]  ;;  %v3380_v8 = vld [vmem:[#allocation2 + $0x84] sm:$0xe] }
  0xda   : > { %7131 = vmatmul.mubr.msk.bf16.gmra.mxu0 %vm529_vm2, %v6467_v57  ;;  %v3471_v17 = vrot.slane %v3469_v4, 4  ;;  %v3478_v18 = vrot.slane %v3476_v11, 4  ;;  %v3479_v19 = vrot.slane %v3364_v63, 5  ;;  %v5436_v25 = vsel %vm578_vm0, %v7875_v43, 0  ;;  %v7343_v43 = vld [vmem:[#allocation2 + $0x30] sm:$0xff]   ;;  %v7344_v2 = vld [vmem:[#allocation2 + $0x3c] sm:$0xff]  }
  0xdb   : > { %7170 = vmatprep.mubr.msk.bf16.mxu0 %vm529_vm2, %v7341_v59  ;;  %7137 = vmatmul.mubr.msk.bf16.vlgmr.msra.gmra.mxu1 %vm529_vm2, %v6502_v13  ;;  %v3466_v21 = vsel %vm7558_vm9, %v3464_v54, %v3465_v3  ;;  %v3483_v27 = vrot.slane %v7910_v5, 5  ;;  %v3470_v30 = vsel %vm7558_vm9, %v6487_v9, %v3469_v4  ;;  %v3477_v32 = vsel %vm7558_vm9, %v6488_v15, %v3476_v11  ;;  %v7970_v57 = vld [vmem:[#allocation2 + $0x80] sm:$0x1]  ;;  %v3381_v9 = vld [vmem:[#allocation2 + $0x88] sm:$0xf] }
  0xdc   : > { %7203 = vmatpush3.bf16.msra.mxu1 %v4870_v0  ;;  %v6503_v26 = vcombine.low %v3463_v14, %v3466_v21  ;;  %v3473_v31 = vsel %vm7558_vm9, %v3471_v17, %v3472_v10  ;;  %v6489_v33 = vrot.slane %v7915_v12, 9  ;;  %v3480_v37 = vsel %vm7558_vm9, %v3478_v18, %v3479_v19  ;;  %v3382_v10 = vld [vmem:[#allocation2 + $0x8c] sm:$0x1]  ;;  %v3383_v19 = vld [vmem:[#allocation2 + $0x90] sm:$0xe] }
  0xdd   : > { %v3486_v38 = vrot.slane %v3367_v16, 5  ;;  %v6490_v40 = vrot.slane %v7920_v20, 9  ;;  %v3490_v41 = vrot.slane %v7926_v22, 5  ;;  %v3497_v6 = vrot.slane %v7930_v24, 5  ;;  %v7345_v11 = vld [vmem:[#allocation2 + $0x48] sm:$0xff]  }
  0xde   : > { %7140 = vmatprep.mubr.msk.bf16.mxu1 %vm529_vm2, %v6503_v26  ;;  %v3504_v39 = vrot.slane %v7944_v36, 5  ;;  %v6504_v47 = vcombine.low %v3470_v30, %v3473_v31  ;;  %v3485_v48 = vrot.slane %v3483_v27, 4  ;;  %v3493_v49 = vrot.slane %v7928_v23, 5  ;;  %v3384_v20 = vld [vmem:[#allocation2 + $0x94] sm:$0xf] }
  0xdf   : > { %v6505_v50 = vcombine.low %v3477_v32, %v3480_v37  ;;  %v6491_v35 = vrot.slane %v7942_v34, 9  ;;  %v3500_v51 = vrot.slane %v3373_v44, 5  ;;  %v3492_v56 = vrot.slane %v3490_v41, 4  ;;  %v3386_v32 = vld [vmem:[#allocation2 + $0x9c] sm:$0xe] }
  0xe0   : > { %v3511_v58 = vrot.slane %v7965_v53, 5  ;;  %v3499_v60 = vrot.slane %v3497_v6, 4  ;;  %v6492_v61 = vrot.slane %v7952_v45, 9  ;;  %v3506_v62 = vrot.slane %v3504_v39, 4 }
  0xe1   : > { %v3507_v63 = vrot.slane %v7958_v42, 5  ;;  %v3484_v3 = vsel %vm7558_vm9, %v6489_v33, %v3483_v27  ;;  %v3487_v4 = vsel %vm7558_vm9, %v3485_v48, %v3486_v38  ;;  %v6493_v12 = vrot.slane %v7963_v52, 9  ;;  %v3387_v38 = vld [vmem:[#allocation2 + $0xa0] sm:$0xf] }
  0xe2   : > { %7171 = vmatmul.mubr.msk.bf16.vlgmr.msra.gmra.mxu0 %vm529_vm2, %v7342_v29  ;;  %v3513_v13 = vrot.slane %v3511_v58, 4  ;;  %v3514_v14 = vrot.slane %v7970_v57, 5  ;;  %v3518_v15 = vrot.slane %v3381_v9, 5  ;;  %v3491_v16 = vsel %vm7558_vm9, %v6490_v40, %v3490_v41  ;;  %v3388_v40 = vld [vmem:[#allocation2 + $0xa4] sm:$0x1] }
  0xe3   : > { %7237 = vmatpush3.bf16.msra.mxu0 %v5436_v25  ;;  %7174 = vmatprep.mubr.msk.bf16.mxu0 %vm529_vm2, %v7343_v43  ;;  %v3494_v17 = vsel %vm7558_vm9, %v3492_v56, %v3493_v49  ;;  %v6506_v21 = vcombine.low %v3484_v3, %v3487_v4  ;;  %v6494_v22 = vrot.slane %v3380_v8, 9  ;;  %v3521_v23 = vrot.slane %v3382_v10, 5  ;;  %v3385_v25 = vld [vmem:[#allocation2 + $0x98] sm:$0x1]  ;;  %v3391_v57 = vld [vmem:[#allocation2 + $0xb0] sm:$0x1] }
  0xe4   : > { %v7955_v46 = vpop.f32.mrf.mxu0  ;;  %7141 = vmatmul.mubr.msk.bf16.gmra.mxu1 %vm529_vm2, %v6504_v47  ;;  %v8004_v26 = vsel %vm7558_vm9, %v6491_v35, %v3497_v6  ;;  %v8008_v27 = vsel %vm7558_vm9, %v3499_v60, %v3500_v51  ;;  %v3520_v29 = vrot.slane %v3518_v15, 4  ;;  %v3525_v31 = vrot.slane %v3384_v20, 5  ;;  %v7346_v35 = vld [vmem:[#allocation2 + $0x54] sm:$0xff]   ;;  %v7347_v4 = vld [vmem:[#allocation2 + $0x60] sm:$0xff]  }
  0xe5   : > { %v7960_v28 = vpop.f32.mrf.mxu1  ;;  %7144 = vmatprep.mubr.msk.bf16.mxu1 %vm529_vm2, %v6505_v50  ;;  %v6507_v33 = vcombine.low %v3491_v16, %v3494_v17  ;;  %v6495_v34 = vrot.slane %v3383_v19, 9  ;;  %v3528_v43 = vrot.slane %v3385_v25, 5  ;;  %v8019_v41 = vsel %vm7558_vm9, %v6492_v61, %v3504_v39  ;;  %v3389_v50 = vld [vmem:[#allocation2 + $0xa8] sm:$0xe]  ;;  %v3390_v39 = vld [vmem:[#allocation2 + $0xac] sm:$0xf] }
  0xe6   : > { %v7967_v55 = vpop.f32.mrf.mxu0  ;;  %v3527_v44 = vrot.slane %v3525_v31, 4  ;;  %v3532_v45 = vrot.slane %v3387_v38, 5  ;;  %v6508_v47 = vcombine.low %v8004_v26, %v8008_v27  ;;  %v8028_v48 = vsel %vm7558_vm9, %v3506_v62, %v3507_v63  ;;  %v3392_v3 = vld [vmem:[#allocation2 + $0xb4] sm:$0xe] }
  0xe7   : > { %v7973_v59 = vpop.f32.mrf.mxu1  ;;  %v6496_v36 = vrot.slane %v3386_v32, 9  ;;  %v3535_v42 = vrot.slane %v3388_v40, 5  ;;  %v8035_v51 = vsel %vm7558_vm9, %v6493_v12, %v3511_v58  ;;  %v8039_v52 = vsel %vm7558_vm9, %v3513_v13, %v3514_v14  ;;  %v3393_v12 = vld [vmem:[#allocation2 + $0xb8] sm:$0xf]  ;;  %v3394_v13 = vld [vmem:[#allocation2 + $0xbc] sm:$0x1] }
  0xe8   : > { %v7980_v0 = vpop.f32.mrf.mxu0  ;;  %v3534_v56 = vrot.slane %v3532_v45, 4  ;;  %v6497_v60 = vrot.slane %v3389_v50, 9  ;;  %v8046_v61 = vsel %vm7558_vm9, %v6494_v22, %v3518_v15  ;;  %v8050_v62 = vsel %vm7558_vm9, %v3520_v29, %v3521_v23  ;;  %v3396_v32 = vld [vmem:[#allocation2 + $0xc4] sm:$0xf]  ;;  %v3397_v40 = vld [vmem:[#allocation2 + $0xc8] sm:$0x1] }
  0xe9   : > { %v7987_v5 = vpop.f32.mrf.mxu1  ;;  %v3539_v63 = vrot.slane %v3390_v39, 5  ;;  %v6509_v8 = vcombine.low %v8019_v41, %v8028_v48  ;;  %v8058_v9 = vsel %vm7558_vm9, %v6495_v34, %v3525_v31  ;;  %v8062_v10 = vsel %vm7558_vm9, %v3527_v44, %v3528_v43  ;;  %v3395_v31 = vld [vmem:[#allocation2 + $0xc0] sm:$0xe]  ;;  %v406_v44 = vld [vmem:[%s7831_s19 + $0xc] sm:$0xf] }
  0xea   : > { %v7992_v54 = vpop.f32.mrf.mxu0  ;;  %7175 = vmatmul.mubr.msk.bf16.gmra.mxu0 %vm529_vm2, %v7344_v2  ;;  %v3542_v2 = vrot.slane %v3391_v57, 5  ;;  %v6498_v14 = vrot.slane %v3392_v3, 9  ;;  %v8068_v15 = vsel %vm7558_vm9, %v6496_v36, %v3532_v45  ;;  %v8072_v16 = vsel %vm7558_vm9, %v3534_v56, %v3535_v42  ;;  %v407_v39 = vld [vmem:[%s7831_s19 + $0x10] sm:$0xf]  ;;  %413 = vst.msk [vmem:[#allocation2 + $0xcc] sm:$0xf] %vm353_vm1, %v406_v44 }
  0xeb   : > { %v7998_v18 = vpop.f32.mrf.mxu1  ;;  %7178 = vmatprep.mubr.msk.bf16.mxu0 %vm529_vm2, %v7345_v11  ;;  %v3541_v19 = vrot.slane %v3539_v63, 4  ;;  %v3546_v20 = vrot.slane %v3393_v12, 5  ;;  %v8084_v25 = vsel %vm7558_vm9, %v6497_v60, %v3539_v63  ;;  %v3549_v29 = vrot.slane %v3394_v13, 5  ;;  %v4339_v56 = vld [vmem:[#allocation2 + $0x18] sm:$0xf] }
  0xec   : > { %v8000_v24 = vpop.f32.mrf.mxu0  ;;  %7145 = vmatmul.mubr.msk.bf16.gmra.mxu1 %vm529_vm2, %v6506_v21  ;;  %v6499_v41 = vrot.slane %v3395_v31, 9  ;;  %v3553_v42 = vrot.slane %v3396_v32, 5  ;;  %v3556_v50 = vrot.slane %v3397_v40, 5  ;;  %414 = vst.msk [vmem:[#allocation2 + $0xd0] sm:$0xf] %vm353_vm1, %v407_v39  ;;  %v4388_v3 = vshrl.u32 %v4339_v56, 16 }
  0xed   : > { %v8010_v30 = vpop.f32.mrf.mxu1  ;;  %7148 = vmatprep.mubr.msk.bf16.mxu1 %vm529_vm2, %v6507_v33  ;;  %v8088_v33 = vsel %vm7558_vm9, %v3541_v19, %v3542_v2  ;;  %v8094_v43 = vsel %vm7558_vm9, %v6498_v14, %v3546_v20  ;;  %v3548_v38 = vrot.slane %v3546_v20, 4  ;;  %v4340_v63 = vld [vmem:[#allocation2 + $0x1c] sm:$0xf]  ;;  %v4341_v2 = vld [vmem:[#allocation2 + $0x20] sm:$0x1]  ;;  %v4391_v12 = vshll.u32 %v4339_v56, 16 }
  0xee   : > { %v8012_v37 = vpop.f32.mrf.mxu0  ;;  %v8126_v19 = vsel %vm7558_vm9, %v6499_v41, %v3553_v42  ;;  %v3555_v20 = vrot.slane %v3553_v42, 4  ;;  %v5129_v31 = vld [vmem:[#allocation2 + $0x18] sm:$0xe]  ;;  %v5130_v32 = vld [vmem:[#allocation2 + $0x1c] sm:$0xf]  ;;  %v4390_v26 = vrot.slane %v4388_v3, 4 }
  0xef   : > { %v8021_v6 = vpop.f32.mrf.mxu1  ;;  %v8113_v60 = vsel %vm7558_vm9, %v3548_v38, %v3549_v29  ;;  %v4397_v29 = vshll.u32 %v4340_v63, 16  ;;  %v4393_v27 = vrot.slane %v4391_v12, 5  ;;  %v4407_v40 = vshll.u32 %v4341_v2, 16  ;;  %v5131_v44 = vld [vmem:[#allocation2 + $0x20] sm:$0x1]  ;;  %v7349_v39 = vld [vmem:[#allocation2 + $0x78] sm:$0xff]  }
  0xf0   : > { %v8030_v49 = vpop.f32.mrf.mxu0  ;;  %v8135_v41 = vsel %vm7558_vm9, %v3555_v20, %v3556_v50  ;;  %v6599_v14 = vrot.slane %v5129_v31, 9  ;;  %v5227_v57 = vrot.slane %v5130_v32, 5  ;;  %v4342_v48 = vld [vmem:[#allocation2 + $0x24] sm:$0xf]  ;;  %v4343_v12 = vld [vmem:[#allocation2 + $0x28] sm:$0xf] }
  0xf1   : > { %v8041_v53 = vpop.f32.mrf.mxu1  ;;  %v4399_v42 = vrot.slane %v4397_v29, 5  ;;  %v4394_v3 = vor.u32 %v4393_v27, %v4390_v26  ;;  %v4409_v2 = vrot.slane %v4407_v40, 5  ;;  %v4344_v22 = vld [vmem:[#allocation2 + $0x2c] sm:$0x1]  ;;  %v5230_v29 = vrot.slane %v5131_v44, 5 }
  0xf2   : > { %8859 = vst [vmem:[#allocation4_spill] sm:$0xff] %v8041_v53  ;;  %v8052_v58 = vpop.f32.mrf.mxu0  ;;  %7179 = vmatmul.mubr.msk.bf16.gmra.mxu0 %vm529_vm2, %v7346_v35  ;;  %v8145_v50 = vsel %vm7558_vm9, %v6599_v14, %v5227_v57  ;;  %v5229_v20 = vrot.slane %v5227_v57, 4  ;;  %v4412_v31 = vshrl.u32 %v4342_v48, 16  ;;  %v5132_v32 = vld [vmem:[#allocation2 + $0x24] sm:$0xe]  ;;  %v4421_v26 = vshll.u32 %v4343_v12, 16 }
  0xf3   : > { %v8064_v11 = vpop.f32.mrf.mxu1  ;;  %7182 = vmatprep.mubr.msk.bf16.mxu0 %vm529_vm2, %v7347_v4  ;;  %v7348_v4 = vld [vmem:[#allocation2 + $0x6c] sm:$0xff]   ;;  %v4425_v40 = vshrl.u32 %v4343_v12, 16  ;;  %v4431_v57 = vshll.u32 %v4344_v22, 16 }
  0xf4   : > { %8860 = vst [vmem:[#allocation5_spill] sm:$0xff] %v8064_v11  ;;  %v8074_v17 = vpop.f32.mrf.mxu0  ;;  %7149 = vmatmul.mubr.msk.bf16.gmra.mxu1 %vm529_vm2, %v6508_v47  ;;  %v4401_v47 = vshrl.u32 %v4340_v63, 16  ;;  %v4414_v14 = vrot.slane %v4412_v31, 4  ;;  %v6600_v31 = vrot.slane %v5132_v32, 9 }
  0xf5   : > { %v8080_v23 = vpop.f32.mrf.mxu1  ;;  %7152 = vmatprep.mubr.msk.bf16.mxu1 %vm529_vm2, %v6509_v8  ;;  %v4415_v8 = vshll.u32 %v4342_v48, 16  ;;  %v4427_v12 = vrot.slane %v4425_v40, 4 }
  0xf6   : > { %8861 = vst [vmem:[#allocation6_spill] sm:$0xff] %v8080_v23  ;;  %v8090_v34 = vpop.f32.mrf.mxu0  ;;  %v4403_v63 = vrot.slane %v4401_v47, 4  ;;  %v8154_v47 = vsel %vm7558_vm9, %v5229_v20, %v5230_v29  ;;  %v8867_v20 = vcombine.low %v8035_v51, %v8039_v52  ;;  %v4433_v29 = vrot.slane %v4431_v57, 5  ;;  %v4345_v23 = vld [vmem:[#allocation2 + $0x30] sm:$0xf] }
  0xf7   : > { %v8102_v36 = vpop.f32.mrf.mxu1  ;;  %v4436_v57 = vshrl.u32 %v4345_v23, 16 }
  0xf8   : > { %8862 = vst [vmem:[#allocation7_spill] sm:$0xff] %v8102_v36  ;;  %v8109_v35 = vpop.f32.mrf.mxu0  ;;  %v4404_v36 = vor.u32 %v4403_v63, %v4399_v42  ;;  %v4417_v63 = vrot.slane %v4415_v8, 5 }
  0xf9   : > { %v8120_v13 = vpop.f32.mrf.mxu1 }
  0xfa   : > { %8863 = vst [vmem:[#allocation8_spill] sm:$0xff] %v8120_v13  ;;  %v8129_v38 = vpop.f32.mrf.mxu0  ;;  %v4395_v13 = vrot.slane %v4394_v3, 4  ;;  %7183 = vmatmul.mubr.msk.bf16.gmra.mxu0 %vm529_vm2, %v7348_v4  ;;  %v4405_v48 = vrot.slane %v4404_v36, 4  ;;  %v8869_v36 = vcombine.low %v8046_v61, %v8050_v62  ;;  %v4418_v51 = vor.u32 %v4417_v63, %v4414_v14  ;;  %v7350_v4 = vld [vmem:[#allocation2 + $0x84] sm:$0xff]   ;;  %v7351_v61 = vld [vmem:[#allocation2 + $0x90] sm:$0xff]  }
  0xfb   : > { %v8131_v56 = vpop.f32.mrf.mxu1  ;;  %7186 = vmatprep.mubr.msk.bf16.mxu0 %vm529_vm2, %v7349_v39  ;;  %v4423_v39 = vrot.slane %v4421_v26, 5  ;;  %v4438_v63 = vrot.slane %v4436_v57, 4 }
  0xfc   : > { %8864 = vst [vmem:[#allocation9_spill] sm:$0xff] %v8131_v56  ;;  %v8137_v45 = vpop.f32.mrf.mxu0  ;;  %v4400_v3 = vsel %vm7551_vm8, %v4395_v13, %v4399_v42  ;;  %7153 = vmatmul.mubr.msk.bf16.gmra.mxu1 %vm529_vm2, %v8867_v20  ;;  %v4410_v42 = vsel %vm7551_vm8, %v4405_v48, %v4409_v2  ;;  %v4346_v20 = vld [vmem:[#allocation2 + $0x34] sm:$0xf]  ;;  %v4347_v48 = vld [vmem:[#allocation2 + $0x38] sm:$0x1] }
  0xfd   : > { %v8141_v21 = vpop.f32.mrf.mxu1  ;;  %7156 = vmatprep.mubr.msk.bf16.mxu1 %vm529_vm2, %v8869_v36  ;;  %v8179_v40 = vcombine.low %v4400_v3, %v4410_v42  ;;  %v4428_v32 = vor.u32 %v4427_v12, %v4423_v39  ;;  %v4419_v36 = vrot.slane %v4418_v51, 4  ;;  %v4445_v14 = vshll.u32 %v4346_v20, 16  ;;  %v5135_v51 = vld [vmem:[#allocation2 + $0x30] sm:$0xe] }
  0xfe   : > { %8865 = vst [vmem:[#allocation10_spill] sm:$0xff] %v8141_v21  ;;  %v8147_v56 = vpop.f32.mrf.mxu0  ;;  %v5134_v21 = vld [vmem:[#allocation2 + $0x2c] sm:$0x1] }
  0xff   : > { %v8150_v27 = vpop.f32.mrf.mxu1  ;;  %v5237_v8 = vrot.slane %v5134_v21, 5  ;;  %v4429_v21 = vrot.slane %v4428_v32, 4 }
 0x100   : > { %8866 = vst [vmem:[#allocation11_spill] sm:$0xff] %v8150_v27  ;;  %v8157_v44 = vpop.f32.mrf.mxu0  ;;  %v5133_v27 = vld [vmem:[#allocation2 + $0x28] sm:$0xf] }
 0x101   : > { %v8167_v22 = vpop.f32.mrf.mxu1  ;;  %v5234_v52 = vrot.slane %v5133_v27, 5  ;;  %v4434_v32 = vsel %vm7551_vm8, %v4429_v21, %v4433_v29  ;;  %v8871_v29 = vcombine.low %v8058_v9, %v8062_v10  ;;  %v4349_v9 = vld [vmem:[#allocation2 + $0x40] sm:$0xf] }
 0x102   : > { %8868 = vst [vmem:[#allocation12_spill] sm:$0xff] %v8167_v22  ;;  %v8173_v13 = vpop.f32.mrf.mxu0  ;;  %v4439_v22 = vshll.u32 %v4345_v23, 16  ;;  %v4424_v23 = vsel %vm7551_vm8, %v4419_v36, %v4423_v39  ;;  %7187 = vmatmul.mubr.msk.bf16.gmra.mxu0 %vm529_vm2, %v7350_v4  ;;  %v5137_v39 = vld [vmem:[#allocation2 + $0x38] sm:$0x1]  ;;  %v4455_v4 = vshll.u32 %v4347_v48, 16  ;;  %v7352_v10 = vld [vmem:[#allocation2 + $0x9c] sm:$0xff]  }
 0x103   : > { %v8177_v26 = vpop.f32.mrf.mxu1  ;;  %v8183_v11 = vsel %vm7558_vm9, %v6600_v31, %v5234_v52  ;;  %v5236_v2 = vrot.slane %v5234_v52, 4  ;;  %v4447_v31 = vrot.slane %v4445_v14, 5  ;;  %v5136_v52 = vld [vmem:[#allocation2 + $0x34] sm:$0xf]  ;;  %7190 = vmatprep.mubr.msk.bf16.mxu0 %vm529_vm2, %v7351_v61  ;;  %v8200_v36 = vcombine.low %v4424_v23, %v4434_v32  ;;  %v7353_v23 = vld [vmem:[#allocation2 + $0xa8] sm:$0xff]  }
 0x104   : > { %8870 = vst [vmem:[#allocation13_spill] sm:$0xff] %v8177_v26  ;;  %v7036_v62 = vpop.f32.mrf.mxu0  ;;  %v4441_v53 = vrot.slane %v4439_v22, 5  ;;  %v4449_v26 = vshrl.u32 %v4346_v20, 16  ;;  %7157 = vmatmul.mubr.msk.bf16.gmra.mxu1 %vm529_vm2, %v8871_v29  ;;  %v4348_v22 = vld [vmem:[#allocation2 + $0x3c] sm:$0xf]  ;;  %v8872_v61 = vcombine.low %v8068_v15, %v8072_v16  ;;  %v4457_v48 = vrot.slane %v4455_v4, 5 }
 0x105   : > { %v7002_v27 = vpop.f32.mrf.mxu1  ;;  %v8190_v12 = vsel %vm7558_vm9, %v5236_v2, %v5237_v8  ;;  %v5139_v4 = vld [vmem:[#allocation2 + $0x40] sm:$0xf] }
 0x106   : > { %v1506_v3 = vadd.f32 %v7002_v27, %v7955_v46  ;;  %v1914_v42 = vpop.f32.mrf.mxu0  ;;  %v4442_v20 = vor.u32 %v4441_v53, %v4438_v63  ;;  %v4451_v57 = vrot.slane %v4449_v26, 4  ;;  %v6601_v26 = vrot.slane %v5135_v51, 9  ;;  %7160 = vmatprep.mubr.msk.bf16.mxu1 %vm529_vm2, %v8872_v61 }
 0x107   : > { %v1345_v46 = vpop.f32.mrf.mxu1  ;;  %v5241_v63 = vrot.slane %v5136_v52, 5 }
 0x108   : > { %v8198_v8 = vadd.f32 %v7036_v62, %v1506_v3  ;;  %v1504_v2 = vadd.f32 %v1345_v46, %v7967_v55  ;;  %v7037_v14 = vpop.f32.mrf.mxu0  ;;  %v4443_v21 = vrot.slane %v4442_v20, 4  ;;  %v4452_v53 = vor.u32 %v4451_v57, %v4447_v31 }
 0x109   : > { %v7003_v27 = vpop.f32.mrf.mxu1  ;;  %v5244_v3 = vrot.slane %v5137_v39, 5  ;;  %v8218_v15 = vsel %vm7558_vm9, %v6601_v26, %v5241_v63  ;;  %v5243_v16 = vrot.slane %v5241_v63, 4  ;;  %v4460_v57 = vshrl.u32 %v4348_v22, 16  ;;  %v4351_v26 = vld [vmem:[#allocation2 + $0x48] sm:$0xf] }
 0x10a   : > { %v8211_v62 = vadd.f32 %v1914_v42, %v1504_v2  ;;  %v1507_v55 = vadd.f32 %v7003_v27, %v7980_v0  ;;  %v1917_v46 = vpop.f32.mrf.mxu0  ;;  %v4448_v51 = vsel %vm7551_vm8, %v4443_v21, %v4447_v31  ;;  %v4453_v52 = vrot.slane %v4452_v53, 4  ;;  %v4350_v42 = vld [vmem:[#allocation2 + $0x44] sm:$0x1]  ;;  %v5138_v2 = vld [vmem:[#allocation2 + $0x3c] sm:$0xe]  ;;  %7191 = vmatmul.mubr.msk.bf16.gmra.mxu0 %vm529_vm2, %v7352_v10 }
 0x10b   : > { %v1348_v32 = vpop.f32.mrf.mxu1  ;;  %v4463_v39 = vshll.u32 %v4348_v22, 16  ;;  %v8227_v31 = vsel %vm7558_vm9, %v5243_v16, %v5244_v3  ;;  %v4469_v27 = vshll.u32 %v4349_v9, 16  ;;  %v4473_v21 = vshrl.u32 %v4349_v9, 16  ;;  %v5140_v53 = vld [vmem:[#allocation2 + $0x44] sm:$0x1]  ;;  %7194 = vmatprep.mubr.msk.bf16.mxu0 %vm529_vm2, %v7353_v23 }
 0x10c   : > { %v8220_v20 = vadd.f32 %v7037_v14, %v1507_v55  ;;  %v1505_v0 = vadd.f32 %v1348_v32, %v7992_v54  ;;  %v4458_v29 = vsel %vm7551_vm8, %v4453_v52, %v4457_v48  ;;  %v4462_v22 = vrot.slane %v4460_v57, 4  ;;  %v4354_v54 = vld [vmem:[#allocation2 + $0x54] sm:$0xf] }
 0x10d   : > { %v8231_v14 = vcombine.low %v4448_v51, %v4458_v29  ;;  %v7040_v61 = vpop.f32.mrf.mxu0  ;;  %v4465_v55 = vrot.slane %v4463_v39, 5  ;;  %v4471_v48 = vrot.slane %v4469_v27, 5  ;;  %v4475_v32 = vrot.slane %v4473_v21, 4  ;;  %v7006_v9 = vpop.f32.mrf.mxu1  ;;  %v4352_v21 = vld [vmem:[#allocation2 + $0x4c] sm:$0xf] }
 0x10e   : > { %v8229_v63 = vadd.f32 %v1917_v46, %v1505_v0  ;;  %v4479_v3 = vshll.u32 %v4350_v42, 16  ;;  %v6602_v52 = vrot.slane %v5138_v2, 9  ;;  %v5248_v16 = vrot.slane %v5139_v4, 5 }
 0x10f   : > { %v5251_v46 = vrot.slane %v5140_v53, 5  ;;  %v4484_v0 = vshrl.u32 %v4351_v26, 16  ;;  %v8873_v51 = vcombine.low %v8084_v25, %v8088_v33  ;;  %v1510_v57 = vadd.f32 %v7006_v9, %v8000_v24  ;;  %v1930_v27 = vpop.f32.mrf.mxu0  ;;  %v1361_v25 = vpop.f32.mrf.mxu1  ;;  %v7354_v53 = vld [vmem:[#allocation2 + $0xb4] sm:$0xff]   ;;  %v4353_v9 = vld [vmem:[#allocation2 + $0x50] sm:$0x1] }
 0x110   : > { %v4466_v10 = vor.u32 %v4465_v55, %v4462_v22  ;;  %v4476_v29 = vor.u32 %v4475_v32, %v4471_v48  ;;  %v4481_v39 = vrot.slane %v4479_v3, 5  ;;  %v8874_v23 = vcombine.low %v8094_v43, %v8113_v60  ;;  %v7355_v43 = vld [vmem:[#allocation2 + $0xc0] sm:$0xff]  }
 0x111   : > { %7161 = vmatmul.mubr.msk.bf16.gmra.mxu1 %vm529_vm2, %v8873_v51  ;;  %v8248_v42 = vsel %vm7558_vm9, %v6602_v52, %v5248_v16  ;;  %v5250_v2 = vrot.slane %v5248_v16, 4  ;;  %v4486_v33 = vrot.slane %v4484_v0, 4  ;;  %v4487_v4 = vshll.u32 %v4351_v26, 16  ;;  %v7041_v3 = vpop.f32.mrf.mxu0  ;;  %v7007_v52 = vpop.f32.mrf.mxu1  ;;  %v5141_v0 = vld [vmem:[#allocation2 + $0x48] sm:$0xe] }
 0x112   : > { %7164 = vmatprep.mubr.msk.bf16.mxu1 %vm529_vm2, %v8874_v23  ;;  %v8250_v24 = vadd.f32 %v7040_v61, %v1510_v57  ;;  %v4467_v22 = vrot.slane %v4466_v10, 4  ;;  %v4477_v55 = vrot.slane %v4476_v29, 4  ;;  %v1508_v32 = vadd.f32 %v1361_v25, %v8012_v37  ;;  %v5142_v10 = vld [vmem:[#allocation2 + $0x4c] sm:$0xf]  ;;  %v5143_v29 = vld [vmem:[#allocation2 + $0x50] sm:$0x1]  ;;  %7195 = vmatmul.mubr.msk.bf16.gmra.mxu0 %vm529_vm2, %v7354_v53 }
 0x113   : > { %v8255_v60 = vsel %vm7558_vm9, %v5250_v2, %v5251_v46  ;;  %v4489_v51 = vrot.slane %v4487_v4, 5  ;;  %v4493_v16 = vshll.u32 %v4352_v21, 16  ;;  %v4497_v23 = vshrl.u32 %v4352_v21, 16  ;;  %v1364_v25 = vpop.f32.mrf.mxu1  ;;  %7198 = vmatprep.mubr.msk.bf16.mxu0 %vm529_vm2, %v7355_v43 }
 0x114   : > { %v4472_v26 = vsel %vm7551_vm8, %v4467_v22, %v4471_v48  ;;  %v4482_v61 = vsel %vm7551_vm8, %v4477_v55, %v4481_v39  ;;  %v8263_v57 = vadd.f32 %v1930_v27, %v1508_v32  ;;  %v1511_v2 = vadd.f32 %v7007_v52, %v8030_v49  ;;  %v1933_v39 = vpop.f32.mrf.mxu0  ;;  %v4355_v49 = vld [vmem:[#allocation2 + $0x58] sm:$0xf] }
 0x115   : > { %v8265_v46 = vcombine.low %v4472_v26, %v4482_v61  ;;  %v4490_v21 = vor.u32 %v4489_v51, %v4486_v33  ;;  %v4495_v4 = vrot.slane %v4493_v16, 5  ;;  %v1509_v48 = vadd.f32 %v1364_v25, %v8052_v58  ;;  %v4356_v51 = vld [vmem:[#allocation2 + $0x5c] sm:$0x1]  ;;  %v5144_v16 = vld [vmem:[#allocation2 + $0x54] sm:$0xe] }
 0x116   : > { %v4499_v22 = vrot.slane %v4497_v23, 4  ;;  %v4503_v55 = vshll.u32 %v4353_v9, 16  ;;  %v6603_v37 = vrot.slane %v5141_v0, 9  ;;  %v8271_v27 = vadd.f32 %v7041_v3, %v1511_v2  ;;  %v7356_v23 = vld [vmem:[#allocation2 + $0xcc] sm:$0xff]  }
 0x117   : > { %v4491_v32 = vrot.slane %v4490_v21, 4  ;;  %v5255_v26 = vrot.slane %v5142_v10, 5  ;;  %v5258_v61 = vrot.slane %v5143_v29, 5  ;;  %v8875_v33 = vcombine.low %v8126_v19, %v8135_v41  ;;  %v7044_v10 = vpop.f32.mrf.mxu0  ;;  %v5145_v21 = vld [vmem:[#allocation2 + $0x58] sm:$0xf] }
 0x118   : > { %v8277_v53 = vadd.f32 %v1933_v39, %v1509_v48  ;;  %v4500_v58 = vor.u32 %v4499_v22, %v4495_v4  ;;  %v4505_v52 = vrot.slane %v4503_v55, 5  ;;  %v4508_v9 = vshrl.u32 %v4354_v54, 16 }
 0x119   : > { %7165 = vmatmul.mubr.msk.bf16.gmra.mxu1 %vm529_vm2, %v8875_v33  ;;  %v4496_v3 = vsel %vm7551_vm8, %v4491_v32, %v4495_v4  ;;  %v8285_v43 = vsel %vm7558_vm9, %v6603_v37, %v5255_v26  ;;  %v5257_v19 = vrot.slane %v5255_v26, 4  ;;  %v4511_v41 = vshll.u32 %v4354_v54, 16  ;;  %v5146_v4 = vld [vmem:[#allocation2 + $0x5c] sm:$0x1]  ;;  %v4357_v33 = vld [vmem:[#allocation2 + $0x60] sm:$0xf] }
 0x11a   : > { %7204 = vmatprep.mubr.msk.bf16.mxu1 %vm529_vm2, %v8179_v40  ;;  %v4501_v0 = vrot.slane %v4500_v58, 4  ;;  %v4510_v29 = vrot.slane %v4508_v9, 4  ;;  %v4517_v2 = vshll.u32 %v4355_v49, 16  ;;  %v4521_v25 = vshrl.u32 %v4355_v49, 16  ;;  %v7010_v40 = vpop.f32.mrf.mxu1  ;;  %v1946_v49 = vpop.f32.mrf.mxu0  ;;  %7199 = vmatmul.mubr.msk.bf16.gmra.mxu0 %vm529_vm2, %v7356_v23 }
 0x11b   : > { %v8289_v48 = vsel %vm7558_vm9, %v5257_v19, %v5258_v61  ;;  %v4513_v39 = vrot.slane %v4511_v41, 5  ;;  %v4527_v22 = vshll.u32 %v4356_v51, 16  ;;  %v6604_v55 = vrot.slane %v5144_v16, 9 }
 0x11c   : > { %v4506_v37 = vsel %vm7551_vm8, %v4501_v0, %v4505_v52  ;;  %v1514_v32 = vadd.f32 %v7010_v40, %v8074_v17  ;;  %v4519_v26 = vrot.slane %v4517_v2, 5  ;;  %v4523_v9 = vrot.slane %v4521_v25, 4  ;;  %v1377_v41 = vpop.f32.mrf.mxu1  ;;  %v7045_v54 = vpop.f32.mrf.mxu0  ;;  %v4358_v25 = vld [vmem:[#allocation2 + $0x64] sm:$0xf] }
 0x11d   : > { %v8296_v58 = vcombine.low %v4496_v3, %v4506_v37  ;;  %v4514_v61 = vor.u32 %v4513_v39, %v4510_v29  ;;  %v4529_v19 = vrot.slane %v4527_v22, 5  ;;  %v5262_v16 = vrot.slane %v5145_v21, 5 }
 0x11e   : > { %v8299_v51 = vadd.f32 %v7044_v10, %v1514_v32  ;;  %v5265_v52 = vrot.slane %v5146_v4, 5  ;;  %v1512_v0 = vadd.f32 %v1377_v41, %v8090_v34  ;;  %v8876_v17 = vcombine.low %v8145_v50, %v8154_v47  ;;  %v7011_v29 = vpop.f32.mrf.mxu1  ;;  %v4359_v4 = vld [vmem:[#allocation2 + $0x68] sm:$0x1] }
 0x11f   : > { %v4515_v3 = vrot.slane %v4514_v61, 4  ;;  %v4524_v2 = vor.u32 %v4523_v9, %v4519_v26  ;;  %v4532_v40 = vshrl.u32 %v4357_v33, 16  ;;  %v4535_v39 = vshll.u32 %v4357_v33, 16  ;;  %v5147_v61 = vld [vmem:[#allocation2 + $0x60] sm:$0xe] }
 0x120   : > { %7238 = vmatprep.mubr.msk.bf16.mxu0 %vm529_vm2, %v8876_v17  ;;  %v8310_v23 = vsel %vm7558_vm9, %v6604_v55, %v5262_v16  ;;  %v5264_v34 = vrot.slane %v5262_v16, 4  ;;  %v8312_v10 = vadd.f32 %v1946_v49, %v1512_v0  ;;  %v1515_v50 = vadd.f32 %v7011_v29, %v8109_v35  ;;  %v1380_v22 = vpop.f32.mrf.mxu1  ;;  %v1949_v35 = vpop.f32.mrf.mxu0  ;;  %v5149_v0 = vld [vmem:[#allocation2 + $0x68] sm:$0x1]  ;;  %v4360_v17 = vld [vmem:[#allocation2 + $0x6c] sm:$0xf] }
 0x121   : > { %7205 = vmatmul.mubr.msk.bf16.vlgmr.msra.gmra.mxu1 %vm529_vm2, %v8200_v36  ;;  %v4520_v47 = vsel %vm7551_vm8, %v4515_v3, %v4519_v26  ;;  %v4525_v21 = vrot.slane %v4524_v2, 4  ;;  %v4534_v37 = vrot.slane %v4532_v40, 4  ;;  %v4537_v36 = vrot.slane %v4535_v39, 5 }
 0x122   : > { %7208 = vmatprep.mubr.msk.bf16.mxu1 %vm529_vm2, %v8231_v14  ;;  %v8321_v55 = vsel %vm7558_vm9, %v5264_v34, %v5265_v52  ;;  %v8323_v32 = vadd.f32 %v7045_v54, %v1515_v50  ;;  %v1513_v49 = vadd.f32 %v1380_v22, %v8129_v38  ;;  %v4541_v33 = vshll.u32 %v4358_v25, 16  ;;  %v5148_v14 = vld [vmem:[#allocation2 + $0x64] sm:$0xf]  ;;  %v4361_v34 = vld [vmem:[#allocation2 + $0x70] sm:$0xf] }
 0x123   : > { %v4530_v26 = vsel %vm7551_vm8, %v4525_v21, %v4529_v19  ;;  %v6621_v9 = vcombine.low %v8310_v23, %v8321_v55  ;;  %v4538_v41 = vor.u32 %v4537_v36, %v4534_v37  ;;  %v4545_v16 = vshrl.u32 %v4358_v25, 16  ;;  %v7048_v21 = vpop.f32.mrf.mxu0  ;;  %v4362_v22 = vld [vmem:[#allocation2 + $0x74] sm:$0x1]  ;;  %v5158_v55 = vld [vmem:[#allocation2 + $0x8c] sm:$0x1] }
 0x124   : > { %v8330_v52 = vcombine.low %v4520_v47, %v4530_v26  ;;  %v8332_v54 = vadd.f32 %v1949_v35, %v1513_v49  ;;  %v4543_v3 = vrot.slane %v4541_v33, 5  ;;  %v4551_v38 = vshll.u32 %v4359_v4, 16  ;;  %v7014_v35 = vpop.f32.mrf.mxu1  ;;  %v5150_v33 = vld [vmem:[#allocation2 + $0x6c] sm:$0xe]  ;;  %v5151_v26 = vld [vmem:[#allocation2 + $0x70] sm:$0xf] }
 0x125   : > { %v4539_v2 = vrot.slane %v4538_v41, 4  ;;  %v4547_v29 = vrot.slane %v4545_v16, 4  ;;  %v6605_v40 = vrot.slane %v5147_v61, 9  ;;  %v5269_v39 = vrot.slane %v5148_v14, 5  ;;  %v1962_v41 = vpop.f32.mrf.mxu0 }
 0x126   : > { %v8877_v19 = vcombine.low %v8183_v11, %v8190_v12  ;;  %v4553_v50 = vrot.slane %v4551_v38, 5  ;;  %v5272_v25 = vrot.slane %v5149_v0, 5  ;;  %v4556_v47 = vshrl.u32 %v4360_v17, 16  ;;  %v5152_v38 = vld [vmem:[#allocation2 + $0x74] sm:$0x1] }
 0x127   : > { %v4559_v37 = vshll.u32 %v4360_v17, 16  ;;  %v8878_v36 = vcombine.low %v8218_v15, %v8227_v31  ;;  %v4544_v4 = vsel %vm7551_vm8, %v4539_v2, %v4543_v3  ;;  %v4548_v49 = vor.u32 %v4547_v29, %v4543_v3  ;;  %v1393_v2 = vpop.f32.mrf.mxu1 }
 0x128   : > { %7239 = vmatmul.mubr.msk.bf16.vlgmr.msra.gmra.mxu0 %vm529_vm2, %v8877_v19  ;;  %v8346_v11 = vsel %vm7558_vm9, %v6605_v40, %v5269_v39  ;;  %v5271_v12 = vrot.slane %v5269_v39, 4  ;;  %v1518_v61 = vadd.f32 %v7014_v35, %v8137_v45  ;;  %v4558_v14 = vrot.slane %v4556_v47, 4  ;;  %v7049_v39 = vpop.f32.mrf.mxu0  ;;  %v4363_v19 = vld [vmem:[#allocation2 + $0x78] sm:$0xf] }
 0x129   : > { %7242 = vmatprep.mubr.msk.bf16.mxu0 %vm529_vm2, %v8878_v36  ;;  %7209 = vmatmul.mubr.msk.bf16.gmra.mxu1 %vm529_vm2, %v8265_v46  ;;  %v4561_v15 = vrot.slane %v4559_v37, 5  ;;  %v4565_v31 = vshll.u32 %v4361_v34, 16  ;;  %v4549_v16 = vrot.slane %v4548_v49, 4  ;;  %v4569_v17 = vshrl.u32 %v4361_v34, 16  ;;  %v7015_v36 = vpop.f32.mrf.mxu1 }
 0x12a   : > { %7212 = vmatprep.mubr.msk.bf16.mxu1 %vm529_vm2, %v8296_v58  ;;  %v8355_v0 = vsel %vm7558_vm9, %v5271_v12, %v5272_v25  ;;  %v4575_v3 = vshll.u32 %v4362_v22, 16  ;;  %v8359_v46 = vadd.f32 %v7048_v21, %v1518_v61  ;;  %v6606_v25 = vrot.slane %v5150_v33, 9 }
 0x12b   : > { %v4562_v29 = vor.u32 %v4561_v15, %v4558_v14  ;;  %v4567_v40 = vrot.slane %v4565_v31, 5  ;;  %v4554_v58 = vsel %vm7551_vm8, %v4549_v16, %v4553_v50  ;;  %v4571_v47 = vrot.slane %v4569_v17, 4  ;;  %v1396_v61 = vpop.f32.mrf.mxu1  ;;  %v4364_v14 = vld [vmem:[#allocation2 + $0x7c] sm:$0xf] }
 0x12c   : > { %v4577_v37 = vrot.slane %v4575_v3, 5  ;;  %v6573_v34 = vcombine.low %v4544_v4, %v4554_v58  ;;  %v5276_v49 = vrot.slane %v5151_v26, 5  ;;  %v5279_v12 = vrot.slane %v5152_v38, 5  ;;  %v4365_v26 = vld [vmem:[#allocation2 + $0x80] sm:$0x1] }
 0x12d   : > { %v4563_v22 = vrot.slane %v4562_v29, 4  ;;  %v4572_v35 = vor.u32 %v4571_v47, %v4567_v40  ;;  %v1516_v45 = vadd.f32 %v1393_v2, %v8147_v56  ;;  %v1519_v21 = vadd.f32 %v7015_v36, %v8157_v44  ;;  %v1965_v44 = vpop.f32.mrf.mxu0  ;;  %v5153_v38 = vld [vmem:[#allocation2 + $0x78] sm:$0xe]  ;;  %v5154_v2 = vld [vmem:[#allocation2 + $0x7c] sm:$0xf] }
 0x12e   : > { %v4580_v15 = vshrl.u32 %v4363_v19, 16  ;;  %v8879_v31 = vcombine.low %v8248_v42, %v8255_v60  ;;  %v8373_v4 = vsel %vm7558_vm9, %v6606_v25, %v5276_v49  ;;  %v5278_v33 = vrot.slane %v5276_v49, 4  ;;  %v408_v58 = vld [vmem:[%s7831_s19 + $0x14] sm:$0x1]  ;;  %v4366_v47 = vld [vmem:[#allocation2 + $0x84] sm:$0xf] }
 0x12f   : > { %v4568_v50 = vsel %vm7551_vm8, %v4563_v22, %v4567_v40  ;;  %v1517_v56 = vadd.f32 %v1396_v61, %v8173_v13  ;;  %v8880_v16 = vcombine.low %v8285_v43, %v8289_v48  ;;  %v4573_v42 = vrot.slane %v4572_v35, 4  ;;  %v5155_v40 = vld [vmem:[#allocation2 + $0x80] sm:$0x1]  ;;  %415 = vst.msk [vmem:[#allocation2 + $0xd4] sm:$0x1] %vm356_vm5, %v408_v58  ;;  %v7052_v49 = vpop.f32.mrf.mxu0 }
 0x130   : > { %7243 = vmatmul.mubr.msk.bf16.gmra.mxu0 %vm529_vm2, %v8879_v31  ;;  %v8380_v60 = vadd.f32 %v1962_v41, %v1516_v45  ;;  %v8382_v17 = vadd.f32 %v7049_v39, %v1519_v21  ;;  %v4582_v3 = vrot.slane %v4580_v15, 4  ;;  %v8388_v13 = vsel %vm7558_vm9, %v5278_v33, %v5279_v12  ;;  %v4367_v12 = vld [vmem:[#allocation2 + $0x88] sm:$0xf]  ;;  %v7018_v15 = vpop.f32.mrf.mxu1 }
 0x131   : > { %7246 = vmatprep.mubr.msk.bf16.mxu0 %vm529_vm2, %v8880_v16  ;;  %7213 = vmatmul.mubr.msk.bf16.gmra.mxu1 %vm529_vm2, %v8330_v52  ;;  %v8390_v29 = vadd.f32 %v1965_v44, %v1517_v56  ;;  %v4583_v43 = vshll.u32 %v4363_v19, 16  ;;  %v4589_v48 = vshll.u32 %v4364_v14, 16  ;;  %v4578_v41 = vsel %vm7551_vm8, %v4573_v42, %v4577_v37  ;;  %v1978_v56 = vpop.f32.mrf.mxu0  ;;  %v4368_v16 = vld [vmem:[#allocation2 + $0x8c] sm:$0x1] }
 0x132   : > { %7216 = vmatprep.mubr.msk.bf16.mxu1 %vm529_vm2, %v6573_v34  ;;  %v6623_v45 = vcombine.low %v8373_v4, %v8388_v13  ;;  %v4593_v39 = vshrl.u32 %v4364_v14, 16  ;;  %v4599_v52 = vshll.u32 %v4365_v26, 16  ;;  %v6574_v25 = vcombine.low %v4568_v50, %v4578_v41 }
 0x133   : > { %v4585_v36 = vrot.slane %v4583_v43, 5  ;;  %v4591_v22 = vrot.slane %v4589_v48, 5  ;;  %v6607_v19 = vrot.slane %v5153_v38, 9  ;;  %v5283_v34 = vrot.slane %v5154_v2, 5  ;;  %v5156_v38 = vld [vmem:[#allocation2 + $0x84] sm:$0xe]  ;;  %v1409_v43 = vpop.f32.mrf.mxu1  ;;  %v7053_v58 = vpop.f32.mrf.mxu0 }
 0x134   : > { %v4595_v35 = vrot.slane %v4593_v39, 4  ;;  %v4601_v21 = vrot.slane %v4599_v52, 5  ;;  %v5286_v61 = vrot.slane %v5155_v40, 5  ;;  %v1522_v31 = vadd.f32 %v7018_v15, %v7960_v28  ;;  %v5157_v40 = vld [vmem:[#allocation2 + $0x88] sm:$0xf] }
 0x135   : > { %v4586_v37 = vor.u32 %v4585_v36, %v4582_v3  ;;  %v4604_v33 = vshrl.u32 %v4366_v47, 16  ;;  %v4607_v14 = vshll.u32 %v4366_v47, 16  ;;  %v5284_v50 = vsel %vm7558_vm9, %v6607_v19, %v5283_v34 }
 0x136   : > { %v4596_v44 = vor.u32 %v4595_v35, %v4591_v22  ;;  %v5285_v26 = vrot.slane %v5283_v34, 4  ;;  %v4613_v42 = vshll.u32 %v4367_v12, 16  ;;  %v8406_v2 = vadd.f32 %v7052_v49, %v1522_v31 }
 0x137   : > { %v4587_v3 = vrot.slane %v4586_v37, 4  ;;  %v4606_v28 = vrot.slane %v4604_v33, 4  ;;  %v4609_v48 = vrot.slane %v4607_v14, 5  ;;  %v8881_v41 = vcombine.low %v8346_v11, %v8355_v0 }
 0x138   : > { %7247 = vmatmul.mubr.msk.bf16.gmra.mxu0 %vm529_vm2, %v6621_v9  ;;  %v4597_v39 = vrot.slane %v4596_v44, 4  ;;  %v5287_v52 = vsel %vm7558_vm9, %v5285_v26, %v5286_v61  ;;  %v4615_v47 = vrot.slane %v4613_v42, 5  ;;  %v4617_v23 = vshrl.u32 %v4367_v12, 16  ;;  %v7019_v9 = vpop.f32.mrf.mxu1  ;;  %v4369_v61 = vld [vmem:[#allocation2 + $0x90] sm:$0xf]  ;;  %v1981_v44 = vpop.f32.mrf.mxu0 }
 0x139   : > { %7250 = vmatprep.mubr.msk.bf16.mxu0 %vm529_vm2, %v8881_v41  ;;  %7217 = vmatmul.mubr.msk.bf16.gmra.mxu1 %vm529_vm2, %v6574_v25  ;;  %v4592_v36 = vsel %vm7551_vm8, %v4587_v3, %v4591_v22  ;;  %v6624_v19 = vcombine.low %v5284_v50, %v5287_v52  ;;  %v4610_v49 = vor.u32 %v4609_v48, %v4606_v28  ;;  %v4623_v35 = vshll.u32 %v4368_v16, 16  ;;  %v4371_v3 = vld [vmem:[#allocation2 + $0x98] sm:$0x1] }
 0x13a   : > { %v4602_v11 = vsel %vm7551_vm8, %v4597_v39, %v4601_v21  ;;  %v4619_v0 = vrot.slane %v4617_v23, 4  ;;  %v6608_v34 = vrot.slane %v5156_v38, 9  ;;  %v5290_v15 = vrot.slane %v5157_v40, 5  ;;  %v1412_v37 = vpop.f32.mrf.mxu1  ;;  %v4370_v38 = vld [vmem:[#allocation2 + $0x94] sm:$0xf] }
 0x13b   : > { %v6575_v31 = vcombine.low %v4592_v36, %v4602_v11  ;;  %v4611_v12 = vrot.slane %v4610_v49, 4  ;;  %v4625_v33 = vrot.slane %v4623_v35, 5  ;;  %v5293_v14 = vrot.slane %v5158_v55, 5  ;;  %v5161_v23 = vld [vmem:[#allocation2 + $0x98] sm:$0x1]  ;;  %v7056_v55 = vpop.f32.mrf.mxu0 }
 0x13c   : > { %v4620_v25 = vor.u32 %v4619_v0, %v4615_v47  ;;  %v8421_v22 = vsel %vm7558_vm9, %v6608_v34, %v5290_v15  ;;  %v5292_v50 = vrot.slane %v5290_v15, 4  ;;  %v1520_v26 = vadd.f32 %v1409_v43, %v7973_v59  ;;  %v5159_v59 = vld [vmem:[#allocation2 + $0x90] sm:$0xe]  ;;  %v5160_v43 = vld [vmem:[#allocation2 + $0x94] sm:$0xf]  ;;  %v7022_v4 = vpop.f32.mrf.mxu1 }
 0x13d   : > { %7220 = vmatprep.mubr.msk.bf16.mxu1 %vm529_vm2, %v6575_v31  ;;  %v4616_v21 = vsel %vm7551_vm8, %v4611_v12, %v4615_v47  ;;  %v1523_v16 = vadd.f32 %v7019_v9, %v7987_v5  ;;  %v1521_v42 = vadd.f32 %v1412_v37, %v7998_v18  ;;  %v4628_v28 = vshrl.u32 %v4369_v61, 16  ;;  %v1994_v0 = vpop.f32.mrf.mxu0  ;;  %v4373_v31 = vld [vmem:[#allocation2 + $0xa0] sm:$0xf] }
 0x13e   : > { %v4621_v48 = vrot.slane %v4620_v25, 4  ;;  %v5294_v40 = vsel %vm7558_vm9, %v5292_v50, %v5293_v14  ;;  %v8431_v41 = vadd.f32 %v1978_v56, %v1520_v26  ;;  %v4631_v39 = vshll.u32 %v4369_v61, 16  ;;  %v1425_v12 = vpop.f32.mrf.mxu1  ;;  %v4374_v25 = vld [vmem:[#allocation2 + $0xa4] sm:$0x1] }
 0x13f   : > { %v6625_v5 = vcombine.low %v8421_v22, %v5294_v40  ;;  %v8438_v18 = vadd.f32 %v7053_v58, %v1523_v16  ;;  %v8440_v52 = vadd.f32 %v1981_v44, %v1521_v42  ;;  %v4630_v47 = vrot.slane %v4628_v28, 4  ;;  %v4372_v58 = vld [vmem:[#allocation2 + $0x9c] sm:$0xf]  ;;  %v7057_v22 = vpop.f32.mrf.mxu0 }
 0x140   : > { %7251 = vmatmul.mubr.msk.bf16.gmra.mxu0 %vm529_vm2, %v6623_v45  ;;  %v4626_v56 = vsel %vm7551_vm8, %v4621_v48, %v4625_v33  ;;  %v4633_v9 = vrot.slane %v4631_v39, 5  ;;  %v4637_v36 = vshll.u32 %v4370_v38, 16  ;;  %v4641_v49 = vshrl.u32 %v4370_v38, 16  ;;  %v5162_v42 = vld [vmem:[#allocation2 + $0x9c] sm:$0xe]  ;;  %v7023_v38 = vpop.f32.mrf.mxu1 }
 0x141   : > { %7254 = vmatprep.mubr.msk.bf16.mxu0 %vm529_vm2, %v6624_v19  ;;  %v6576_v13 = vcombine.low %v4616_v21, %v4626_v56  ;;  %v4647_v45 = vshll.u32 %v4371_v3, 16  ;;  %v6609_v35 = vrot.slane %v5159_v59, 9  ;;  %v5297_v11 = vrot.slane %v5160_v43, 5  ;;  %v5163_v39 = vld [vmem:[#allocation2 + $0xa0] sm:$0xf] }
 0x142   : > { %v4634_v34 = vor.u32 %v4633_v9, %v4630_v47  ;;  %v4639_v15 = vrot.slane %v4637_v36, 5  ;;  %v4643_v37 = vrot.slane %v4641_v49, 4  ;;  %v5300_v61 = vrot.slane %v5161_v23, 5  ;;  %v5164_v59 = vld [vmem:[#allocation2 + $0xa4] sm:$0x1] }
 0x143   : > { %7221 = vmatmul.mubr.msk.bf16.gmra.mxu1 %vm529_vm2, %v6576_v13  ;;  %v4649_v19 = vrot.slane %v4647_v45, 5  ;;  %v5298_v33 = vsel %vm7558_vm9, %v6609_v35, %v5297_v11  ;;  %v5299_v14 = vrot.slane %v5297_v11, 4  ;;  %v1526_v44 = vadd.f32 %v7022_v4, %v8010_v30  ;;  %v1997_v4 = vpop.f32.mrf.mxu0  ;;  %v1428_v11 = vpop.f32.mrf.mxu1 }
 0x144   : > { %v4635_v50 = vrot.slane %v4634_v34, 4  ;;  %v4644_v26 = vor.u32 %v4643_v37, %v4639_v15  ;;  %v4652_v21 = vshrl.u32 %v4372_v58, 16  ;;  %v4655_v16 = vshll.u32 %v4372_v58, 16  ;;  %v4375_v58 = vld [vmem:[#allocation2 + $0xa8] sm:$0xf] }
 0x145   : > { %v5301_v3 = vsel %vm7558_vm9, %v5299_v14, %v5300_v61  ;;  %v8451_v28 = vadd.f32 %v7056_v55, %v1526_v44  ;;  %v4661_v48 = vshll.u32 %v4373_v31, 16  ;;  %v4665_v40 = vshrl.u32 %v4373_v31, 16  ;;  %v8882_v14 = vld [vmem:[#allocation4_spill] sm:$0xff] }
 0x146   : > { %v4640_v30 = vsel %vm7551_vm8, %v4635_v50, %v4639_v15  ;;  %v4645_v43 = vrot.slane %v4644_v26, 4  ;;  %v6626_v47 = vcombine.low %v5298_v33, %v5301_v3  ;;  %v4654_v23 = vrot.slane %v4652_v21, 4  ;;  %v8883_v26 = vld [vmem:[#allocation5_spill] sm:$0xff] }
 0x147   : > { %v4657_v56 = vrot.slane %v4655_v16, 5  ;;  %v4663_v9 = vrot.slane %v4661_v48, 5  ;;  %v4667_v36 = vrot.slane %v4665_v40, 4  ;;  %v4671_v49 = vshll.u32 %v4374_v25, 16  ;;  %v4377_v16 = vld [vmem:[#allocation2 + $0xb0] sm:$0x1]  ;;  %v7060_v3 = vpop.f32.mrf.mxu0 }
 0x148   : > { %7255 = vmatmul.mubr.msk.bf16.gmra.mxu0 %vm529_vm2, %v6625_v5  ;;  %v4650_v55 = vsel %vm7551_vm8, %v4645_v43, %v4649_v19  ;;  %v6610_v13 = vrot.slane %v5162_v42, 9  ;;  %v5304_v45 = vrot.slane %v5163_v39, 5  ;;  %v5307_v35 = vrot.slane %v5164_v59, 5  ;;  %v4376_v19 = vld [vmem:[#allocation2 + $0xac] sm:$0xf]  ;;  %v7026_v59 = vpop.f32.mrf.mxu1 }
 0x149   : > { %7258 = vmatprep.mubr.msk.bf16.mxu0 %vm529_vm2, %v6626_v47  ;;  %v6577_v34 = vcombine.low %v4640_v30, %v4650_v55  ;;  %v4658_v15 = vor.u32 %v4657_v56, %v4654_v23  ;;  %v4668_v37 = vor.u32 %v4667_v36, %v4663_v9  ;;  %v4673_v61 = vrot.slane %v4671_v49, 5  ;;  %v5167_v56 = vld [vmem:[#allocation2 + $0xb0] sm:$0x1]  ;;  %v8477_v36 = vpop.f32.mrf.mxu0 }
 0x14a   : > { %v5305_v5 = vsel %vm7558_vm9, %v6610_v13, %v5304_v45  ;;  %v5306_v31 = vrot.slane %v5304_v45, 4  ;;  %v1524_v33 = vadd.f32 %v1425_v12, %v8021_v6  ;;  %v1527_v44 = vadd.f32 %v7023_v38, %v8882_v14  ;;  %v5165_v12 = vld [vmem:[#allocation2 + $0xa8] sm:$0xe]  ;;  %v5166_v38 = vld [vmem:[#allocation2 + $0xac] sm:$0xf]  ;;  %v1441_v13 = vpop.f32.mrf.mxu1 }
 0x14b   : > { %7224 = vmatprep.mubr.msk.bf16.mxu1 %vm529_vm2, %v6577_v34  ;;  %v4659_v25 = vrot.slane %v4658_v15, 4  ;;  %v4669_v50 = vrot.slane %v4668_v37, 4  ;;  %v1525_v21 = vadd.f32 %v1428_v11, %v8883_v26  ;;  %v4676_v42 = vshrl.u32 %v4375_v58, 16  ;;  %v8480_v34 = vpop.f32.mrf.mxu0 }
 0x14c   : > { %v5308_v48 = vsel %vm7558_vm9, %v5306_v31, %v5307_v35  ;;  %v8467_v40 = vadd.f32 %v1994_v0, %v1524_v33  ;;  %v8469_v39 = vadd.f32 %v7057_v22, %v1527_v44  ;;  %v4679_v6 = vshll.u32 %v4375_v58, 16  ;;  %v4378_v58 = vld [vmem:[#allocation2 + $0xb4] sm:$0xf]  ;;  %v4379_v31 = vld [vmem:[#allocation2 + $0xb8] sm:$0xf]  ;;  %v7027_v33 = vpop.f32.mrf.mxu1 }
 0x14d   : > { %v4664_v30 = vsel %vm7551_vm8, %v4659_v25, %v4663_v9  ;;  %v4674_v43 = vsel %vm7551_vm8, %v4669_v50, %v4673_v61  ;;  %v6627_v47 = vcombine.low %v5305_v5, %v5308_v48  ;;  %v8475_v23 = vadd.f32 %v1997_v4, %v1525_v21  ;;  %v8884_v61 = vld [vmem:[#allocation6_spill] sm:$0xff]  ;;  %v4380_v50 = vld [vmem:[#allocation2 + $0xbc] sm:$0x1]  ;;  %v5168_v48 = vld [vmem:[#allocation2 + $0xb4] sm:$0xe] }
 0x14e   : > { %v6578_v0 = vcombine.low %v4664_v30, %v4674_v43  ;;  %v4678_v49 = vrot.slane %v4676_v42, 4  ;;  %v4681_v22 = vrot.slane %v4679_v6, 5  ;;  %v4685_v55 = vshll.u32 %v4376_v19, 16  ;;  %v5169_v30 = vld [vmem:[#allocation2 + $0xb8] sm:$0xf] }
 0x14f   : > { %v4689_v45 = vshrl.u32 %v4376_v19, 16  ;;  %v4695_v35 = vshll.u32 %v4377_v16, 16  ;;  %v6611_v11 = vrot.slane %v5165_v12, 9  ;;  %v5311_v9 = vrot.slane %v5166_v38, 5  ;;  %v5170_v43 = vld [vmem:[#allocation2 + $0xbc] sm:$0x1] }
 0x150   : > { %7259 = vmatmul.mubr.msk.bf16.gmra.mxu0 %vm529_vm2, %v6627_v47  ;;  %7225 = vmatmul.mubr.msk.bf16.gmra.mxu1 %vm529_vm2, %v6578_v0  ;;  %v4682_v4 = vor.u32 %v4681_v22, %v4678_v49  ;;  %v4687_v15 = vrot.slane %v4685_v55, 5  ;;  %v5314_v37 = vrot.slane %v5167_v56, 5  ;;  %v1530_v5 = vadd.f32 %v7026_v59, %v8884_v61  ;;  %v2013_v47 = vpop.f32.mrf.mxu0 }
 0x151   : > { %v4691_v14 = vrot.slane %v4689_v45, 4  ;;  %v4697_v44 = vrot.slane %v4695_v35, 5  ;;  %v5312_v19 = vsel %vm7558_vm9, %v6611_v11, %v5311_v9  ;;  %v5313_v25 = vrot.slane %v5311_v9, 4 }
 0x152   : > { %v4683_v26 = vrot.slane %v4682_v4, 4  ;;  %v8486_v21 = vadd.f32 %v7060_v3, %v1530_v5  ;;  %v4700_v16 = vshrl.u32 %v4378_v58, 16  ;;  %v4703_v42 = vshll.u32 %v4378_v58, 16  ;;  %v1444_v3 = vpop.f32.mrf.mxu1 }
 0x153   : > { %v4692_v6 = vor.u32 %v4691_v14, %v4687_v15  ;;  %v5315_v12 = vsel %vm7558_vm9, %v5313_v25, %v5314_v37  ;;  %v4709_v38 = vshll.u32 %v4379_v31, 16  ;;  %v4713_v59 = vshrl.u32 %v4379_v31, 16  ;;  %v7064_v25 = vpop.f32.mrf.mxu0 }
 0x154   : > { %v4688_v56 = vsel %vm7551_vm8, %v4683_v26, %v4687_v15  ;;  %v6628_v0 = vcombine.low %v5312_v19, %v5315_v12  ;;  %v4702_v49 = vrot.slane %v4700_v16, 4  ;;  %v4705_v22 = vrot.slane %v4703_v42, 5  ;;  %v8885_v15 = vld [vmem:[#allocation7_spill] sm:$0xff]  ;;  %v4381_v19 = vld [vmem:[#allocation2 + $0xc0] sm:$0xf] }
 0x155   : > { %v4693_v55 = vrot.slane %v4692_v6, 4  ;;  %v4711_v45 = vrot.slane %v4709_v38, 5  ;;  %v4715_v35 = vrot.slane %v4713_v59, 4  ;;  %v4719_v11 = vshll.u32 %v4380_v50, 16  ;;  %v7030_v6 = vpop.f32.mrf.mxu1  ;;  %v8887_v38 = vld [vmem:[#allocation8_spill] sm:$0xff] }
 0x156   : > { %7262 = vmatprep.mubr.msk.bf16.mxu0 %vm529_vm2, %v6628_v0  ;;  %v4706_v9 = vor.u32 %v4705_v22, %v4702_v49  ;;  %v6612_v58 = vrot.slane %v5168_v48, 9  ;;  %v5318_v4 = vrot.slane %v5169_v30, 5  ;;  %v5321_v37 = vrot.slane %v5170_v43, 5  ;;  %v4382_v43 = vld [vmem:[#allocation2 + $0xc4] sm:$0xf] }
 0x157   : > { %v4698_v61 = vsel %vm7551_vm8, %v4693_v55, %v4697_v44  ;;  %v4716_v5 = vor.u32 %v4715_v35, %v4711_v45  ;;  %v4721_v31 = vrot.slane %v4719_v11, 5  ;;  %v1528_v14 = vadd.f32 %v1441_v13, %v8885_v15  ;;  %v8888_v44 = vld [vmem:[#allocation9_spill] sm:$0xff]  ;;  %v4383_v0 = vld [vmem:[#allocation2 + $0xc8] sm:$0x1]  ;;  %v8503_v13 = vpop.f32.mrf.mxu0  ;;  %v8510_v11 = vpop.f32.mrf.mxu1 }
 0x158   : > { %v6579_v26 = vcombine.low %v4688_v56, %v4698_v61  ;;  %v4707_v16 = vrot.slane %v4706_v9, 4  ;;  %v5319_v50 = vsel %vm7558_vm9, %v6612_v58, %v5318_v4  ;;  %v5320_v42 = vrot.slane %v5318_v4, 4  ;;  %v5172_v35 = vld [vmem:[#allocation2 + $0xc4] sm:$0xf]  ;;  %v5173_v4 = vld [vmem:[#allocation2 + $0xc8] sm:$0x1] }
 0x159   : > { %v4717_v12 = vrot.slane %v4716_v5, 4  ;;  %v8499_v48 = vadd.f32 %v8477_v36, %v1528_v14  ;;  %v1531_v59 = vadd.f32 %v7027_v33, %v8887_v38  ;;  %v1529_v30 = vadd.f32 %v1444_v3, %v8888_v44  ;;  %v5171_v36 = vld [vmem:[#allocation2 + $0xc0] sm:$0xe]  ;;  %v7031_v14 = vpop.f32.mrf.mxu1 }
 0x15a   : > { %7228 = vmatprep.mubr.msk.bf16.mxu1 %vm529_vm2, %v6579_v26  ;;  %v4712_v56 = vsel %vm7551_vm8, %v4707_v16, %v4711_v45  ;;  %v5322_v49 = vsel %vm7558_vm9, %v5320_v42, %v5321_v37  ;;  %v4724_v22 = vshrl.u32 %v4381_v19, 16  ;;  %v4727_v55 = vshll.u32 %v4381_v19, 16  ;;  %v8519_v45 = vpop.f32.mrf.mxu0 }
 0x15b   : > { %8886 = vst [vmem:[#allocation4_spill] sm:$0xff] %v8499_v48  ;;  %v4722_v33 = vsel %vm7551_vm8, %v4717_v12, %v4721_v31  ;;  %v6629_v3 = vcombine.low %v5319_v50, %v5322_v49  ;;  %v8515_v9 = vadd.f32 %v8480_v34, %v1531_v59  ;;  %v8517_v58 = vadd.f32 %v2013_v47, %v1529_v30  ;;  %v4384_v50 = vld [vmem:[#allocation2 + $0xcc] sm:$0xf]  ;;  %v4385_v59 = vld [vmem:[#allocation2 + $0xd0] sm:$0xf]  ;;  %v1460_v44 = vpop.f32.mrf.mxu1 }
 0x15c   : > { %v6580_v61 = vcombine.low %v4712_v56, %v4722_v33  ;;  %v4726_v37 = vrot.slane %v4724_v22, 4  ;;  %v4729_v5 = vrot.slane %v4727_v55, 5  ;;  %v4733_v15 = vshll.u32 %v4382_v43, 16  ;;  %v8891_v12 = vld [vmem:[#allocation10_spill] sm:$0xff]  ;;  %v2029_v30 = vpop.f32.mrf.mxu0 }
 0x15d   : > { %8889 = vst [vmem:[#allocation5_spill] sm:$0xff] %v8515_v9  ;;  %8890 = vst [vmem:[#allocation6_spill] sm:$0xff] %v8517_v58  ;;  %7263 = vmatmul.mubr.msk.bf16.gmra.mxu0 %vm529_vm2, %v6629_v3  ;;  %v4737_v19 = vshrl.u32 %v4382_v43, 16  ;;  %v4743_v26 = vshll.u32 %v4383_v0, 16  ;;  %v6613_v16 = vrot.slane %v5171_v36, 9  ;;  %v5325_v31 = vrot.slane %v5172_v35, 5 }
 0x15e   : > { %7229 = vmatmul.mubr.msk.bf16.gmra.mxu1 %vm529_vm2, %v6580_v61  ;;  %v4730_v34 = vor.u32 %v4729_v5, %v4726_v37  ;;  %v4735_v47 = vrot.slane %v4733_v15, 5  ;;  %v5328_v42 = vrot.slane %v5173_v4, 5  ;;  %v1534_v38 = vadd.f32 %v7030_v6, %v8891_v12  ;;  %v5174_v0 = vld [vmem:[#allocation2 + $0xcc] sm:$0xe]  ;;  %v4386_v35 = vld [vmem:[#allocation2 + $0xd4] sm:$0x1]  ;;  %v7070_v61 = vpop.f32.mrf.mxu1 }
 0x15f   : > { %v4739_v56 = vrot.slane %v4737_v19, 4  ;;  %v4745_v49 = vrot.slane %v4743_v26, 5  ;;  %v5326_v22 = vsel %vm7558_vm9, %v6613_v16, %v5325_v31  ;;  %v5327_v43 = vrot.slane %v5325_v31, 4  ;;  %v5175_v15 = vld [vmem:[#allocation2 + $0xd0] sm:$0xf] }
 0x160   : > { %v4731_v55 = vrot.slane %v4730_v34, 4  ;;  %v8526_v36 = vadd.f32 %v7064_v25, %v1534_v38  ;;  %v4748_v33 = vshrl.u32 %v4384_v50, 16  ;;  %v4751_v3 = vshll.u32 %v4384_v50, 16  ;;  %v5176_v19 = vld [vmem:[#allocation2 + $0xd4] sm:$0x1]  ;;  %v7104_v25 = vpop.f32.mrf.mxu0  ;;  %v2337_v12 = vpop.f32.mrf.mxu1 }
 0x161   : > { %v4740_v4 = vor.u32 %v4739_v56, %v4735_v47  ;;  %v5329_v6 = vsel %vm7558_vm9, %v5327_v43, %v5328_v42  ;;  %v4757_v37 = vshll.u32 %v4385_v59, 16  ;;  %v4761_v5 = vshrl.u32 %v4385_v59, 16 }
 0x162   : > { %8892 = vst [vmem:[#allocation7_spill] sm:$0xff] %v8526_v36  ;;  %v4736_v26 = vsel %vm7551_vm8, %v4731_v55, %v4735_v47  ;;  %v6630_v16 = vcombine.low %v5326_v22, %v5329_v6  ;;  %v4750_v31 = vrot.slane %v4748_v33, 4  ;;  %v4753_v34 = vrot.slane %v4751_v3, 5  ;;  %v3127_v9 = vpop.f32.mrf.mxu0  ;;  %v7071_v48 = vpop.f32.mrf.mxu1  ;;  %v8893_v33 = vld [vmem:[#allocation11_spill] sm:$0xff] }
 0x163   : > { %v4741_v38 = vrot.slane %v4740_v4, 4  ;;  %v4759_v36 = vrot.slane %v4757_v37, 5  ;;  %v4763_v50 = vrot.slane %v4761_v5, 4  ;;  %v4767_v58 = vshll.u32 %v4386_v35, 16 }
 0x164   : > { %7266 = vmatprep.mubr.msk.bf16.mxu0 %vm529_vm2, %v6630_v16  ;;  %v4754_v56 = vor.u32 %v4753_v34, %v4750_v31  ;;  %v6614_v42 = vrot.slane %v5174_v0, 9  ;;  %v5332_v43 = vrot.slane %v5175_v15, 5  ;;  %v5335_v59 = vrot.slane %v5176_v19, 5  ;;  %v7105_v5 = vpop.f32.mrf.mxu0  ;;  %v2340_v0 = vpop.f32.mrf.mxu1  ;;  %v8894_v16 = vld [vmem:[#allocation12_spill] sm:$0xff] }
 0x165   : > { %v4746_v47 = vsel %vm7551_vm8, %v4741_v38, %v4745_v49  ;;  %v4764_v22 = vor.u32 %v4763_v50, %v4759_v36  ;;  %v4769_v55 = vrot.slane %v4767_v58, 5  ;;  %v1532_v3 = vadd.f32 %v8510_v11, %v8893_v33  ;;  %v8895_v49 = vld [vmem:[#allocation13_spill] sm:$0xff] }
 0x166   : > { %v6581_v4 = vcombine.low %v4736_v26, %v4746_v47  ;;  %v4755_v6 = vrot.slane %v4754_v56, 4  ;;  %v5333_v35 = vsel %vm7558_vm9, %v6614_v42, %v5332_v43  ;;  %v5334_v37 = vrot.slane %v5332_v43, 4  ;;  %v3130_v50 = vpop.f32.mrf.mxu0  ;;  %v7074_v56 = vpop.f32.mrf.mxu1 }
 0x167   : > { %v4765_v15 = vrot.slane %v4764_v22, 4  ;;  %v8540_v19 = vadd.f32 %v8503_v13, %v1532_v3  ;;  %v1535_v31 = vadd.f32 %v7031_v14, %v8894_v16  ;;  %v1533_v34 = vadd.f32 %v1460_v44, %v8895_v49 }
 0x168   : > { %7232 = vmatprep.mubr.msk.bf16.mxu1 %vm529_vm2, %v6581_v4  ;;  %v4760_v11 = vsel %vm7551_vm8, %v4755_v6, %v4759_v36  ;;  %v5336_v58 = vsel %vm7558_vm9, %v5334_v37, %v5335_v59  ;;  %v2498_v26 = vadd.f32 %v7070_v61, %v8198_v8  ;;  %v2496_v38 = vadd.f32 %v2337_v12, %v8211_v62  ;;  %v2353_v61 = vpop.f32.mrf.mxu1 }
 0x169   : > { %v4770_v13 = vsel %vm7551_vm8, %v4765_v15, %v4769_v55  ;;  %v6631_v14 = vcombine.low %v5333_v35, %v5336_v58  ;;  %v8554_v44 = vadd.f32 %v8519_v45, %v1535_v31  ;;  %v8556_v42 = vadd.f32 %v2029_v30, %v1533_v34  ;;  %v7108_v30 = vpop.f32.mrf.mxu0 }
 0x16a   : > { %v6582_v43 = vcombine.low %v4760_v11, %v4770_v13  ;;  %v8558_v36 = vadd.f32 %v7104_v25, %v2498_v26  ;;  %v8560_v7 = vadd.f32 %v3127_v9, %v2496_v38  ;;  %v2499_v8 = vadd.f32 %v7071_v48, %v8220_v20  ;;  %v7075_v25 = vpop.f32.mrf.mxu1 }
 0x16b   : > { %7267 = vmatmul.mubr.msk.bf16.gmra.mxu0 %vm529_vm2, %v6631_v14  ;;  %v2497_v62 = vadd.f32 %v2340_v0, %v8229_v63  ;;  %v2502_v1 = vadd.f32 %v7074_v56, %v8250_v24  ;;  %v2500_v12 = vadd.f32 %v2353_v61, %v8263_v57  ;;  %v2503_v20 = vadd.f32 %v7075_v25, %v8271_v27  ;;  %v3143_v48 = vpop.f32.mrf.mxu0 }
 0x16c   : > { %7233 = vmatmul.mubr.msk.bf16.gmra.mxu1 %vm529_vm2, %v6582_v43  ;;  %v8568_v45 = vadd.f32 %v7105_v5, %v2499_v8  ;;  %v2356_v47 = vpop.f32.mrf.mxu1 }
 0x16d   : > { %v8570_v59 = vadd.f32 %v3130_v50, %v2497_v62  ;;  %v8572_v9 = vadd.f32 %v7108_v30, %v2502_v1  ;;  %v8575_v22 = vadd.f32 %v3143_v48, %v2500_v12  ;;  %v2501_v63 = vadd.f32 %v2356_v47, %v8277_v53  ;;  %v7109_v24 = vpop.f32.mrf.mxu0 }
 0x16e   : > { %v7078_v57 = vpop.f32.mrf.mxu1  ;;  %v8578_v55 = vadd.f32 %v7109_v24, %v2503_v20 }
 0x16f   : > { %v2506_v33 = vadd.f32 %v7078_v57, %v8299_v51  ;;  %v3146_v3 = vpop.f32.mrf.mxu0 }
 0x170   : > { %v2369_v4 = vpop.f32.mrf.mxu1  ;;  %v8581_v6 = vadd.f32 %v3146_v3, %v2501_v63 }
 0x171   : > { %v2504_v35 = vadd.f32 %v2369_v4, %v8312_v10  ;;  %v7112_v37 = vpop.f32.mrf.mxu0 }
 0x172   : > { %v7079_v27 = vpop.f32.mrf.mxu1  ;;  %v8584_v5 = vadd.f32 %v7112_v37, %v2506_v33 }
 0x173   : > { %v2507_v0 = vadd.f32 %v7079_v27, %v8323_v32  ;;  %v3159_v15 = vpop.f32.mrf.mxu0 }
 0x174   : > { %v2372_v53 = vpop.f32.mrf.mxu1  ;;  %v8587_v16 = vadd.f32 %v3159_v15, %v2504_v35 }
 0x175   : > { %v2505_v31 = vadd.f32 %v2372_v53, %v8332_v54  ;;  %v7113_v49 = vpop.f32.mrf.mxu0 }
 0x176   : > { %v7082_v51 = vpop.f32.mrf.mxu1  ;;  %v8590_v34 = vadd.f32 %v7113_v49, %v2507_v0 }
 0x177   : > { %v2510_v11 = vadd.f32 %v7082_v51, %v8359_v46  ;;  %v3162_v58 = vpop.f32.mrf.mxu0 }
 0x178   : > { %v2385_v10 = vpop.f32.mrf.mxu1  ;;  %v8593_v26 = vadd.f32 %v3162_v58, %v2505_v31 }
 0x179   : > { %v2508_v38 = vadd.f32 %v2385_v10, %v8380_v60  ;;  %v7116_v32 = vpop.f32.mrf.mxu0 }
 0x17a   : > { %v7083_v50 = vpop.f32.mrf.mxu1  ;;  %v8597_v13 = vadd.f32 %v7116_v32, %v2510_v11 }
 0x17b   : > { %v2511_v56 = vadd.f32 %v7083_v50, %v8382_v17  ;;  %v3175_v54 = vpop.f32.mrf.mxu0  ;;  %v8896_v50 = vld [vmem:[#allocation4_spill] sm:$0xff] }
 0x17c   : > { %v2388_v14 = vpop.f32.mrf.mxu1  ;;  %v8600_v8 = vadd.f32 %v3175_v54, %v2508_v38 }
 0x17d   : > { %v2509_v43 = vadd.f32 %v2388_v14, %v8390_v29  ;;  %v7117_v46 = vpop.f32.mrf.mxu0  ;;  %v8898_v14 = vld [vmem:[#allocation5_spill] sm:$0xff] }
 0x17e   : > { %v7086_v61 = vpop.f32.mrf.mxu1  ;;  %v8603_v1 = vadd.f32 %v7117_v46, %v2511_v56 }
 0x17f   : > { %v2514_v62 = vadd.f32 %v7086_v61, %v8406_v2  ;;  %v3178_v60 = vpop.f32.mrf.mxu0 }
 0x180   : > { %v2401_v12 = vpop.f32.mrf.mxu1  ;;  %v8606_v25 = vadd.f32 %v3178_v60, %v2509_v43 }
 0x181   : > { %v2512_v30 = vadd.f32 %v2401_v12, %v8431_v41  ;;  %v7120_v20 = vpop.f32.mrf.mxu0 }
 0x182   : > { %v7087_v17 = vpop.f32.mrf.mxu1  ;;  %v8609_v47 = vadd.f32 %v7120_v20, %v2514_v62 }
 0x183   : > { %v2515_v48 = vadd.f32 %v7087_v17, %v8438_v18  ;;  %v3191_v63 = vpop.f32.mrf.mxu0 }
 0x184   : > { %v2404_v29 = vpop.f32.mrf.mxu1  ;;  %v8612_v57 = vadd.f32 %v3191_v63, %v2512_v30 }
 0x185   : > { %v2513_v24 = vadd.f32 %v2404_v29, %v8440_v52  ;;  %v7121_v33 = vpop.f32.mrf.mxu0 }
 0x186   : > { %v7090_v2 = vpop.f32.mrf.mxu1  ;;  %v8615_v4 = vadd.f32 %v7121_v33, %v2515_v48 }
 0x187   : > { %v2518_v3 = vadd.f32 %v7090_v2, %v8451_v28  ;;  %v3194_v35 = vpop.f32.mrf.mxu0 }
 0x188   : > { %v2417_v41 = vpop.f32.mrf.mxu1  ;;  %v8618_v27 = vadd.f32 %v3194_v35, %v2513_v24 }
 0x189   : > { %v2516_v37 = vadd.f32 %v2417_v41, %v8467_v40  ;;  %v7124_v0 = vpop.f32.mrf.mxu0 }
 0x18a   : > { %v7091_v18 = vpop.f32.mrf.mxu1  ;;  %v8621_v53 = vadd.f32 %v7124_v0, %v2518_v3 }
 0x18b   : > { %v2519_v15 = vadd.f32 %v7091_v18, %v8469_v39  ;;  %v3207_v31 = vpop.f32.mrf.mxu0 }
 0x18c   : > { %v2420_v52 = vpop.f32.mrf.mxu1  ;;  %v8624_v51 = vadd.f32 %v3207_v31, %v2516_v37 }
 0x18d   : > { %v2517_v49 = vadd.f32 %v2420_v52, %v8475_v23  ;;  %v7125_v11 = vpop.f32.mrf.mxu0  ;;  %v8899_v23 = vld [vmem:[#allocation6_spill] sm:$0xff] }
 0x18e   : > { %v7094_v28 = vpop.f32.mrf.mxu1  ;;  %v8627_v10 = vadd.f32 %v7125_v11, %v2519_v15 }
 0x18f   : > { %v2522_v58 = vadd.f32 %v7094_v28, %v8486_v21  ;;  %v3210_v38 = vpop.f32.mrf.mxu0  ;;  %v8900_v21 = vld [vmem:[#allocation7_spill] sm:$0xff] }
 0x190   : > { %v2433_v40 = vpop.f32.mrf.mxu1  ;;  %v8630_v56 = vadd.f32 %v3210_v38, %v2517_v49 }
 0x191   : > { %v2520_v32 = vadd.f32 %v2433_v40, %v8896_v50 }
 0x192   : > { %8897 = vst [vmem:[#allocation8_spill] sm:$0xff] %v8630_v56  ;;  %v7095_v39 = vpop.f32.mrf.mxu1  ;;  %v7128_v61 = vpop.f32.mrf.mxu0 }
 0x193   : > { %v2523_v54 = vadd.f32 %v7095_v39, %v8898_v14  ;;  %v8634_v62 = vadd.f32 %v7128_v61, %v2522_v58 }
 0x194   : > { %v2436_v43 = vpop.f32.mrf.mxu1  ;;  %v3223_v60 = vpop.f32.mrf.mxu0 }
 0x195   : > { %v2521_v46 = vadd.f32 %v2436_v43, %v8899_v23  ;;  %v8637_v17 = vadd.f32 %v3223_v60, %v2520_v32 }
 0x196   : > { %v7098_v12 = vpop.f32.mrf.mxu1  ;;  %v7129_v48 = vpop.f32.mrf.mxu0 }
 0x197   : > { %v2526_v30 = vadd.f32 %v7098_v12, %v8900_v21  ;;  %v8640_v63 = vadd.f32 %v7129_v48, %v2523_v54 }
 0x198   : > { %v2449_v20 = vpop.f32.mrf.mxu1  ;;  %v3226_v2 = vpop.f32.mrf.mxu0 }
 0x199   : > { %v2524_v29 = vadd.f32 %v2449_v20, %v8540_v19  ;;  %v8643_v3 = vadd.f32 %v3226_v2, %v2521_v46 }
 0x19a   : > { %v7099_v24 = vpop.f32.mrf.mxu1  ;;  %v7132_v35 = vpop.f32.mrf.mxu0 }
 0x19b   : > { %v2527_v33 = vadd.f32 %v7099_v24, %v8554_v44  ;;  %v8646_v18 = vadd.f32 %v7132_v35, %v2526_v30 }
 0x19c   : > { %v2452_v41 = vpop.f32.mrf.mxu1  ;;  %v3239_v15 = vpop.f32.mrf.mxu0 }
 0x19d   : > { %v2525_v37 = vadd.f32 %v2452_v41, %v8556_v42  ;;  %v8649_v31 = vadd.f32 %v3239_v15, %v2524_v29 }
 0x19e   : > { %v7138_v0 = vpop.f32.mrf.mxu1  ;;  %v7133_v49 = vpop.f32.mrf.mxu0 }
 0x19f   : > { %v3854_v52 = vadd.f32 %v7138_v0, %v8558_v36  ;;  %v8652_v11 = vadd.f32 %v7133_v49, %v2527_v33 }
 0x1a0   : > { %v3693_v19 = vpop.f32.mrf.mxu1  ;;  %v3242_v58 = vpop.f32.mrf.mxu0 }
 0x1a1   : > { %v3852_v28 = vadd.f32 %v3693_v19, %v8560_v7  ;;  %v8656_v40 = vadd.f32 %v3242_v58, %v2525_v37 }
 0x1a2   : > { %v8654_v44 = vpop.f32.mrf.mxu1  ;;  %v7172_v38 = vpop.f32.mrf.mxu0 }
 0x1a3   : > { %v8660_v50 = vadd.f32 %v7172_v38, %v3854_v52 }
 0x1a4   : > { %v8658_v42 = vpop.f32.mrf.mxu1  ;;  %v4116_v32 = vpop.f32.mrf.mxu0 }
 0x1a5   : > { %v8662_v39 = vadd.f32 %v4116_v32, %v3852_v28 }
 0x1a6   : > { %v7142_v36 = vpop.f32.mrf.mxu1  ;;  %v8665_v54 = vpop.f32.mrf.mxu0 }
 0x1a7   : > { %v3858_v14 = vadd.f32 %v7142_v36, %v8572_v9 }
 0x1a8   : > { %v3709_v7 = vpop.f32.mrf.mxu1  ;;  %v8668_v61 = vpop.f32.mrf.mxu0 }
 0x1a9   : > { %v3856_v43 = vadd.f32 %v3709_v7, %v8575_v22 }
 0x1aa   : > { %v8670_v23 = vpop.f32.mrf.mxu1  ;;  %v7176_v46 = vpop.f32.mrf.mxu0 }
 0x1ab   : > { %v8674_v60 = vadd.f32 %v7176_v46, %v3858_v14 }
 0x1ac   : > { %v8672_v12 = vpop.f32.mrf.mxu1  ;;  %v4132_v21 = vpop.f32.mrf.mxu0 }
 0x1ad   : > { %v8676_v20 = vadd.f32 %v4132_v21, %v3856_v43 }
 0x1ae   : > { %v7146_v30 = vpop.f32.mrf.mxu1  ;;  %v8679_v48 = vpop.f32.mrf.mxu0 }
 0x1af   : > { %v3862_v9 = vadd.f32 %v7146_v30, %v8584_v5 }
 0x1b0   : > { %v3725_v29 = vpop.f32.mrf.mxu1  ;;  %v8682_v24 = vpop.f32.mrf.mxu0 }
 0x1b1   : > { %v3860_v22 = vadd.f32 %v3725_v29, %v8587_v16 }
 0x1b2   : > { %v8684_v2 = vpop.f32.mrf.mxu1  ;;  %v7180_v33 = vpop.f32.mrf.mxu0 }
 0x1b3   : > { %v8688_v35 = vadd.f32 %v7180_v33, %v3862_v9 }
 0x1b4   : > { %v8686_v41 = vpop.f32.mrf.mxu1  ;;  %v4148_v37 = vpop.f32.mrf.mxu0 }
 0x1b5   : > { %v8690_v15 = vadd.f32 %v4148_v37, %v3860_v22 }
 0x1b6   : > { %v7150_v0 = vpop.f32.mrf.mxu1  ;;  %v8693_v52 = vpop.f32.mrf.mxu0 }
 0x1b7   : > { %v3866_v5 = vadd.f32 %v7150_v0, %v8597_v13 }
 0x1b8   : > { %v3741_v19 = vpop.f32.mrf.mxu1  ;;  %v8696_v49 = vpop.f32.mrf.mxu0 }
 0x1b9   : > { %v3864_v16 = vadd.f32 %v3741_v19, %v8600_v8 }
 0x1ba   : > { %v8698_v28 = vpop.f32.mrf.mxu1  ;;  %v7184_v58 = vpop.f32.mrf.mxu0 }
 0x1bb   : > { %v8702_v32 = vadd.f32 %v7184_v58, %v3866_v5 }
 0x1bc   : > { %v8700_v38 = vpop.f32.mrf.mxu1  ;;  %v4164_v36 = vpop.f32.mrf.mxu0 }
 0x1bd   : > { %v8704_v7 = vadd.f32 %v4164_v36, %v3864_v16 }
 0x1be   : > { %v7154_v14 = vpop.f32.mrf.mxu1  ;;  %v8707_v43 = vpop.f32.mrf.mxu0 }
 0x1bf   : > { %v3870_v13 = vadd.f32 %v7154_v14, %v8609_v47 }
 0x1c0   : > { %v3757_v46 = vpop.f32.mrf.mxu1  ;;  %v8710_v21 = vpop.f32.mrf.mxu0 }
 0x1c1   : > { %v3868_v8 = vadd.f32 %v3757_v46, %v8612_v57 }
 0x1c2   : > { %v8712_v30 = vpop.f32.mrf.mxu1  ;;  %v7188_v9 = vpop.f32.mrf.mxu0 }
 0x1c3   : > { %v8716_v22 = vadd.f32 %v7188_v9, %v3870_v13 }
 0x1c4   : > { %v8714_v29 = vpop.f32.mrf.mxu1  ;;  %v4180_v33 = vpop.f32.mrf.mxu0 }
 0x1c5   : > { %8901 = vst [vmem:[#allocation9_spill] sm:$0xff] %v8716_v22  ;;  %v8718_v0 = vadd.f32 %v4180_v33, %v3868_v8 }
 0x1c6   : > { %v7158_v37 = vpop.f32.mrf.mxu1  ;;  %v8721_v5 = vpop.f32.mrf.mxu0 }
 0x1c7   : > { %v3874_v47 = vadd.f32 %v7158_v37, %v8621_v53 }
 0x1c8   : > { %v3773_v19 = vpop.f32.mrf.mxu1  ;;  %v8724_v16 = vpop.f32.mrf.mxu0 }
 0x1c9   : > { %v3872_v57 = vadd.f32 %v3773_v19, %v8624_v51 }
 0x1ca   : > { %v7159_v58 = vpop.f32.mrf.mxu1  ;;  %v7192_v14 = vpop.f32.mrf.mxu0 }
 0x1cb   : > { %v3875_v36 = vadd.f32 %v7159_v58, %v8627_v10  ;;  %v8729_v13 = vadd.f32 %v7192_v14, %v3874_v47 }
 0x1cc   : > { %v8727_v46 = vpop.f32.mrf.mxu1  ;;  %v4196_v9 = vpop.f32.mrf.mxu0 }
 0x1cd   : > { %8902 = vst [vmem:[#allocation10_spill] sm:$0xff] %v8727_v46  ;;  %8903 = vst [vmem:[#allocation11_spill] sm:$0xff] %v8729_v13  ;;  %v8731_v33 = vadd.f32 %v4196_v9, %v3872_v57 }
 0x1ce   : > { %v7193_v37 = vpop.f32.mrf.mxu0 }
 0x1cf   : > { %v8734_v22 = vadd.f32 %v7193_v37, %v3875_v36 }
 0x1d0   : > { %v8737_v19 = vpop.f32.mrf.mxu0 }
 0x1d1   : > { %v7162_v8 = vpop.f32.mrf.mxu1  ;;  %8904 = vst [vmem:[#allocation12_spill] sm:$0xff] %v8734_v22 }
 0x1d2   : > { %v3878_v53 = vadd.f32 %v7162_v8, %v8634_v62  ;;  %v7196_v46 = vpop.f32.mrf.mxu0 }
 0x1d3   : > { %v3789_v56 = vpop.f32.mrf.mxu1 }
 0x1d4   : > { %v3876_v51 = vadd.f32 %v3789_v56, %v8637_v17  ;;  %v8740_v14 = vadd.f32 %v7196_v46, %v3878_v53  ;;  %v4212_v9 = vpop.f32.mrf.mxu0 }
 0x1d5   : > { %v7163_v10 = vpop.f32.mrf.mxu1 }
 0x1d6   : > { %v3879_v58 = vadd.f32 %v7163_v10, %v8640_v63  ;;  %v8743_v8 = vadd.f32 %v4212_v9, %v3876_v51  ;;  %v7197_v37 = vpop.f32.mrf.mxu0 }
 0x1d7   : > { %v3792_v47 = vpop.f32.mrf.mxu1 }
 0x1d8   : > { %v3877_v57 = vadd.f32 %v3792_v47, %v8643_v3  ;;  %v8746_v17 = vadd.f32 %v7197_v37, %v3879_v58  ;;  %v4215_v63 = vpop.f32.mrf.mxu0  ;;  %v3855_v58 = vadd.f32 %v8654_v44, %v8568_v45 }
 0x1d9   : > { %v7166_v62 = vpop.f32.mrf.mxu1 }
 0x1da   : > { %v3882_v36 = vadd.f32 %v7166_v62, %v8646_v18  ;;  %v8749_v13 = vadd.f32 %v4215_v63, %v3877_v57  ;;  %v7200_v53 = vpop.f32.mrf.mxu0  ;;  %v4278_v63 = vadd.f32 %v8665_v54, %v3855_v58 }
 0x1db   : > { %v3805_v56 = vpop.f32.mrf.mxu1 }
 0x1dc   : > { %v3880_v22 = vadd.f32 %v3805_v56, %v8649_v31  ;;  %v8753_v47 = vadd.f32 %v7200_v53, %v3882_v36  ;;  %v4228_v18 = vpop.f32.mrf.mxu0 }
 0x1dd   : > { %v7167_v10 = vpop.f32.mrf.mxu1 }
 0x1de   : > { %v3883_v46 = vadd.f32 %v7167_v10, %v8652_v11  ;;  %v8758_v62 = vadd.f32 %v4228_v18, %v3880_v22  ;;  %v7201_v31 = vpop.f32.mrf.mxu0  ;;  %v3853_v11 = vadd.f32 %v8658_v42, %v8570_v59  ;;  %v3859_v42 = vadd.f32 %v8670_v23, %v8578_v55 }
 0x1df   : > { %v3808_v3 = vpop.f32.mrf.mxu1 }
 0x1e0   : > { %v3881_v51 = vadd.f32 %v3808_v3, %v8656_v40  ;;  %v8762_v37 = vadd.f32 %v7201_v31, %v3883_v46  ;;  %v4231_v56 = vpop.f32.mrf.mxu0  ;;  %v4276_v22 = vadd.f32 %v8668_v61, %v3853_v11  ;;  %v4282_v55 = vadd.f32 %v8679_v48, %v3859_v42 }
 0x1e1   : > { %v7206_v9 = vpop.f32.mrf.mxu1  ;;  %v3863_v48 = vadd.f32 %v8684_v2, %v8590_v34 }
 0x1e2   : > { %v8765_v40 = vadd.f32 %v4231_v56, %v3881_v51  ;;  %v5067_v53 = vadd.f32 %v7206_v9, %v8660_v50 }
 0x1e3   : > { %v4906_v57 = vpop.f32.mrf.mxu1  ;;  %v4286_v34 = vadd.f32 %v8693_v52, %v3863_v48  ;;  %v3867_v48 = vadd.f32 %v8698_v28, %v8603_v1 }
 0x1e4   : > { %v5065_v45 = vadd.f32 %v4906_v57, %v8662_v39  ;;  %v3857_v39 = vadd.f32 %v8672_v12, %v8581_v6 }
 0x1e5   : > { %v7207_v36 = vpop.f32.mrf.mxu1  ;;  %v4290_v1 = vadd.f32 %v8707_v43, %v3867_v48 }
 0x1e6   : > { %v5068_v3 = vadd.f32 %v7207_v36, %v4278_v63 }
 0x1e7   : > { %v4909_v44 = vpop.f32.mrf.mxu1 }
 0x1e8   : > { %v7240_v10 = vpop.f32.mrf.mxu0  ;;  %v5066_v46 = vadd.f32 %v4909_v44, %v4276_v22  ;;  %v4280_v22 = vadd.f32 %v8682_v24, %v3857_v39 }
 0x1e9   : > { %v7210_v59 = vpop.f32.mrf.mxu1  ;;  %v5633_v31 = vadd.f32 %v7240_v10, %v5067_v53 }
 0x1ea   : > { %v5472_v18 = vpop.f32.mrf.mxu0  ;;  %v5071_v36 = vadd.f32 %v7210_v59, %v8674_v60  ;;  %v3861_v60 = vadd.f32 %v8686_v41, %v8593_v26 }
 0x1eb   : > { %v5631_v54 = vadd.f32 %v5472_v18, %v5065_v45  ;;  %v4922_v58 = vpop.f32.mrf.mxu1  ;;  %v6094_v18 = vmul.f32 %v5633_v31, %v5633_v31 }
 0x1ec   : > { %v7241_v51 = vpop.f32.mrf.mxu0  ;;  %v5069_v57 = vadd.f32 %v4922_v58, %v8676_v20 }
 0x1ed   : > { %v5634_v56 = vadd.f32 %v7241_v51, %v5068_v3  ;;  %v7211_v61 = vpop.f32.mrf.mxu1  ;;  %v6092_v11 = vmul.f32 %v5631_v54, %v5631_v54 }
 0x1ee   : > { %v5475_v50 = vpop.f32.mrf.mxu0  ;;  %v5072_v44 = vadd.f32 %v7211_v61, %v4282_v55 }
 0x1ef   : > { %v6724_v23 = vpack.c.bf16 %v5634_v56, %v5633_v31  ;;  %v5632_v9 = vadd.f32 %v5475_v50, %v5066_v46  ;;  %v4925_v6 = vpop.f32.mrf.mxu1  ;;  %v6095_v59 = vmul.f32 %v5634_v56, %v5634_v56 }
 0x1f0   : > { %v7244_v63 = vpop.f32.mrf.mxu0 }
 0x1f1   : > { %6796 = vst [vmem:[%s8777_s28 + $0x8] sm:$0xff] %v6724_v23   ;;  %v6719_v12 = vpack.c.bf16 %v5632_v9, %v5631_v54  ;;  %v6054_v10 = vadd.f32 %v5632_v9, %v5631_v54  ;;  %v6093_v45 = vmul.f32 %v5632_v9, %v5632_v9  ;;  %v7214_v3 = vpop.f32.mrf.mxu1  ;;  %v5070_v54 = vadd.f32 %v4925_v6, %v4280_v22 }
 0x1f2   : > { %v5488_v53 = vpop.f32.mrf.mxu0  ;;  %v5637_v61 = vadd.f32 %v7244_v63, %v5071_v36  ;;  %v4284_v6 = vadd.f32 %v8696_v49, %v3861_v60 }
 0x1f3   : > { %6720 = vst [vmem:[%s8777_s28] sm:$0xff] %v6719_v12   ;;  %v6055_v20 = vadd.f32 %v6054_v10, %v5633_v31  ;;  %v6124_v42 = vadd.f32 %v6093_v45, %v6092_v11  ;;  %v5635_v46 = vadd.f32 %v5488_v53, %v5069_v57  ;;  %v4938_v58 = vpop.f32.mrf.mxu1 }
 0x1f4   : > { %v7245_v51 = vpop.f32.mrf.mxu0  ;;  %v5073_v26 = vadd.f32 %v4938_v58, %v8690_v15  ;;  %v3865_v15 = vadd.f32 %v8700_v38, %v8606_v25 }
 0x1f5   : > { %v6125_v50 = vadd.f32 %v6124_v42, %v6094_v18  ;;  %v6056_v24 = vadd.f32 %v6055_v20, %v5634_v56  ;;  %v5638_v39 = vadd.f32 %v7245_v51, %v5072_v44  ;;  %v7215_v55 = vpop.f32.mrf.mxu1  ;;  %v6096_v31 = vmul.f32 %v5635_v46, %v5635_v46 }
 0x1f6   : > { %v5491_v2 = vpop.f32.mrf.mxu0  ;;  %v5075_v56 = vadd.f32 %v7214_v3, %v8688_v35  ;;  %v5076_v63 = vadd.f32 %v7215_v55, %v4286_v34  ;;  %v6098_v18 = vmul.f32 %v5637_v61, %v5637_v61  ;;  %v4288_v25 = vadd.f32 %v8710_v21, %v3865_v15 }
 0x1f7   : > { %v6057_v23 = vadd.f32 %v6056_v24, %v5635_v46  ;;  %v6126_v9 = vadd.f32 %v6125_v50, %v6095_v59  ;;  %v6734_v57 = vpack.c.bf16 %v5638_v39, %v5637_v61  ;;  %v5636_v11 = vadd.f32 %v5491_v2, %v5070_v54  ;;  %v4941_v41 = vpop.f32.mrf.mxu1 }
 0x1f8   : > { %v7248_v12 = vpop.f32.mrf.mxu0  ;;  %v5074_v53 = vadd.f32 %v4941_v41, %v4284_v6  ;;  %v6099_v59 = vmul.f32 %v5638_v39, %v5638_v39  ;;  %v3871_v21 = vadd.f32 %v8712_v30, %v8615_v4 }
 0x1f9   : > { %v6127_v36 = vadd.f32 %v6126_v9, %v6096_v31  ;;  %6798 = vst [vmem:[%s8777_s28 + $0x18] sm:$0xff] %v6734_v57   ;;  %v6729_v52 = vpack.c.bf16 %v5636_v11, %v5635_v46  ;;  %v6058_v10 = vadd.f32 %v6057_v23, %v5636_v11  ;;  %v6097_v45 = vmul.f32 %v5636_v11, %v5636_v11  ;;  %v7218_v22 = vpop.f32.mrf.mxu1 }
 0x1fa   : > { %v5504_v44 = vpop.f32.mrf.mxu0  ;;  %v5641_v3 = vadd.f32 %v7248_v12, %v5075_v56  ;;  %v4294_v4 = vadd.f32 %v8721_v5, %v3871_v21  ;;  %v8907_v21 = vld [vmem:[#allocation10_spill] sm:$0xff] }
 0x1fb   : > { %6797 = vst [vmem:[%s8777_s28 + $0x10] sm:$0xff] %v6729_v52   ;;  %v6059_v49 = vadd.f32 %v6058_v10, %v5637_v61  ;;  %v6128_v20 = vadd.f32 %v6127_v36, %v6097_v45  ;;  %v5639_v42 = vadd.f32 %v5504_v44, %v5073_v26  ;;  %v4954_v35 = vpop.f32.mrf.mxu1  ;;  %v3869_v26 = vadd.f32 %v8714_v29, %v8618_v27 }
 0x1fc   : > { %v7249_v60 = vpop.f32.mrf.mxu0  ;;  %v5077_v55 = vadd.f32 %v4954_v35, %v8704_v7  ;;  %v6102_v6 = vmul.f32 %v5641_v3, %v5641_v3 }
 0x1fd   : > { %v5642_v46 = vadd.f32 %v7249_v60, %v5076_v63  ;;  %v6129_v51 = vadd.f32 %v6128_v20, %v6098_v18  ;;  %v6060_v54 = vadd.f32 %v6059_v49, %v5638_v39  ;;  %v7219_v50 = vpop.f32.mrf.mxu1  ;;  %v6100_v61 = vmul.f32 %v5639_v42, %v5639_v42 }
 0x1fe   : > { %v5507_v58 = vpop.f32.mrf.mxu0  ;;  %v5079_v39 = vadd.f32 %v7218_v22, %v8702_v32  ;;  %v5080_v57 = vadd.f32 %v7219_v50, %v4290_v1  ;;  %v4292_v27 = vadd.f32 %v8724_v16, %v3869_v26 }
 0x1ff   : > { %v6744_v28 = vpack.c.bf16 %v5642_v46, %v5641_v3  ;;  %v5640_v38 = vadd.f32 %v5507_v58, %v5074_v53  ;;  %v6061_v24 = vadd.f32 %v6060_v54, %v5639_v42  ;;  %v6130_v34 = vadd.f32 %v6129_v51, %v6099_v59  ;;  %v4957_v23 = vpop.f32.mrf.mxu1 }
 0x200   : > { %v7252_v2 = vpop.f32.mrf.mxu0  ;;  %v5078_v41 = vadd.f32 %v4957_v23, %v4288_v25  ;;  %v6103_v45 = vmul.f32 %v5642_v46, %v5642_v46 }
 0x201   : > { %6800 = vst [vmem:[%s8777_s28 + $0x28] sm:$0xff] %v6744_v28   ;;  %v6739_v31 = vpack.c.bf16 %v5640_v38, %v5639_v42  ;;  %v6101_v9 = vmul.f32 %v5640_v38, %v5640_v38  ;;  %v6131_v11 = vadd.f32 %v6130_v34, %v6100_v61  ;;  %v6062_v43 = vadd.f32 %v6061_v24, %v5640_v38 }
 0x202   : > { %v5520_v12 = vpop.f32.mrf.mxu0  ;;  %v5645_v10 = vadd.f32 %v7252_v2, %v5079_v39 }
 0x203   : > { %6799 = vst [vmem:[%s8777_s28 + $0x20] sm:$0xff] %v6739_v31   ;;  %v6063_v7 = vadd.f32 %v6062_v43, %v5641_v3  ;;  %v6132_v36 = vadd.f32 %v6131_v11, %v6101_v9  ;;  %v5643_v56 = vadd.f32 %v5520_v12, %v5077_v55  ;;  %v7222_v52 = vpop.f32.mrf.mxu1  ;;  %v8906_v12 = vld [vmem:[#allocation8_spill] sm:$0xff] }
 0x204   : > { %v7253_v63 = vpop.f32.mrf.mxu0  ;;  %v6106_v1 = vmul.f32 %v5645_v10, %v5645_v10  ;;  %v3873_v26 = vadd.f32 %v8907_v21, %v8906_v12 }
 0x205   : > { %v5646_v32 = vadd.f32 %v7253_v63, %v5080_v57  ;;  %v6133_v44 = vadd.f32 %v6132_v36, %v6102_v6  ;;  %v6064_v22 = vadd.f32 %v6063_v7, %v5642_v46  ;;  %v4970_v15 = vpop.f32.mrf.mxu1  ;;  %v6104_v18 = vmul.f32 %v5643_v56, %v5643_v56  ;;  %v8905_v46 = vld [vmem:[#allocation9_spill] sm:$0xff] }
 0x206   : > { %v5523_v48 = vpop.f32.mrf.mxu0  ;;  %v5081_v42 = vadd.f32 %v4970_v15, %v8718_v0  ;;  %v5083_v59 = vadd.f32 %v7222_v52, %v8905_v46 }
 0x207   : > { %v6754_v30 = vpack.c.bf16 %v5646_v32, %v5645_v10  ;;  %v5644_v29 = vadd.f32 %v5523_v48, %v5078_v41  ;;  %v6065_v53 = vadd.f32 %v6064_v22, %v5643_v56  ;;  %v6134_v49 = vadd.f32 %v6133_v44, %v6103_v45  ;;  %v7223_v60 = vpop.f32.mrf.mxu1  ;;  %v8908_v48 = vld [vmem:[#allocation11_spill] sm:$0xff] }
 0x208   : > { %v7256_v20 = vpop.f32.mrf.mxu0  ;;  %v5084_v51 = vadd.f32 %v7223_v60, %v4294_v4  ;;  %v6107_v34 = vmul.f32 %v5646_v32, %v5646_v32  ;;  %v4296_v22 = vadd.f32 %v8737_v19, %v3873_v26 }
 0x209   : > { %6802 = vst [vmem:[%s8777_s28 + $0x38] sm:$0xff] %v6754_v30   ;;  %v6749_v35 = vpack.c.bf16 %v5644_v29, %v5643_v56  ;;  %v6105_v3 = vmul.f32 %v5644_v29, %v5644_v29  ;;  %v6135_v54 = vadd.f32 %v6134_v49, %v6104_v18  ;;  %v6066_v5 = vadd.f32 %v6065_v53, %v5644_v29  ;;  %v4973_v16 = vpop.f32.mrf.mxu1  ;;  %v8909_v49 = vld [vmem:[#allocation12_spill] sm:$0xff] }
 0x20a   : > { %v5536_v58 = vpop.f32.mrf.mxu0  ;;  %v5082_v50 = vadd.f32 %v4973_v16, %v4292_v27  ;;  %v5649_v0 = vadd.f32 %v7256_v20, %v5083_v59 }
 0x20b   : > { %6801 = vst [vmem:[%s8777_s28 + $0x30] sm:$0xff] %v6749_v35   ;;  %v6067_v25 = vadd.f32 %v6066_v5, %v5645_v10  ;;  %v6136_v28 = vadd.f32 %v6135_v54, %v6105_v3  ;;  %v5647_v38 = vadd.f32 %v5536_v58, %v5081_v42 }
 0x20c   : > { %v7257_v24 = vpop.f32.mrf.mxu0  ;;  %v6110_v10 = vmul.f32 %v5649_v0, %v5649_v0 }
 0x20d   : > { %v5650_v61 = vadd.f32 %v7257_v24, %v5084_v51  ;;  %v6137_v2 = vadd.f32 %v6136_v28, %v6106_v1  ;;  %v6068_v55 = vadd.f32 %v6067_v25, %v5646_v32  ;;  %v6108_v57 = vmul.f32 %v5647_v38, %v5647_v38 }
 0x20e   : > { %v5539_v23 = vpop.f32.mrf.mxu0 }
 0x20f   : > { %v6764_v31 = vpack.c.bf16 %v5650_v61, %v5649_v0  ;;  %v5648_v9 = vadd.f32 %v5539_v23, %v5082_v50  ;;  %v6069_v39 = vadd.f32 %v6068_v55, %v5647_v38  ;;  %v6138_v11 = vadd.f32 %v6137_v2, %v6107_v34 }
 0x210   : > { %v7260_v43 = vpop.f32.mrf.mxu0  ;;  %v7226_v7 = vpop.f32.mrf.mxu1  ;;  %v6111_v30 = vmul.f32 %v5650_v61, %v5650_v61 }
 0x211   : > { %6804 = vst [vmem:[%s8777_s28 + $0x48] sm:$0xff] %v6764_v31   ;;  %v6759_v41 = vpack.c.bf16 %v5648_v9, %v5647_v38  ;;  %v6109_v6 = vmul.f32 %v5648_v9, %v5648_v9  ;;  %v6139_v36 = vadd.f32 %v6138_v11, %v6108_v57  ;;  %v6070_v56 = vadd.f32 %v6069_v39, %v5648_v9 }
 0x212   : > { %v5552_v63 = vpop.f32.mrf.mxu0  ;;  %v4986_v52 = vpop.f32.mrf.mxu1  ;;  %v5087_v15 = vadd.f32 %v7226_v7, %v8908_v48 }
 0x213   : > { %6803 = vst [vmem:[%s8777_s28 + $0x40] sm:$0xff] %v6759_v41   ;;  %v6071_v32 = vadd.f32 %v6070_v56, %v5649_v0  ;;  %v6140_v45 = vadd.f32 %v6139_v36, %v6109_v6  ;;  %v5085_v44 = vadd.f32 %v4986_v52, %v8731_v33 }
 0x214   : > { %v7227_v4 = vpop.f32.mrf.mxu1  ;;  %v7261_v27 = vpop.f32.mrf.mxu0  ;;  %v5653_v33 = vadd.f32 %v7260_v43, %v5087_v15 }
 0x215   : > { %v6141_v29 = vadd.f32 %v6140_v45, %v6110_v10  ;;  %v5651_v53 = vadd.f32 %v5552_v63, %v5085_v44  ;;  %v6072_v18 = vadd.f32 %v6071_v32, %v5650_v61  ;;  %v5088_v20 = vadd.f32 %v7227_v4, %v8909_v49 }
 0x216   : > { %v4989_v42 = vpop.f32.mrf.mxu1  ;;  %v5555_v19 = vpop.f32.mrf.mxu0  ;;  %v6114_v1 = vmul.f32 %v5653_v33, %v5653_v33 }
 0x217   : > { %v6073_v60 = vadd.f32 %v6072_v18, %v5651_v53  ;;  %v6112_v35 = vmul.f32 %v5651_v53, %v5651_v53  ;;  %v6142_v3 = vadd.f32 %v6141_v29, %v6111_v30  ;;  %v5086_v46 = vadd.f32 %v4989_v42, %v4296_v22 }
 0x218   : > { %v5654_v59 = vadd.f32 %v7261_v27, %v5088_v20 }
 0x219   : > { %v6143_v51 = vadd.f32 %v6142_v3, %v6112_v35  ;;  %v5652_v54 = vadd.f32 %v5555_v19, %v5086_v46 }
 0x21a   : > { %v6774_v5 = vpack.c.bf16 %v5654_v59, %v5653_v33  ;;  %v6115_v0 = vmul.f32 %v5654_v59, %v5654_v59 }
 0x21b   : > { %v6769_v58 = vpack.c.bf16 %v5652_v54, %v5651_v53  ;;  %v6074_v16 = vadd.f32 %v6073_v60, %v5652_v54  ;;  %v6113_v50 = vmul.f32 %v5652_v54, %v5652_v54 }
 0x21c   : > { %6806 = vst [vmem:[%s8777_s28 + $0x58] sm:$0xff] %v6774_v5  }
 0x21d   : > { %6805 = vst [vmem:[%s8777_s28 + $0x50] sm:$0xff] %v6769_v58   ;;  %v6075_v25 = vadd.f32 %v6074_v16, %v5653_v33  ;;  %v6144_v28 = vadd.f32 %v6143_v51, %v6113_v50  ;;  %v7264_v38 = vpop.f32.mrf.mxu0 }
 0x21e   : > { %v7230_v24 = vpop.f32.mrf.mxu1 }
 0x21f   : > { %v6145_v61 = vadd.f32 %v6144_v28, %v6114_v1  ;;  %v5568_v34 = vpop.f32.mrf.mxu0  ;;  %v6076_v2 = vadd.f32 %v6075_v25, %v5654_v59  ;;  %v5091_v55 = vadd.f32 %v7230_v24, %v8740_v14 }
 0x220   : > { %v5002_v23 = vpop.f32.mrf.mxu1 }
 0x221   : > { %v5089_v31 = vadd.f32 %v5002_v23, %v8743_v8  ;;  %v6146_v9 = vadd.f32 %v6145_v61, %v6115_v0  ;;  %v7265_v57 = vpop.f32.mrf.mxu0  ;;  %v5657_v12 = vadd.f32 %v7264_v38, %v5091_v55 }
 0x222   : > { %v7231_v39 = vpop.f32.mrf.mxu1 }
 0x223   : > { %v5655_v11 = vadd.f32 %v5568_v34, %v5089_v31  ;;  %v5092_v43 = vadd.f32 %v7231_v39, %v8746_v17  ;;  %v5571_v36 = vpop.f32.mrf.mxu0  ;;  %v6118_v32 = vmul.f32 %v5657_v12, %v5657_v12 }
 0x224   : > { %v5005_v21 = vpop.f32.mrf.mxu1 }
 0x225   : > { %v6077_v26 = vadd.f32 %v6076_v2, %v5655_v11  ;;  %v6116_v41 = vmul.f32 %v5655_v11, %v5655_v11  ;;  %v5658_v6 = vadd.f32 %v7265_v57, %v5092_v43  ;;  %v5090_v7 = vadd.f32 %v5005_v21, %v8749_v13 }
 0x227   : > { %v6147_v14 = vadd.f32 %v6146_v9, %v6116_v41  ;;  %v6784_v56 = vpack.c.bf16 %v5658_v6, %v5657_v12  ;;  %v5656_v63 = vadd.f32 %v5571_v36, %v5090_v7  ;;  %v6119_v48 = vmul.f32 %v5658_v6, %v5658_v6 }
 0x229   : > { %6808 = vst [vmem:[%s8777_s28 + $0x68] sm:$0xff] %v6784_v56   ;;  %v6779_v8 = vpack.c.bf16 %v5656_v63, %v5655_v11  ;;  %v6078_v52 = vadd.f32 %v6077_v26, %v5656_v63  ;;  %v6117_v10 = vmul.f32 %v5656_v63, %v5656_v63 }
 0x22b   : > { %6807 = vst [vmem:[%s8777_s28 + $0x60] sm:$0xff] %v6779_v8   ;;  %v6079_v45 = vadd.f32 %v6078_v52, %v5657_v12  ;;  %v6148_v17 = vadd.f32 %v6147_v14, %v6117_v10  ;;  %v7268_v44 = vpop.f32.mrf.mxu0 }
 0x22c   : > { %v7234_v22 = vpop.f32.mrf.mxu1 }
 0x22d   : > { %v6149_v15 = vadd.f32 %v6148_v17, %v6118_v32  ;;  %v5584_v4 = vpop.f32.mrf.mxu0  ;;  %v6080_v27 = vadd.f32 %v6079_v45, %v5658_v6  ;;  %v5095_v13 = vadd.f32 %v7234_v22, %v8753_v47 }
 0x22e   : > { %v5018_v30 = vpop.f32.mrf.mxu1 }
 0x22f   : > { %v5093_v29 = vadd.f32 %v5018_v30, %v8758_v62  ;;  %v6150_v53 = vadd.f32 %v6149_v15, %v6119_v48  ;;  %v7269_v49 = vpop.f32.mrf.mxu0  ;;  %v5661_v60 = vadd.f32 %v7268_v44, %v5095_v13 }
 0x230   : > { %v7235_v18 = vpop.f32.mrf.mxu1 }
 0x231   : > { %v5659_v20 = vadd.f32 %v5584_v4, %v5093_v29  ;;  %v5096_v42 = vadd.f32 %v7235_v18, %v8762_v37  ;;  %v5587_v19 = vpop.f32.mrf.mxu0  ;;  %v6122_v16 = vmul.f32 %v5661_v60, %v5661_v60 }
 0x232   : > { %v5021_v35 = vpop.f32.mrf.mxu1 }
 0x233   : > { %v6081_v3 = vadd.f32 %v6080_v27, %v5659_v20  ;;  %v6120_v46 = vmul.f32 %v5659_v20, %v5659_v20  ;;  %v5662_v33 = vadd.f32 %v7269_v49, %v5096_v42  ;;  %v5094_v59 = vadd.f32 %v5021_v35, %v8765_v40 }
 0x235   : > { %v6151_v47 = vadd.f32 %v6150_v53, %v6120_v46  ;;  %v6794_v51 = vpack.c.bf16 %v5662_v33, %v5661_v60  ;;  %v5660_v54 = vadd.f32 %v5587_v19, %v5094_v59  ;;  %v6123_v1 = vmul.f32 %v5662_v33, %v5662_v33 }
 0x237   : > { %6810 = vst [vmem:[%s8777_s28 + $0x78] sm:$0xff] %v6794_v51   ;;  %v6789_v62 = vpack.c.bf16 %v5660_v54, %v5659_v20  ;;  %v6082_v5 = vadd.f32 %v6081_v3, %v5660_v54  ;;  %v6121_v58 = vmul.f32 %v5660_v54, %v5660_v54 }
 0x239   : > { %6809 = vst [vmem:[%s8777_s28 + $0x70] sm:$0xff] %v6789_v62   ;;  %v6083_v37 = vadd.f32 %v6082_v5, %v5661_v60  ;;  %v6152_v50 = vadd.f32 %v6151_v47, %v6121_v58 }
 0x23b   : > { %v6084_v25 = vadd.f32 %v6083_v37, %v5662_v33  ;;  %v6153_v28 = vadd.f32 %v6152_v50, %v6122_v16 }
 0x23d   : > { %v6085_v38 = vrot.slane %v6084_v25, 4  ;;  %v6154_v24 = vadd.f32 %v6153_v28, %v6123_v1 }
 0x23f   : > { %v6086_v0 = vadd.f32 %v6085_v38, %v6084_v25  ;;  %v6155_v40 = vrot.slane %v6154_v24, 4 }
 0x241   : > { %v6087_v61 = vrot.slane %v6086_v0, 2  ;;  %v6156_v34 = vadd.f32 %v6155_v40, %v6154_v24 }
 0x243   : > { %v6088_v2 = vadd.f32 %v6087_v61, %v6086_v0  ;;  %v6157_v55 = vrot.slane %v6156_v34, 2 }
 0x245   : > { %v6089_v23 = vrot.slane %v6088_v2, 1  ;;  %v6158_v31 = vadd.f32 %v6157_v55, %v6156_v34 }
 0x247   : > { %v6090_v9 = vadd.f32 %v6089_v23, %v6088_v2  ;;  %v6159_v39 = vrot.slane %v6158_v31, 1 }
 0x249   : > { %6091 = vst [vmem:[%s302_s6] sm:$0x1] %v6090_v9  ;;  %v6160_v57 = vadd.f32 %v6159_v39, %v6158_v31 }
 0x24b   : > { %6161 = vst [vmem:[%s302_s6 + $0x1] sm:$0x1] %v6160_v57 }
 0x24c PF: > { %s15_s17 = sadd.s32 1, %s7379_s17   ;;  %s8910_s15 = smov %s7375_s16 }
 0x24d   : > { %p12_p6 = scmp.ge.s32.totalorder %s15_s17, 4   ;;  %s8911_s16 = smov %s8913_s18 }
 0x24f   :  { %14 = sbr.rel (!%p12_p6) target bundleno = 2 (0x2), region = 88 }

</bundles_post_ra>
